<compile_context>
chip_gen: v6e
topology: v6e:2x2x1
jax: 0.10.0
libtpu: 0.0.40
codegen_flags: <defaults>
</compile_context>

<pallas_src>
import jax
import jax.numpy as jnp
from jax.experimental import pallas as pl
from jax.experimental.pallas import tpu as pltpu

BN_EPS = 1e-5
IN_F = 243      # real input/output feature width
PAD_F = 256     # lane-dense padded width (multiple of 128)
LATENT = 1024   # mu / logvar width

# Row layout of the packed small-vector arrays.
# small256 rows: 0=enc1_gamma 1=enc1_beta 2=dec2_gamma 3=dec2_beta
#                4=dec3_gamma 5=dec3_beta 6=dec4_bias  7=unused(zeros)
# small512 rows: 0=enc2_gamma 1=enc2_beta 2=dec1_gamma 3=dec1_beta


# ---------------------------------------------------------------------------
# Fused Pallas kernel: the entire AE forward in one body.
# ---------------------------------------------------------------------------
def fused_ae_kernel(x_ref, eps_ref,
                    e1w, e2w, hw, d1w, d2w, d3w, d4w,
                    small256_ref, small512_ref, head_b_ref,
                    o_ref):
    def linear(x, w_ref):
        # Native bf16 MXU path, f32 accumulation.
        return jnp.dot(x.astype(jnp.bfloat16), w_ref[...],
                       preferred_element_type=jnp.float32)

    def batchnorm(y, g, b):
        # Training-mode BatchNorm1d: per-batch mean, biased variance.
        mean = jnp.mean(y, axis=0, keepdims=True)
        c = y - mean
        var = jnp.mean(c * c, axis=0, keepdims=True)
        return c * jax.lax.rsqrt(var + BN_EPS) * g + b

    # Packed small vectors: single cheap VMEM loads, sliced statically.
    s256 = small256_ref[...]          # (8, 256) f32
    s512 = small512_ref[...]          # (4, 512) f32
    head_b = head_b_ref[...]          # (1, 2048) f32

    # LeakyReLU(True) -> negative_slope = 1.0 -> identity, so no activation ops.

    # ---- encoder ----
    x = x_ref[...]
    h = batchnorm(linear(x, e1w), s256[0:1, :], s256[1:2, :])
    h = batchnorm(linear(h, e2w), s512[0:1, :], s512[1:2, :])

    # ---- fused mu/logvar head + reparametrize ----
    ml = linear(h, hw) + head_b       # (N, 2*LATENT) = [mu | logvar]
    mu = ml[:, :LATENT]
    logvar = ml[:, LATENT:]
    z = eps_ref[...] * jnp.exp(logvar * 0.5) + mu

    # ---- decoder ----
    d = batchnorm(linear(z, d1w), s512[2:3, :], s512[3:4, :])
    d = batchnorm(linear(d, d2w), s256[2:3, :], s256[3:4, :])
    d = batchnorm(linear(d, d3w), s256[4:5, :], s256[5:6, :])
    o_ref[...] = linear(d, d4w) + s256[6:7, :]   # padded (N, 256)


# ---------------------------------------------------------------------------
# Parameter construction (deterministic, PyTorch-default-like uniform init),
# with zero-padding of the 243-wide dims to 256 for lane-dense layouts.
# ---------------------------------------------------------------------------
def init_linear(key, in_f, out_f, pad_in=None, pad_out=None):
    kw, kb = jax.random.split(key)
    bound = 1.0 / jnp.sqrt(jnp.float32(in_f))
    # Stored as (in, out) == W^T for the row-major (N, F) layout.
    wt = jax.random.uniform(kw, (in_f, out_f), jnp.float32, -bound, bound)
    b = jax.random.uniform(kb, (1, out_f), jnp.float32, -bound, bound)
    if pad_in is not None and pad_in > in_f:
        wt = jnp.pad(wt, ((0, pad_in - in_f), (0, 0)))
    if pad_out is not None and pad_out > out_f:
        wt = jnp.pad(wt, ((0, 0), (0, pad_out - out_f)))
        b = jnp.pad(b, ((0, 0), (0, pad_out - out_f)))
    return wt.astype(jnp.bfloat16), b  # bf16 weights, f32 bias


def init_bn(out_f, pad_out=None):
    g = jnp.ones((1, out_f), jnp.float32)
    be = jnp.zeros((1, out_f), jnp.float32)
    if pad_out is not None and pad_out > out_f:
        # Padded columns MUST stay zero (suppresses rsqrt(eps) on padded lanes).
        g = jnp.pad(g, ((0, 0), (0, pad_out - out_f)))
        be = jnp.pad(be, ((0, 0), (0, pad_out - out_f)))
    return g, be


PARAM_ORDER = (
    "enc1_w", "enc2_w", "head_w", "dec1_w", "dec2_w", "dec3_w", "dec4_w",
    "small256", "small512", "head_b",
)


def init_params(key):
    keys = jax.random.split(key, 9)
    p = {}
    # encoder (biases dropped: BN mean-subtraction cancels them exactly)
    p["enc1_w"], _ = init_linear(keys[0], IN_F, 256, pad_in=PAD_F)
    e1g, e1be = init_bn(256)
    p["enc2_w"], _ = init_linear(keys[1], 256, 512)
    e2g, e2be = init_bn(512)
    # fused mu/logvar head (two Linear(512, 1024) concatenated along out dim)
    mu_w, mu_b = init_linear(keys[2], 512, LATENT)
    lv_w, lv_b = init_linear(keys[3], 512, LATENT)
    p["head_w"] = jnp.concatenate([mu_w, lv_w], axis=1)
    p["head_b"] = jnp.concatenate([mu_b, lv_b], axis=1)
    # decoder
    p["dec1_w"], _ = init_linear(keys[4], LATENT, 512)
    d1g, d1be = init_bn(512)
    p["dec2_w"], _ = init_linear(keys[5], 512, 256)
    d2g, d2be = init_bn(256)
    p["dec3_w"], _ = init_linear(keys[6], 256, IN_F, pad_out=PAD_F)
    d3g, d3be = init_bn(IN_F, pad_out=PAD_F)       # padded cols are zero
    p["dec4_w"], d4b = init_linear(keys[7], IN_F, IN_F,
                                   pad_in=PAD_F, pad_out=PAD_F)
    # pack the small per-layer vectors into two contiguous f32 arrays
    p["small256"] = jnp.concatenate(
        [e1g, e1be, d2g, d2be, d3g, d3be, d4b,
         jnp.zeros((1, PAD_F), jnp.float32)], axis=0)          # (8, 256)
    p["small512"] = jnp.concatenate([e2g, e2be, d1g, d1be], axis=0)  # (4, 512)
    return p, keys[8]


# ---------------------------------------------------------------------------
# Wrapper: single pallas_call for the whole forward (padded, lane-dense path).
# ---------------------------------------------------------------------------
_W_PARAMS = (PAD_F * 256 + 256 * 512 + 512 * (2 * LATENT) + LATENT * 512
             + 512 * 256 + 256 * PAD_F + PAD_F * PAD_F)      # padded weight params
_SMALL_ELEMS = 8 * 256 + 4 * 512 + 2 * LATENT                # packed f32 vectors


def _cost_estimate(n):
    return pl.CostEstimate(
        flops=2 * n * _W_PARAMS,
        transcendentals=n * LATENT + (256 + 512 + 512 + 256 + 256),  # exp + BN rsqrt
        bytes_accessed=(2 * _W_PARAMS                    # bf16 weights
                        + 4 * _SMALL_ELEMS               # packed f32 vectors
                        + 4 * n * (PAD_F + LATENT + PAD_F)),  # x, eps, out
    )


@jax.jit
def ae_forward_padded(params, x_pad, eps):
    """Core entry point: x_pad is (N, 256) lane-dense; returns padded (N, 256)."""
    n = x_pad.shape[0]
    args = [x_pad, eps] + [params[k] for k in PARAM_ORDER]
    vmem = pl.BlockSpec(memory_space=pltpu.MemorySpace.VMEM)
    return pl.pallas_call(
        fused_ae_kernel,
        out_shape=jax.ShapeDtypeStruct((n, PAD_F), jnp.float32),
        in_specs=[vmem] * len(args),
        out_specs=vmem,
        compiler_params=pltpu.CompilerParams(
            vmem_limit_bytes=24 * 1024 * 1024),
        cost_estimate=_cost_estimate(n),
    )(*args)


def ae_forward(params, x, eps):
    """Convenience wrapper matching the PyTorch (N, 243) interface.
    For production, pad once at data-prep time and call ae_forward_padded."""
    x_pad = jnp.pad(x, ((0, 0), (0, PAD_F - IN_F)))
    return ae_forward_padded(params, x_pad, eps)[:, :IN_F]


if __name__ == "__main__":
    key = jax.random.PRNGKey(0)
    params, key = init_params(key)

    k_x, k_eps = jax.random.split(key)
    batch = 8
    x = jax.random.normal(k_x, (batch, IN_F), jnp.float32)
    eps = jax.random.normal(k_eps, (batch, LATENT), jnp.float32)

    # Pad once at data-prep time (kernel stays lane-dense end-to-end).
    x_pad = jnp.pad(x, ((0, 0), (0, PAD_F - IN_F)))
    out_pad = jax.block_until_ready(ae_forward_padded(params, x_pad, eps))
    out = out_pad[:, :IN_F]

    assert out.shape == (batch, IN_F), out.shape
    assert out.dtype == jnp.float32
    assert bool(jnp.all(jnp.isfinite(out)))
    print("KERNEL_OK")
</pallas_src>

<mosaic_0001>
module attributes {stable_mosaic.version = 11 : i64} {
  func.func @fused_ae_kernel(%arg0: memref<8x256xf32, #tpu.memory_space<vmem>>, %arg1: memref<8x1024xf32, #tpu.memory_space<vmem>>, %arg2: memref<256x256xbf16, #tpu.memory_space<vmem>>, %arg3: memref<256x512xbf16, #tpu.memory_space<vmem>>, %arg4: memref<512x2048xbf16, #tpu.memory_space<vmem>>, %arg5: memref<1024x512xbf16, #tpu.memory_space<vmem>>, %arg6: memref<512x256xbf16, #tpu.memory_space<vmem>>, %arg7: memref<256x256xbf16, #tpu.memory_space<vmem>>, %arg8: memref<256x256xbf16, #tpu.memory_space<vmem>>, %arg9: memref<8x256xf32, #tpu.memory_space<vmem>>, %arg10: memref<4x512xf32, #tpu.memory_space<vmem>>, %arg11: memref<1x2048xf32, #tpu.memory_space<vmem>>, %arg12: memref<8x256xf32, #tpu.memory_space<vmem>>) attributes {dimension_semantics = [], scalar_prefetch = 0 : i64, scratch_operands = 0 : i64, tpu.core_type = #tpu.core_type<tc>} {
    %c0 = arith.constant 0 : index
    %c0_0 = arith.constant 0 : index
    %0 = vector.load %arg9[%c0, %c0_0] : memref<8x256xf32, #tpu.memory_space<vmem>>, vector<8x256xf32>
    %c0_1 = arith.constant 0 : index
    %c0_2 = arith.constant 0 : index
    %1 = vector.load %arg10[%c0_1, %c0_2] : memref<4x512xf32, #tpu.memory_space<vmem>>, vector<4x512xf32>
    %c0_3 = arith.constant 0 : index
    %c0_4 = arith.constant 0 : index
    %2 = vector.load %arg11[%c0_3, %c0_4] : memref<1x2048xf32, #tpu.memory_space<vmem>>, vector<1x2048xf32>
    %c0_5 = arith.constant 0 : index
    %c0_6 = arith.constant 0 : index
    %3 = vector.load %arg0[%c0_5, %c0_6] : memref<8x256xf32, #tpu.memory_space<vmem>>, vector<8x256xf32>
    %4 = arith.truncf %3 : vector<8x256xf32> to vector<8x256xbf16>
    %c0_7 = arith.constant 0 : index
    %c0_8 = arith.constant 0 : index
    %5 = vector.load %arg2[%c0_7, %c0_8] : memref<256x256xbf16, #tpu.memory_space<vmem>>, vector<256x256xbf16>
    %cst = arith.constant dense<0.000000e+00> : vector<8x256xf32>
    %6 = tpu.matmul %4, %5, %cst {dimension_numbers = #tpu.dot_dimension_numbers<[1], [0], [0], [1], [0, 0, 1, 1], [], []>} : vector<8x256xbf16>, vector<256x256xbf16>, vector<8x256xf32> -> vector<8x256xf32>
    %7 = vector.extract_strided_slice %0 {offsets = [0, 0], sizes = [1, 256], strides = [1, 1]} : vector<8x256xf32> to vector<1x256xf32>
    %8 = vector.extract_strided_slice %0 {offsets = [1, 0], sizes = [1, 256], strides = [1, 1]} : vector<8x256xf32> to vector<1x256xf32>
    %cst_9 = arith.constant dense<0.000000e+00> : vector<256xf32>
    %9 = vector.multi_reduction <add>, %6, %cst_9 [0] : vector<8x256xf32> to vector<256xf32>
    %10 = vector.shape_cast %9 : vector<256xf32> to vector<1x256xf32>
    %cst_10 = arith.constant 8.000000e+00 : f32
    %11 = vector.broadcast %cst_10 : f32 to vector<1x256xf32>
    %12 = arith.divf %10, %11 : vector<1x256xf32>
    %13 = vector.broadcast %12 : vector<1x256xf32> to vector<8x256xf32>
    %14 = arith.subf %6, %13 : vector<8x256xf32>
    %15 = arith.mulf %14, %14 : vector<8x256xf32>
    %cst_11 = arith.constant dense<0.000000e+00> : vector<256xf32>
    %16 = vector.multi_reduction <add>, %15, %cst_11 [0] : vector<8x256xf32> to vector<256xf32>
    %17 = vector.shape_cast %16 : vector<256xf32> to vector<1x256xf32>
    %cst_12 = arith.constant 8.000000e+00 : f32
    %18 = vector.broadcast %cst_12 : f32 to vector<1x256xf32>
    %19 = arith.divf %17, %18 : vector<1x256xf32>
    %cst_13 = arith.constant 9.99999974E-6 : f32
    %20 = vector.broadcast %cst_13 : f32 to vector<1x256xf32>
    %21 = arith.addf %19, %20 : vector<1x256xf32>
    %22 = math.rsqrt %21 : vector<1x256xf32>
    %23 = vector.broadcast %22 : vector<1x256xf32> to vector<8x256xf32>
    %24 = arith.mulf %14, %23 : vector<8x256xf32>
    %25 = vector.broadcast %7 : vector<1x256xf32> to vector<8x256xf32>
    %26 = arith.mulf %24, %25 : vector<8x256xf32>
    %27 = vector.broadcast %8 : vector<1x256xf32> to vector<8x256xf32>
    %28 = arith.addf %26, %27 : vector<8x256xf32>
    %29 = arith.truncf %28 : vector<8x256xf32> to vector<8x256xbf16>
    %c0_14 = arith.constant 0 : index
    %c0_15 = arith.constant 0 : index
    %30 = vector.load %arg3[%c0_14, %c0_15] : memref<256x512xbf16, #tpu.memory_space<vmem>>, vector<256x512xbf16>
    %cst_16 = arith.constant dense<0.000000e+00> : vector<8x512xf32>
    %31 = tpu.matmul %29, %30, %cst_16 {dimension_numbers = #tpu.dot_dimension_numbers<[1], [0], [0], [1], [0, 0, 1, 1], [], []>} : vector<8x256xbf16>, vector<256x512xbf16>, vector<8x512xf32> -> vector<8x512xf32>
    %32 = vector.extract_strided_slice %1 {offsets = [0, 0], sizes = [1, 512], strides = [1, 1]} : vector<4x512xf32> to vector<1x512xf32>
    %33 = vector.extract_strided_slice %1 {offsets = [1, 0], sizes = [1, 512], strides = [1, 1]} : vector<4x512xf32> to vector<1x512xf32>
    %cst_17 = arith.constant dense<0.000000e+00> : vector<512xf32>
    %34 = vector.multi_reduction <add>, %31, %cst_17 [0] : vector<8x512xf32> to vector<512xf32>
    %35 = vector.shape_cast %34 : vector<512xf32> to vector<1x512xf32>
    %cst_18 = arith.constant 8.000000e+00 : f32
    %36 = vector.broadcast %cst_18 : f32 to vector<1x512xf32>
    %37 = arith.divf %35, %36 : vector<1x512xf32>
    %38 = vector.broadcast %37 : vector<1x512xf32> to vector<8x512xf32>
    %39 = arith.subf %31, %38 : vector<8x512xf32>
    %40 = arith.mulf %39, %39 : vector<8x512xf32>
    %cst_19 = arith.constant dense<0.000000e+00> : vector<512xf32>
    %41 = vector.multi_reduction <add>, %40, %cst_19 [0] : vector<8x512xf32> to vector<512xf32>
    %42 = vector.shape_cast %41 : vector<512xf32> to vector<1x512xf32>
    %cst_20 = arith.constant 8.000000e+00 : f32
    %43 = vector.broadcast %cst_20 : f32 to vector<1x512xf32>
    %44 = arith.divf %42, %43 : vector<1x512xf32>
    %cst_21 = arith.constant 9.99999974E-6 : f32
    %45 = vector.broadcast %cst_21 : f32 to vector<1x512xf32>
    %46 = arith.addf %44, %45 : vector<1x512xf32>
    %47 = math.rsqrt %46 : vector<1x512xf32>
    %48 = vector.broadcast %47 : vector<1x512xf32> to vector<8x512xf32>
    %49 = arith.mulf %39, %48 : vector<8x512xf32>
    %50 = vector.broadcast %32 : vector<1x512xf32> to vector<8x512xf32>
    %51 = arith.mulf %49, %50 : vector<8x512xf32>
    %52 = vector.broadcast %33 : vector<1x512xf32> to vector<8x512xf32>
    %53 = arith.addf %51, %52 : vector<8x512xf32>
    %54 = arith.truncf %53 : vector<8x512xf32> to vector<8x512xbf16>
    %c0_22 = arith.constant 0 : index
    %c0_23 = arith.constant 0 : index
    %55 = vector.load %arg4[%c0_22, %c0_23] : memref<512x2048xbf16, #tpu.memory_space<vmem>>, vector<512x2048xbf16>
    %cst_24 = arith.constant dense<0.000000e+00> : vector<8x2048xf32>
    %56 = tpu.matmul %54, %55, %cst_24 {dimension_numbers = #tpu.dot_dimension_numbers<[1], [0], [0], [1], [0, 0, 1, 1], [], []>} : vector<8x512xbf16>, vector<512x2048xbf16>, vector<8x2048xf32> -> vector<8x2048xf32>
    %57 = vector.broadcast %2 : vector<1x2048xf32> to vector<8x2048xf32>
    %58 = arith.addf %56, %57 : vector<8x2048xf32>
    %59 = vector.extract_strided_slice %58 {offsets = [0, 0], sizes = [8, 1024], strides = [1, 1]} : vector<8x2048xf32> to vector<8x1024xf32>
    %60 = vector.extract_strided_slice %58 {offsets = [0, 1024], sizes = [8, 1024], strides = [1, 1]} : vector<8x2048xf32> to vector<8x1024xf32>
    %c0_25 = arith.constant 0 : index
    %c0_26 = arith.constant 0 : index
    %61 = vector.load %arg1[%c0_25, %c0_26] : memref<8x1024xf32, #tpu.memory_space<vmem>>, vector<8x1024xf32>
    %cst_27 = arith.constant 5.000000e-01 : f32
    %62 = vector.broadcast %cst_27 : f32 to vector<8x1024xf32>
    %63 = arith.mulf %60, %62 : vector<8x1024xf32>
    %64 = math.exp %63 : vector<8x1024xf32>
    %65 = arith.mulf %61, %64 : vector<8x1024xf32>
    %66 = arith.addf %65, %59 : vector<8x1024xf32>
    %67 = arith.truncf %66 : vector<8x1024xf32> to vector<8x1024xbf16>
    %c0_28 = arith.constant 0 : index
    %c0_29 = arith.constant 0 : index
    %68 = vector.load %arg5[%c0_28, %c0_29] : memref<1024x512xbf16, #tpu.memory_space<vmem>>, vector<1024x512xbf16>
    %cst_30 = arith.constant dense<0.000000e+00> : vector<8x512xf32>
    %69 = tpu.matmul %67, %68, %cst_30 {dimension_numbers = #tpu.dot_dimension_numbers<[1], [0], [0], [1], [0, 0, 1, 1], [], []>} : vector<8x1024xbf16>, vector<1024x512xbf16>, vector<8x512xf32> -> vector<8x512xf32>
    %70 = vector.extract_strided_slice %1 {offsets = [2, 0], sizes = [1, 512], strides = [1, 1]} : vector<4x512xf32> to vector<1x512xf32>
    %71 = vector.extract_strided_slice %1 {offsets = [3, 0], sizes = [1, 512], strides = [1, 1]} : vector<4x512xf32> to vector<1x512xf32>
    %cst_31 = arith.constant dense<0.000000e+00> : vector<512xf32>
    %72 = vector.multi_reduction <add>, %69, %cst_31 [0] : vector<8x512xf32> to vector<512xf32>
    %73 = vector.shape_cast %72 : vector<512xf32> to vector<1x512xf32>
    %cst_32 = arith.constant 8.000000e+00 : f32
    %74 = vector.broadcast %cst_32 : f32 to vector<1x512xf32>
    %75 = arith.divf %73, %74 : vector<1x512xf32>
    %76 = vector.broadcast %75 : vector<1x512xf32> to vector<8x512xf32>
    %77 = arith.subf %69, %76 : vector<8x512xf32>
    %78 = arith.mulf %77, %77 : vector<8x512xf32>
    %cst_33 = arith.constant dense<0.000000e+00> : vector<512xf32>
    %79 = vector.multi_reduction <add>, %78, %cst_33 [0] : vector<8x512xf32> to vector<512xf32>
    %80 = vector.shape_cast %79 : vector<512xf32> to vector<1x512xf32>
    %cst_34 = arith.constant 8.000000e+00 : f32
    %81 = vector.broadcast %cst_34 : f32 to vector<1x512xf32>
    %82 = arith.divf %80, %81 : vector<1x512xf32>
    %cst_35 = arith.constant 9.99999974E-6 : f32
    %83 = vector.broadcast %cst_35 : f32 to vector<1x512xf32>
    %84 = arith.addf %82, %83 : vector<1x512xf32>
    %85 = math.rsqrt %84 : vector<1x512xf32>
    %86 = vector.broadcast %85 : vector<1x512xf32> to vector<8x512xf32>
    %87 = arith.mulf %77, %86 : vector<8x512xf32>
    %88 = vector.broadcast %70 : vector<1x512xf32> to vector<8x512xf32>
    %89 = arith.mulf %87, %88 : vector<8x512xf32>
    %90 = vector.broadcast %71 : vector<1x512xf32> to vector<8x512xf32>
    %91 = arith.addf %89, %90 : vector<8x512xf32>
    %92 = arith.truncf %91 : vector<8x512xf32> to vector<8x512xbf16>
    %c0_36 = arith.constant 0 : index
    %c0_37 = arith.constant 0 : index
    %93 = vector.load %arg6[%c0_36, %c0_37] : memref<512x256xbf16, #tpu.memory_space<vmem>>, vector<512x256xbf16>
    %cst_38 = arith.constant dense<0.000000e+00> : vector<8x256xf32>
    %94 = tpu.matmul %92, %93, %cst_38 {dimension_numbers = #tpu.dot_dimension_numbers<[1], [0], [0], [1], [0, 0, 1, 1], [], []>} : vector<8x512xbf16>, vector<512x256xbf16>, vector<8x256xf32> -> vector<8x256xf32>
    %95 = vector.extract_strided_slice %0 {offsets = [2, 0], sizes = [1, 256], strides = [1, 1]} : vector<8x256xf32> to vector<1x256xf32>
    %96 = vector.extract_strided_slice %0 {offsets = [3, 0], sizes = [1, 256], strides = [1, 1]} : vector<8x256xf32> to vector<1x256xf32>
    %cst_39 = arith.constant dense<0.000000e+00> : vector<256xf32>
    %97 = vector.multi_reduction <add>, %94, %cst_39 [0] : vector<8x256xf32> to vector<256xf32>
    %98 = vector.shape_cast %97 : vector<256xf32> to vector<1x256xf32>
    %cst_40 = arith.constant 8.000000e+00 : f32
    %99 = vector.broadcast %cst_40 : f32 to vector<1x256xf32>
    %100 = arith.divf %98, %99 : vector<1x256xf32>
    %101 = vector.broadcast %100 : vector<1x256xf32> to vector<8x256xf32>
    %102 = arith.subf %94, %101 : vector<8x256xf32>
    %103 = arith.mulf %102, %102 : vector<8x256xf32>
    %cst_41 = arith.constant dense<0.000000e+00> : vector<256xf32>
    %104 = vector.multi_reduction <add>, %103, %cst_41 [0] : vector<8x256xf32> to vector<256xf32>
    %105 = vector.shape_cast %104 : vector<256xf32> to vector<1x256xf32>
    %cst_42 = arith.constant 8.000000e+00 : f32
    %106 = vector.broadcast %cst_42 : f32 to vector<1x256xf32>
    %107 = arith.divf %105, %106 : vector<1x256xf32>
    %cst_43 = arith.constant 9.99999974E-6 : f32
    %108 = vector.broadcast %cst_43 : f32 to vector<1x256xf32>
    %109 = arith.addf %107, %108 : vector<1x256xf32>
    %110 = math.rsqrt %109 : vector<1x256xf32>
    %111 = vector.broadcast %110 : vector<1x256xf32> to vector<8x256xf32>
    %112 = arith.mulf %102, %111 : vector<8x256xf32>
    %113 = vector.broadcast %95 : vector<1x256xf32> to vector<8x256xf32>
    %114 = arith.mulf %112, %113 : vector<8x256xf32>
    %115 = vector.broadcast %96 : vector<1x256xf32> to vector<8x256xf32>
    %116 = arith.addf %114, %115 : vector<8x256xf32>
    %117 = arith.truncf %116 : vector<8x256xf32> to vector<8x256xbf16>
    %c0_44 = arith.constant 0 : index
    %c0_45 = arith.constant 0 : index
    %118 = vector.load %arg7[%c0_44, %c0_45] : memref<256x256xbf16, #tpu.memory_space<vmem>>, vector<256x256xbf16>
    %cst_46 = arith.constant dense<0.000000e+00> : vector<8x256xf32>
    %119 = tpu.matmul %117, %118, %cst_46 {dimension_numbers = #tpu.dot_dimension_numbers<[1], [0], [0], [1], [0, 0, 1, 1], [], []>} : vector<8x256xbf16>, vector<256x256xbf16>, vector<8x256xf32> -> vector<8x256xf32>
    %120 = vector.extract_strided_slice %0 {offsets = [4, 0], sizes = [1, 256], strides = [1, 1]} : vector<8x256xf32> to vector<1x256xf32>
    %121 = vector.extract_strided_slice %0 {offsets = [5, 0], sizes = [1, 256], strides = [1, 1]} : vector<8x256xf32> to vector<1x256xf32>
    %cst_47 = arith.constant dense<0.000000e+00> : vector<256xf32>
    %122 = vector.multi_reduction <add>, %119, %cst_47 [0] : vector<8x256xf32> to vector<256xf32>
    %123 = vector.shape_cast %122 : vector<256xf32> to vector<1x256xf32>
    %cst_48 = arith.constant 8.000000e+00 : f32
    %124 = vector.broadcast %cst_48 : f32 to vector<1x256xf32>
    %125 = arith.divf %123, %124 : vector<1x256xf32>
    %126 = vector.broadcast %125 : vector<1x256xf32> to vector<8x256xf32>
    %127 = arith.subf %119, %126 : vector<8x256xf32>
    %128 = arith.mulf %127, %127 : vector<8x256xf32>
    %cst_49 = arith.constant dense<0.000000e+00> : vector<256xf32>
    %129 = vector.multi_reduction <add>, %128, %cst_49 [0] : vector<8x256xf32> to vector<256xf32>
    %130 = vector.shape_cast %129 : vector<256xf32> to vector<1x256xf32>
    %cst_50 = arith.constant 8.000000e+00 : f32
    %131 = vector.broadcast %cst_50 : f32 to vector<1x256xf32>
    %132 = arith.divf %130, %131 : vector<1x256xf32>
    %cst_51 = arith.constant 9.99999974E-6 : f32
    %133 = vector.broadcast %cst_51 : f32 to vector<1x256xf32>
    %134 = arith.addf %132, %133 : vector<1x256xf32>
    %135 = math.rsqrt %134 : vector<1x256xf32>
    %136 = vector.broadcast %135 : vector<1x256xf32> to vector<8x256xf32>
    %137 = arith.mulf %127, %136 : vector<8x256xf32>
    %138 = vector.broadcast %120 : vector<1x256xf32> to vector<8x256xf32>
    %139 = arith.mulf %137, %138 : vector<8x256xf32>
    %140 = vector.broadcast %121 : vector<1x256xf32> to vector<8x256xf32>
    %141 = arith.addf %139, %140 : vector<8x256xf32>
    %142 = arith.truncf %141 : vector<8x256xf32> to vector<8x256xbf16>
    %c0_52 = arith.constant 0 : index
    %c0_53 = arith.constant 0 : index
    %143 = vector.load %arg8[%c0_52, %c0_53] : memref<256x256xbf16, #tpu.memory_space<vmem>>, vector<256x256xbf16>
    %cst_54 = arith.constant dense<0.000000e+00> : vector<8x256xf32>
    %144 = tpu.matmul %142, %143, %cst_54 {dimension_numbers = #tpu.dot_dimension_numbers<[1], [0], [0], [1], [0, 0, 1, 1], [], []>} : vector<8x256xbf16>, vector<256x256xbf16>, vector<8x256xf32> -> vector<8x256xf32>
    %145 = vector.extract_strided_slice %0 {offsets = [6, 0], sizes = [1, 256], strides = [1, 1]} : vector<8x256xf32> to vector<1x256xf32>
    %146 = vector.broadcast %145 : vector<1x256xf32> to vector<8x256xf32>
    %147 = arith.addf %144, %146 : vector<8x256xf32>
    %c0_55 = arith.constant 0 : index
    %c0_56 = arith.constant 0 : index
    %148 = vector.load %arg12[%c0_55, %c0_56] : memref<8x256xf32, #tpu.memory_space<vmem>>, vector<8x256xf32>
    tpu.vector_store %arg12[%c0_55, %c0_56], %147 {strides = array<i32>} : memref<8x256xf32, #tpu.memory_space<vmem>>, vector<8x256xf32>,
    return
  }
}

</mosaic_0001>

<bundles_post_ra>
// kernel: ae_forward_padded.1
= control target key start
LH: loop header
LB: loop body
LE: loop exit
PB: predicated region body
PF: predicated region fallthrough
CT: control target
= control target key end

     0   :  { %17 = vsyncpa [#allocation3], 0  ;;  %s10603_s0 = inlined_call_operand.hbm [shape: f32[8,256], index: 0, kind: input, shape index: {}]   ;;  %s10604_s1 = inlined_call_operand.hbm [shape: f32[8,1024], index: 1, kind: input, shape index: {}]   ;;  %s10605_s2 = inlined_call_operand.hbm [shape: bf16[256,256], index: 2, kind: input, shape index: {}]   ;;  %s10606_s3 = inlined_call_operand.hbm [shape: bf16[256,512], index: 3, kind: input, shape index: {}]   ;;  %s10607_s4 = inlined_call_operand.hbm [shape: bf16[512,2048], index: 4, kind: input, shape index: {}]   ;;  %s10608_s5 = inlined_call_operand.hbm [shape: bf16[1024,512], index: 5, kind: input, shape index: {}]   ;;  %s10609_s6 = inlined_call_operand.hbm [shape: bf16[512,256], index: 6, kind: input, shape index: {}]   ;;  %s10610_s7 = inlined_call_operand.hbm [shape: bf16[256,256], index: 7, kind: input, shape index: {}]   ;;  %s10611_s8 = inlined_call_operand.hbm [shape: bf16[256,256], index: 8, kind: input, shape index: {}]   ;;  %s10612_s9 = inlined_call_operand.hbm [shape: f32[8,256], index: 9, kind: input, shape index: {}]   ;;  %s10613_s10 = inlined_call_operand.hbm [shape: f32[4,512], index: 10, kind: input, shape index: {}]   ;;  %s10614_s11 = inlined_call_operand.hbm [shape: f32[1,2048], index: 11, kind: input, shape index: {}]   ;;  %s10615_s12 = inlined_call_operand.hbm [shape: f32[8,256], index: 12, kind: output, shape index: {}]  }
   0x1   :  { %18 = vsyncpa [#allocation6], 0 }
   0x2   :  { %19 = vsyncpa [#allocation9], 0 }
   0x3   :  { %20 = vsyncpa [#allocation12], 0 }
   0x4   :  { %21 = vsyncpa [#allocation15], 0 }
   0x5   :  { %22 = vsyncpa [#allocation18], 0 }
   0x6   :  { %23 = vsyncpa [#allocation21], 0 }
   0x7   :  { %24 = vsyncpa [#allocation4], 0  ;;  %s10156_s21 = smov [#allocation5]   ;;  %s10157_s23 = smov [#allocation8]  }
   0x8   :  { %s41_s22 = sshll.u32 %s10156_s21, 4  ;;  %s62_s24 = sshll.u32 %s10157_s23, 4  ;;  %s42_s22 = int_to_ptr.vmem [resolvable:$true] %s41_s22  ;;  %s63_s24 = int_to_ptr.vmem [resolvable:$true] %s62_s24 }
   0x9   :  { %s9888_s25 = scalar_lea.vmem %s42_s22, 1024  ;;  %p9893_p1 = scmp.lt.s32.totalorder %s42_s22, %s42_s22 }
   0xa   :  { %p9889_p0 = scmp.ne.s32.totalorder %s42_s22, %s9888_s25  ;;  %p9894_p2 = scmp.lt.s32.totalorder %s9888_s25, %s9888_s25 }
   0xc   :  { %p9895_p3 = por %p9894_p2, %p9893_p1 }
   0xe   :  { %p9896_p4 = pnand %p9895_p3, %p9889_p0 }
  0x10   :  { %9899 = shalt.err (!%p9896_p4)
}
  0x11   :  { %44 = dma.hbm_to_vmem [thread:$0]  %s10604_s1, 1024, %s42_s22, [#allocation6]  }
  0x12   :  { %s9908_s28 = scalar_lea.vmem %s63_s24, 8192  ;;  %p9913_p6 = scmp.lt.s32.totalorder %s63_s24, %s63_s24 }
  0x13   :  { %p9909_p5 = scmp.ne.s32.totalorder %s63_s24, %s9908_s28  ;;  %p9914_p7 = scmp.lt.s32.totalorder %s9908_s28, %s9908_s28 }
  0x15   :  { %p9915_p8 = por %p9914_p7, %p9913_p6 }
  0x17   :  { %p9916_p9 = pnand %p9915_p8, %p9909_p5 }
  0x19   :  { %9919 = shalt.err (!%p9916_p9)
}
  0x1a   :  { %s10158_s29 = smov 256   ;;  %s10159_s30 = smov 16  }
  0x1b   :  { %68 = dma.hbm_to_vmem [thread:$0]  %s10606_s3, 8192, %s63_s24, [#allocation9], %s10158_s29, %s10158_s29, %s10159_s30  }
  0x1c   :  { %s10160_s15 = smov [#allocation11]  }
  0x1d   :  { %s86_s16 = sshll.u32 %s10160_s15, 4  ;;  %s87_s16 = int_to_ptr.vmem [resolvable:$true] %s86_s16 }
  0x1e   :  { %s9928_s17 = scalar_lea.vmem %s87_s16, 32768  ;;  %p9933_p11 = scmp.lt.s32.totalorder %s87_s16, %s87_s16 }
  0x1f   :  { %p9929_p10 = scmp.ne.s32.totalorder %s87_s16, %s9928_s17  ;;  %p9934_p12 = scmp.lt.s32.totalorder %s9928_s17, %s9928_s17 }
  0x21   :  { %p9935_p13 = por %p9934_p12, %p9933_p11 }
  0x23   :  { %p9936_p0 = pnand %p9935_p13, %p9929_p10 }
  0x25   :  { %9939 = shalt.err (!%p9936_p0)
}
  0x26   :  { %92 = dma.hbm_to_vmem [thread:$0]  %s10608_s5, 32768, %s87_s16, [#allocation12], %s10158_s29, %s10158_s29, %s10159_s30  }
  0x27   :  { %s10161_s19 = smov [#allocation14]   ;;  %s10162_s21 = smov [#allocation17]  }
  0x28   :  { %s110_s20 = sshll.u32 %s10161_s19, 4  ;;  %s135_s22 = sshll.u32 %s10162_s21, 4  ;;  %s111_s20 = int_to_ptr.vmem [resolvable:$true] %s110_s20  ;;  %s136_s22 = int_to_ptr.vmem [resolvable:$true] %s135_s22 }
  0x29   :  { %s9948_s3 = scalar_lea.vmem %s111_s20, 4096  ;;  %p9953_p2 = scmp.lt.s32.totalorder %s111_s20, %s111_s20 }
  0x2a   :  { %p9949_p1 = scmp.ne.s32.totalorder %s111_s20, %s9948_s3  ;;  %p9954_p3 = scmp.lt.s32.totalorder %s9948_s3, %s9948_s3 }
  0x2c   :  { %p9955_p4 = por %p9954_p3, %p9953_p2 }
  0x2e   :  { %p9956_p5 = pnand %p9955_p4, %p9949_p1 }
  0x30   :  { %9959 = shalt.err (!%p9956_p5)
}
  0x31   :  { %s10163_s23 = smov 128   ;;  %s10164_s24 = smov 8  }
  0x32   :  { %116 = dma.hbm_to_vmem [thread:$0]  %s10610_s7, 4096, %s111_s20, [#allocation15], %s10163_s23, %s10163_s23, %s10164_s24  }
  0x33   :  { %s9968_s5 = scalar_lea.vmem %s136_s22, 256  ;;  %p9973_p7 = scmp.lt.s32.totalorder %s136_s22, %s136_s22 }
  0x34   :  { %p9969_p6 = scmp.ne.s32.totalorder %s136_s22, %s9968_s5  ;;  %p9974_p8 = scmp.lt.s32.totalorder %s9968_s5, %s9968_s5 }
  0x36   :  { %p9975_p9 = por %p9974_p8, %p9973_p7 }
  0x38   :  { %p9976_p10 = pnand %p9975_p9, %p9969_p6 }
  0x3a   :  { %9979 = shalt.err (!%p9976_p10)
}
  0x3b   :  { %138 = dma.hbm_to_vmem [thread:$0]  %s10612_s9, 256, %s136_s22, [#allocation18]  }
  0x3c   :  { %s10165_s29 = smov [#allocation2]   ;;  %s10166_s13 = smov [#allocation7]  }
  0x3d   :  { %s31_s30 = sshll.u32 %s10165_s29, 4  ;;  %s50_s14 = sshll.u32 %s10166_s13, 4  ;;  %s32_s30 = int_to_ptr.vmem [resolvable:$true] %s31_s30  ;;  %s51_s14 = int_to_ptr.vmem [resolvable:$true] %s50_s14 }
  0x3e   :  { %s9988_s15 = scalar_lea.vmem %s32_s30, 256  ;;  %p9993_p12 = scmp.lt.s32.totalorder %s32_s30, %s32_s30 }
  0x3f   :  { %p9989_p11 = scmp.ne.s32.totalorder %s32_s30, %s9988_s15  ;;  %p9994_p13 = scmp.lt.s32.totalorder %s9988_s15, %s9988_s15 }
  0x41   :  { %p9995_p0 = por %p9994_p13, %p9993_p12 }
  0x43   :  { %p9996_p1 = pnand %p9995_p0, %p9989_p11 }
  0x45   :  { %9999 = shalt.err (!%p9996_p1)
}
  0x46   :  { %34 = dma.hbm_to_vmem [thread:$0]  %s10603_s0, 256, %s32_s30, [#allocation3]  }
  0x47   :  { %s10008_s17 = scalar_lea.vmem %s51_s14, 4096  ;;  %p10013_p3 = scmp.lt.s32.totalorder %s51_s14, %s51_s14 }
  0x48   :  { %p10009_p2 = scmp.ne.s32.totalorder %s51_s14, %s10008_s17  ;;  %p10014_p4 = scmp.lt.s32.totalorder %s10008_s17, %s10008_s17 }
  0x4a   :  { %p10015_p5 = por %p10014_p4, %p10013_p3 }
  0x4c   :  { %p10016_p6 = pnand %p10015_p5, %p10009_p2 }
  0x4e   :  { %10019 = shalt.err (!%p10016_p6)
}
  0x4f   :  { %56 = dma.hbm_to_vmem [thread:$0]  %s10605_s2, 4096, %s51_s14, [#allocation6], %s10163_s23, %s10163_s23, %s10164_s24  }
  0x50   :  { %s10167_s18 = smov [#allocation10]  }
  0x51   :  { %s74_s19 = sshll.u32 %s10167_s18, 4  ;;  %s75_s19 = int_to_ptr.vmem [resolvable:$true] %s74_s19 }
  0x52   :  { %s10028_s20 = scalar_lea.vmem %s75_s19, 65536  ;;  %p10033_p8 = scmp.lt.s32.totalorder %s75_s19, %s75_s19 }
  0x53   :  { %p10029_p7 = scmp.ne.s32.totalorder %s75_s19, %s10028_s20  ;;  %p10034_p9 = scmp.lt.s32.totalorder %s10028_s20, %s10028_s20 }
  0x55   :  { %p10035_p10 = por %p10034_p9, %p10033_p8 }
  0x57   :  { %p10036_p11 = pnand %p10035_p10, %p10029_p7 }
  0x59   :  { %10039 = shalt.err (!%p10036_p11)
}
  0x5a   :  { %s10168_s0 = smov 1024   ;;  %s10169_s21 = smov 64  }
  0x5b   :  { %80 = dma.hbm_to_vmem [thread:$0]  %s10607_s4, 65536, %s75_s19, [#allocation9], %s10168_s0, %s10168_s0, %s10169_s21  }
  0x5c   :  { %s10170_s25 = smov [#allocation13]   ;;  %s10171_s5 = smov [#allocation16]  }
  0x5d   :  { %s98_s26 = sshll.u32 %s10170_s25, 4  ;;  %s122_s2 = sshll.u32 %s10171_s5, 4  ;;  %s99_s26 = int_to_ptr.vmem [resolvable:$true] %s98_s26  ;;  %s123_s2 = int_to_ptr.vmem [resolvable:$true] %s122_s2 }
  0x5e   :  { %s10048_s27 = scalar_lea.vmem %s99_s26, 8192  ;;  %p10053_p13 = scmp.lt.s32.totalorder %s99_s26, %s99_s26 }
  0x5f   :  { %p10049_p12 = scmp.ne.s32.totalorder %s99_s26, %s10048_s27  ;;  %p10054_p0 = scmp.lt.s32.totalorder %s10048_s27, %s10048_s27 }
  0x61   :  { %p10055_p1 = por %p10054_p0, %p10053_p13 }
  0x63   :  { %p10056_p2 = pnand %p10055_p1, %p10049_p12 }
  0x65   :  { %10059 = shalt.err (!%p10056_p2)
}
  0x66   :  { %104 = dma.hbm_to_vmem [thread:$0]  %s10609_s6, 8192, %s99_s26, [#allocation12], %s10163_s23, %s10163_s23, %s10164_s24  }
  0x67   :  { %s10068_s4 = scalar_lea.vmem %s123_s2, 4096  ;;  %p10073_p4 = scmp.lt.s32.totalorder %s123_s2, %s123_s2 }
  0x68   :  { %p10069_p3 = scmp.ne.s32.totalorder %s123_s2, %s10068_s4  ;;  %p10074_p5 = scmp.lt.s32.totalorder %s10068_s4, %s10068_s4 }
  0x6a   :  { %p10075_p6 = por %p10074_p5, %p10073_p4 }
  0x6c   :  { %p10076_p7 = pnand %p10075_p6, %p10069_p3 }
  0x6e   :  { %10079 = shalt.err (!%p10076_p7)
}
  0x6f   :  { %128 = dma.hbm_to_vmem [thread:$0]  %s10611_s8, 4096, %s123_s2, [#allocation15], %s10163_s23, %s10163_s23, %s10164_s24  }
  0x70   :  { %s10172_s14 = smov [#allocation19]   ;;  %s10173_s7 = smov [#allocation20]  }
  0x71   :  { %s145_s15 = sshll.u32 %s10172_s14, 4  ;;  %s155_s16 = sshll.u32 %s10173_s7, 4  ;;  %s146_s15 = int_to_ptr.vmem [resolvable:$true] %s145_s15  ;;  %s156_s16 = int_to_ptr.vmem [resolvable:$true] %s155_s16 }
  0x72   :  { %s10088_s6 = scalar_lea.vmem %s146_s15, 256  ;;  %p10093_p9 = scmp.lt.s32.totalorder %s146_s15, %s146_s15 }
  0x73   :  { %p10089_p8 = scmp.ne.s32.totalorder %s146_s15, %s10088_s6  ;;  %p10094_p10 = scmp.lt.s32.totalorder %s10088_s6, %s10088_s6 }
  0x75   :  { %p10095_p11 = por %p10094_p10, %p10093_p9 }
  0x77   :  { %p10096_p12 = pnand %p10095_p11, %p10089_p8 }
  0x79   :  { %10099 = shalt.err (!%p10096_p12)
}
  0x7a   :  { %148 = dma.hbm_to_vmem [thread:$0]  %s10613_s10, 256, %s146_s15, [#allocation18]  }
  0x7b   :  { %s10108_s1 = scalar_lea.vmem %s156_s16, 256  ;;  %p10113_p0 = scmp.lt.s32.totalorder %s156_s16, %s156_s16 }
  0x7c   :  { %p10109_p13 = scmp.ne.s32.totalorder %s156_s16, %s10108_s1  ;;  %p10114_p1 = scmp.lt.s32.totalorder %s10108_s1, %s10108_s1 }
  0x7e   :  { %p10115_p2 = por %p10114_p1, %p10113_p0 }
  0x80   :  { %p10116_p3 = pnand %p10115_p2, %p10109_p13 }
  0x82   :  { %10119 = shalt.err (!%p10116_p3)
}
  0x83   :  { %158 = dma.hbm_to_vmem [thread:$0]  %s10614_s11, 256, %s156_s16, [#allocation21]  }
  0x84   :  { %10140 = dma.done.wait [#allocation3], 256  }
  0x85   :  { %10141 = vsyncadd [#allocation3], 4294967040 }
  0x86   :  { %10142 = dma.done.wait [#allocation6], 5120  }
  0x87   :  { %10143 = vsyncadd [#allocation6], 4294962176 }
  0x88   :  { %10144 = dma.done.wait [#allocation9], 73728  }
  0x89   :  { %10145 = vsyncadd [#allocation9], 4294893568 }
  0x8a   :  { %10146 = dma.done.wait [#allocation12], 40960  }
  0x8b   :  { %10147 = vsyncadd [#allocation12], 4294926336 }
  0x8c   :  { %10148 = dma.done.wait [#allocation15], 8192  }
  0x8d   :  { %10149 = vsyncadd [#allocation15], 4294959104 }
  0x8e   :  { %10150 = dma.done.wait [#allocation18], 512  }
  0x8f   :  { %10151 = vsyncadd [#allocation18], 4294966784 }
  0x90   :  { %10152 = dma.done.wait [#allocation21], 256  }
  0x91   :  { %10153 = vsyncadd [#allocation21], 4294967040  ;;  %v9111_v0 = vld [vmem:[#allocation7 + $0x74] ss:$8 sps:$4 sm:$0xff]   ;;  %v9113_v1 = vld [vmem:[#allocation7 + $0x70] ss:$8 sps:$4 sm:$0xff]  }
  0x92   :  { %397 = vmatprep.subr.bf16.mxu0 %v9111_v0  ;;  %v9114_v2 = vld [vmem:[#allocation7 + $0x64] ss:$8 sps:$4 sm:$0xff]   ;;  %v9116_v3 = vld [vmem:[#allocation7 + $0x60] ss:$8 sps:$4 sm:$0xff]   ;;  %v9117_v4 = vld [vmem:[#allocation7 + $0x54] ss:$8 sps:$4 sm:$0xff]  }
  0x93   :  { %398 = vmatpush1.bf16.msra.mxu0 %v9113_v1  ;;  %v9119_v5 = vld [vmem:[#allocation7 + $0x50] ss:$8 sps:$4 sm:$0xff]   ;;  %v9120_v6 = vld [vmem:[#allocation7 + $0x44] ss:$8 sps:$4 sm:$0xff]   ;;  %v9122_v7 = vld [vmem:[#allocation7 + $0x40] ss:$8 sps:$4 sm:$0xff]  }
  0x94   :  { %399 = vmatprep.subr.bf16.mxu0 %v9114_v2  ;;  %v9123_v8 = vld [vmem:[#allocation7 + $0x34] ss:$8 sps:$4 sm:$0xff]   ;;  %v9125_v9 = vld [vmem:[#allocation7 + $0x30] ss:$8 sps:$4 sm:$0xff]   ;;  %v9126_v10 = vld [vmem:[#allocation7 + $0x24] ss:$8 sps:$4 sm:$0xff]  }
  0x95   :  { %v9128_v11 = vld [vmem:[#allocation7 + $0x20] ss:$8 sps:$4 sm:$0xff]   ;;  %v9129_v12 = vld [vmem:[#allocation7 + $0x14] ss:$8 sps:$4 sm:$0xff]   ;;  %v9131_v16 = vld [vmem:[#allocation7 + $0x10] ss:$8 sps:$4 sm:$0xff]  }
  0x96   :  { %v202_v13 = vld [vmem:[#allocation2 + $0x8] sm:$0xff]  ;;  %v9159_v15 = vld [vmem:[#allocation8 + $0xe4] ss:$16 sps:$4 sm:$0xff]   ;;  %v9164_v18 = vld [vmem:[#allocation8 + $0xe0] ss:$16 sps:$4 sm:$0xff]   ;;  %s10174_s10 = smov [#allocation22]  }
  0x97   :  { %400 = vmatpush1.bf16.msra.mxu0 %v9116_v3  ;;  %v204_v14 = vpack.c.bf16 %v202_v13, %v202_v13  ;;  %v9132_v17 = vld [vmem:[#allocation7 + $0x4] ss:$8 sps:$4 sm:$0xff]   ;;  %v9134_v19 = vld [vmem:[#allocation7] ss:$8 sps:$4 sm:$0xff]   ;;  %883 = vmatprep.subr.bf16.mxu1 %v9159_v15  ;;  %v9135_v20 = vld [vmem:[#allocation7 + $0xf4] ss:$8 sps:$4 sm:$0xff]  }
  0x98   :  { %401 = vmatprep.subr.bf16.mxu0 %v9117_v4  ;;  %884 = vmatpush1.bf16.msra.mxu1 %v9164_v18  ;;  %v9137_v21 = vld [vmem:[#allocation7 + $0xf0] ss:$8 sps:$4 sm:$0xff]   ;;  %v9138_v22 = vld [vmem:[#allocation7 + $0xe4] ss:$8 sps:$4 sm:$0xff]   ;;  %v9140_v23 = vld [vmem:[#allocation7 + $0xe0] ss:$8 sps:$4 sm:$0xff]  }
  0x99   :  { %429 = vmatprep.mubr.bf16.mxu0 %v204_v14  ;;  %v9141_v24 = vld [vmem:[#allocation7 + $0xd4] ss:$8 sps:$4 sm:$0xff]   ;;  %v9143_v25 = vld [vmem:[#allocation7 + $0xd0] ss:$8 sps:$4 sm:$0xff]   ;;  %v9144_v26 = vld [vmem:[#allocation7 + $0xc4] ss:$8 sps:$4 sm:$0xff]  }
  0x9a   :  { %v9146_v27 = vld [vmem:[#allocation7 + $0xc0] ss:$8 sps:$4 sm:$0xff]   ;;  %v9147_v28 = vld [vmem:[#allocation7 + $0xb4] ss:$8 sps:$4 sm:$0xff]   ;;  %v9149_v29 = vld [vmem:[#allocation7 + $0xb0] ss:$8 sps:$4 sm:$0xff]  }
  0x9b   :  { %402 = vmatpush1.bf16.msra.mxu0 %v9119_v5  ;;  %v9150_v30 = vld [vmem:[#allocation7 + $0xa4] ss:$8 sps:$4 sm:$0xff]   ;;  %v9152_v31 = vld [vmem:[#allocation7 + $0xa0] ss:$8 sps:$4 sm:$0xff]   ;;  %v9153_v32 = vld [vmem:[#allocation7 + $0x94] ss:$8 sps:$4 sm:$0xff]  }
  0x9c   :  { %403 = vmatprep.subr.bf16.mxu0 %v9120_v6  ;;  %v9155_v33 = vld [vmem:[#allocation7 + $0x90] ss:$8 sps:$4 sm:$0xff]   ;;  %v9156_v34 = vld [vmem:[#allocation7 + $0x84] ss:$8 sps:$4 sm:$0xff]   ;;  %v9158_v35 = vld [vmem:[#allocation7 + $0x80] ss:$8 sps:$4 sm:$0xff]  }
  0x9d   :  { %v201_v36 = vld [vmem:[#allocation2] sm:$0xff]  ;;  %v9163_v37 = vld [vmem:[#allocation8 + $0xec] ss:$16 sps:$4 sm:$0xff]   ;;  %v9161_v38 = vld [vmem:[#allocation8 + $0xe8] ss:$16 sps:$4 sm:$0xff]   ;;  %s8085_s11 = sshll.u32 %s10174_s10, 4  ;;  %s8086_s11 = int_to_ptr.vmem [resolvable:$true] %s8085_s11 }
  0x9e   :  { %v203_v39 = vpack.c.bf16 %v201_v36, %v201_v36  ;;  %v9165_v40 = vld [vmem:[#allocation8 + $0xc4] ss:$16 sps:$4 sm:$0xff]   ;;  %v9169_v41 = vld [vmem:[#allocation8 + $0xcc] ss:$16 sps:$4 sm:$0xff]   ;;  %v9167_v42 = vld [vmem:[#allocation8 + $0xc8] ss:$16 sps:$4 sm:$0xff]   ;;  %p10125_p5 = scmp.lt.s32.totalorder %s8086_s11, %s8086_s11 }
  0x9f   :  { %404 = vmatpush1.bf16.msra.mxu0 %v9122_v7  ;;  %v9170_v43 = vld [vmem:[#allocation8 + $0xc0] ss:$16 sps:$4 sm:$0xff]   ;;  %885 = vmatprep.subr.bf16.mxu1 %v9165_v40  ;;  %v9171_v44 = vld [vmem:[#allocation8 + $0xa4] ss:$16 sps:$4 sm:$0xff]   ;;  %v9175_v45 = vld [vmem:[#allocation8 + $0xac] ss:$16 sps:$4 sm:$0xff]  }
  0xa0   :  { %405 = vmatprep.subr.bf16.mxu0 %v9123_v8  ;;  %886 = vmatpush1.bf16.msra.mxu1 %v9170_v43  ;;  %v9173_v46 = vld [vmem:[#allocation8 + $0xa8] ss:$16 sps:$4 sm:$0xff]   ;;  %v9176_v47 = vld [vmem:[#allocation8 + $0xa0] ss:$16 sps:$4 sm:$0xff]   ;;  %v9177_v48 = vld [vmem:[#allocation8 + $0x84] ss:$16 sps:$4 sm:$0xff]  }
  0xa1   :  { %887 = vmatprep.subr.bf16.mxu1 %v9171_v44  ;;  %v9181_v49 = vld [vmem:[#allocation8 + $0x8c] ss:$16 sps:$4 sm:$0xff]   ;;  %v9179_v50 = vld [vmem:[#allocation8 + $0x88] ss:$16 sps:$4 sm:$0xff]   ;;  %v9182_v51 = vld [vmem:[#allocation8 + $0x80] ss:$16 sps:$4 sm:$0xff]  }
  0xa2   :  { %v9183_v52 = vld [vmem:[#allocation8 + $0x64] ss:$16 sps:$4 sm:$0xff]   ;;  %v9187_v53 = vld [vmem:[#allocation8 + $0x6c] ss:$16 sps:$4 sm:$0xff]   ;;  %v9185_v54 = vld [vmem:[#allocation8 + $0x68] ss:$16 sps:$4 sm:$0xff]  }
  0xa3   :  { %406 = vmatpush1.bf16.msra.mxu0 %v9125_v9  ;;  %v9188_v55 = vld [vmem:[#allocation8 + $0x60] ss:$16 sps:$4 sm:$0xff]   ;;  %v9189_v56 = vld [vmem:[#allocation8 + $0x44] ss:$16 sps:$4 sm:$0xff]   ;;  %v9193_v57 = vld [vmem:[#allocation8 + $0x4c] ss:$16 sps:$4 sm:$0xff]  }
  0xa4   :  { %407 = vmatprep.subr.bf16.mxu0 %v9126_v10  ;;  %888 = vmatpush1.bf16.msra.mxu1 %v9176_v47  ;;  %v9191_v58 = vld [vmem:[#allocation8 + $0x48] ss:$16 sps:$4 sm:$0xff]   ;;  %v9194_v59 = vld [vmem:[#allocation8 + $0x40] ss:$16 sps:$4 sm:$0xff]   ;;  %v9195_v60 = vld [vmem:[#allocation8 + $0x24] ss:$16 sps:$4 sm:$0xff]  }
  0xa5   :  { %889 = vmatprep.subr.bf16.mxu1 %v9177_v48  ;;  %v9199_v61 = vld [vmem:[#allocation8 + $0x2c] ss:$16 sps:$4 sm:$0xff]   ;;  %v9197_v62 = vld [vmem:[#allocation8 + $0x28] ss:$16 sps:$4 sm:$0xff]   ;;  %v9200_v63 = vld [vmem:[#allocation8 + $0x20] ss:$16 sps:$4 sm:$0xff]  }
  0xa6   :  { %v9201_v0 = vld [vmem:[#allocation8 + $0x4] ss:$16 sps:$4 sm:$0xff]   ;;  %v9205_v1 = vld [vmem:[#allocation8 + $0xc] ss:$16 sps:$4 sm:$0xff]   ;;  %v9203_v2 = vld [vmem:[#allocation8 + $0x8] ss:$16 sps:$4 sm:$0xff]  }
  0xa7   :  { %408 = vmatpush1.bf16.msra.mxu0 %v9128_v11  ;;  %v9206_v3 = vld [vmem:[#allocation8] ss:$16 sps:$4 sm:$0xff]   ;;  %v9207_v4 = vld [vmem:[#allocation8 + $0x1e4] ss:$16 sps:$4 sm:$0xff]   ;;  %v9211_v5 = vld [vmem:[#allocation8 + $0x1ec] ss:$16 sps:$4 sm:$0xff]  }
  0xa8   :  { %409 = vmatprep.subr.bf16.mxu0 %v9129_v12  ;;  %890 = vmatpush1.bf16.msra.mxu1 %v9182_v51  ;;  %v9209_v6 = vld [vmem:[#allocation8 + $0x1e8] ss:$16 sps:$4 sm:$0xff]   ;;  %v9212_v7 = vld [vmem:[#allocation8 + $0x1e0] ss:$16 sps:$4 sm:$0xff]   ;;  %v9213_v8 = vld [vmem:[#allocation8 + $0x1c4] ss:$16 sps:$4 sm:$0xff]  }
  0xa9   :  { %891 = vmatprep.subr.bf16.mxu1 %v9183_v52  ;;  %v9217_v9 = vld [vmem:[#allocation8 + $0x1cc] ss:$16 sps:$4 sm:$0xff]   ;;  %v9215_v10 = vld [vmem:[#allocation8 + $0x1c8] ss:$16 sps:$4 sm:$0xff]   ;;  %v9218_v11 = vld [vmem:[#allocation8 + $0x1c0] ss:$16 sps:$4 sm:$0xff]  }
  0xaa   :  { %v9219_v12 = vld [vmem:[#allocation8 + $0x1a4] ss:$16 sps:$4 sm:$0xff]   ;;  %v9223_v13 = vld [vmem:[#allocation8 + $0x1ac] ss:$16 sps:$4 sm:$0xff]   ;;  %v9221_v14 = vld [vmem:[#allocation8 + $0x1a8] ss:$16 sps:$4 sm:$0xff]  }
  0xab   :  { %410 = vmatpush1.bf16.msra.mxu0 %v9131_v16  ;;  %v9224_v15 = vld [vmem:[#allocation8 + $0x1a0] ss:$16 sps:$4 sm:$0xff]   ;;  %v9225_v16 = vld [vmem:[#allocation8 + $0x184] ss:$16 sps:$4 sm:$0xff]   ;;  %v9227_v18 = vld [vmem:[#allocation8 + $0x188] ss:$16 sps:$4 sm:$0xff]  }
  0xac   :  { %411 = vmatprep.subr.bf16.mxu0 %v9132_v17  ;;  %892 = vmatpush1.bf16.msra.mxu1 %v9188_v55  ;;  %v9229_v17 = vld [vmem:[#allocation8 + $0x18c] ss:$16 sps:$4 sm:$0xff]   ;;  %v10288_v36 = vld [vmem:[#allocation10 + $0x380] sm:$0xff]  ;;  %s10120_s24 = scalar_lea.vmem %s8086_s11, 256 }
  0xad   :  { %893 = vmatprep.subr.bf16.mxu1 %v9189_v56  ;;  %p10121_p4 = scmp.ne.s32.totalorder %s8086_s11, %s10120_s24  ;;  %p10126_p6 = scmp.lt.s32.totalorder %s10120_s24, %s10120_s24 }
  0xaf   :  { %412 = vmatpush1.bf16.msra.mxu0 %v9134_v19  ;;  %v9230_v19 = vld [vmem:[#allocation8 + $0x180] ss:$16 sps:$4 sm:$0xff]   ;;  %p10127_p7 = por %p10126_p6, %p10125_p5 }
  0xb0   :  { %413 = vmatprep.subr.bf16.mxu0 %v9135_v20  ;;  %894 = vmatpush1.bf16.msra.mxu1 %v9194_v59  ;;  %v9231_v20 = vld [vmem:[#allocation8 + $0x164] ss:$16 sps:$4 sm:$0xff]  }
  0xb1   :  { %895 = vmatprep.subr.bf16.mxu1 %v9195_v60  ;;  %p10128_p8 = pnand %p10127_p7, %p10121_p4 }
  0xb3   :  { %414 = vmatpush2.bf16.msra.mxu0 %v9137_v21  ;;  %v9235_v21 = vld [vmem:[#allocation8 + $0x16c] ss:$16 sps:$4 sm:$0xff]  }
  0xb4   :  { %415 = vmatprep.subr.bf16.mxu0 %v9138_v22  ;;  %896 = vmatpush1.bf16.msra.mxu1 %v9200_v63  ;;  %v9233_v22 = vld [vmem:[#allocation8 + $0x168] ss:$16 sps:$4 sm:$0xff]  }
  0xb5   :  { %897 = vmatprep.subr.bf16.mxu1 %v9201_v0 }
  0xb7   :  { %416 = vmatpush2.bf16.msra.mxu0 %v9140_v23  ;;  %v9236_v23 = vld [vmem:[#allocation8 + $0x160] ss:$16 sps:$4 sm:$0xff]  }
  0xb8   :  { %417 = vmatprep.subr.bf16.mxu0 %v9141_v24  ;;  %898 = vmatpush1.bf16.msra.mxu1 %v9206_v3  ;;  %v9237_v24 = vld [vmem:[#allocation8 + $0x144] ss:$16 sps:$4 sm:$0xff]  }
  0xb9   :  { %899 = vmatprep.subr.bf16.mxu1 %v9207_v4 }
  0xbb   :  { %418 = vmatpush2.bf16.msra.mxu0 %v9143_v25  ;;  %v9241_v25 = vld [vmem:[#allocation8 + $0x14c] ss:$16 sps:$4 sm:$0xff]  }
  0xbc   :  { %419 = vmatprep.subr.bf16.mxu0 %v9144_v26  ;;  %900 = vmatpush2.bf16.msra.mxu1 %v9212_v7  ;;  %v9239_v26 = vld [vmem:[#allocation8 + $0x148] ss:$16 sps:$4 sm:$0xff]  }
  0xbd   :  { %901 = vmatprep.subr.bf16.mxu1 %v9213_v8 }
  0xbf   :  { %420 = vmatpush2.bf16.msra.mxu0 %v9146_v27  ;;  %v9242_v27 = vld [vmem:[#allocation8 + $0x140] ss:$16 sps:$4 sm:$0xff]  }
  0xc0   :  { %421 = vmatprep.subr.bf16.mxu0 %v9147_v28  ;;  %902 = vmatpush2.bf16.msra.mxu1 %v9218_v11  ;;  %v9243_v28 = vld [vmem:[#allocation8 + $0x124] ss:$16 sps:$4 sm:$0xff]  }
  0xc1   :  { %903 = vmatprep.subr.bf16.mxu1 %v9219_v12 }
  0xc3   :  { %422 = vmatpush2.bf16.msra.mxu0 %v9149_v29  ;;  %v9247_v29 = vld [vmem:[#allocation8 + $0x12c] ss:$16 sps:$4 sm:$0xff]  }
  0xc4   :  { %423 = vmatprep.subr.bf16.mxu0 %v9150_v30  ;;  %904 = vmatpush2.bf16.msra.mxu1 %v9224_v15  ;;  %v9245_v30 = vld [vmem:[#allocation8 + $0x128] ss:$16 sps:$4 sm:$0xff]  }
  0xc5   :  { %905 = vmatprep.subr.bf16.mxu1 %v9225_v16 }
  0xc7   :  { %424 = vmatpush2.bf16.msra.mxu0 %v9152_v31  ;;  %v9248_v31 = vld [vmem:[#allocation8 + $0x120] ss:$16 sps:$4 sm:$0xff]  }
  0xc8   :  { %425 = vmatprep.subr.bf16.mxu0 %v9153_v32  ;;  %906 = vmatpush2.bf16.msra.mxu1 %v9230_v19  ;;  %v9249_v32 = vld [vmem:[#allocation8 + $0x104] ss:$16 sps:$4 sm:$0xff]  }
  0xc9   :  { %907 = vmatprep.subr.bf16.mxu1 %v9231_v20 }
  0xcb   :  { %426 = vmatpush2.bf16.msra.mxu0 %v9155_v33  ;;  %v9251_v33 = vld [vmem:[#allocation8 + $0x108] ss:$16 sps:$4 sm:$0xff]  }
  0xcc   :  { %427 = vmatprep.subr.bf16.mxu0 %v9156_v34  ;;  %908 = vmatpush2.bf16.msra.mxu1 %v9236_v23  ;;  %v9253_v34 = vld [vmem:[#allocation8 + $0x10c] ss:$16 sps:$4 sm:$0xff]  }
  0xcd   :  { %909 = vmatprep.subr.bf16.mxu1 %v9237_v24 }
  0xcf   :  { %428 = vmatpush2.bf16.msra.mxu0 %v9158_v35  ;;  %v9254_v35 = vld [vmem:[#allocation8 + $0x100] ss:$16 sps:$4 sm:$0xff]  }
  0xd0   :  { %924 = vmatprep.subr.bf16.mxu0 %v9163_v37  ;;  %910 = vmatpush2.bf16.msra.mxu1 %v9242_v27  ;;  %v10290_v37 = vld [vmem:[#allocation10 + $0x3c0] sm:$0xff] }
  0xd1   :  { %911 = vmatprep.subr.bf16.mxu1 %v9243_v28  ;;  %v8309_v40 = vcombine.high %v10288_v36, %v10290_v37 }
  0xd2   :  { %430 = vmatmul.mubr.bf16.vlgmr.msra.gmra.mxu0 %v203_v39  ;;  %v8308_v39 = vcombine.low %v10288_v36, %v10290_v37  ;;  %v1191_v36 = vld [vmem:[#allocation10 + $0x200] sm:$0xff] }
  0xd3   :  { %925 = vmatpush1.bf16.msra.mxu0 %v9161_v38  ;;  %v10292_v38 = vld [vmem:[#allocation10 + $0xb80] sm:$0xff] }
  0xd4   :  { %926 = vmatprep.subr.bf16.mxu0 %v9169_v41  ;;  %912 = vmatpush2.bf16.msra.mxu1 %v9248_v31  ;;  %v10298_v41 = vld [vmem:[#allocation10 + $0xbc0] sm:$0xff] }
  0xd5   :  { %913 = vmatprep.subr.bf16.mxu1 %v9249_v32  ;;  %v8565_v43 = vcombine.high %v10292_v38, %v10298_v41  ;;  %v1199_v37 = vld [vmem:[#allocation10 + $0x240] sm:$0xff] }
  0xd7   :  { %927 = vmatpush1.bf16.msra.mxu0 %v9167_v42  ;;  %v8564_v42 = vcombine.low %v10292_v38, %v10298_v41  ;;  %v1447_v38 = vld [vmem:[#allocation10 + $0xa00] sm:$0xff] }
  0xd8   :  { %928 = vmatprep.subr.bf16.mxu0 %v9175_v45  ;;  %914 = vmatpush2.bf16.msra.mxu1 %v9254_v35  ;;  %v1223_v35 = vld [vmem:[#allocation10 + $0x300] sm:$0xff] }
  0xd9   :  { %4281 = vmatprep.subr.bf16.mxu1 %v8309_v40  ;;  %v1455_v41 = vld [vmem:[#allocation10 + $0xa40] sm:$0xff] }
  0xdb   :  { %929 = vmatpush1.bf16.msra.mxu0 %v9173_v46 }
  0xdc   :  { %930 = vmatprep.subr.bf16.mxu0 %v9181_v49 }
  0xdf   :  { %931 = vmatpush1.bf16.msra.mxu0 %v9179_v50 }
  0xe0   :  { %932 = vmatprep.subr.bf16.mxu0 %v9187_v53 }
  0xe3   :  { %933 = vmatpush1.bf16.msra.mxu0 %v9185_v54 }
  0xe4   :  { %934 = vmatprep.subr.bf16.mxu0 %v9193_v57 }
  0xe7   :  { %935 = vmatpush1.bf16.msra.mxu0 %v9191_v58 }
  0xe8   :  { %936 = vmatprep.subr.bf16.mxu0 %v9199_v61 }
  0xeb   :  { %937 = vmatpush1.bf16.msra.mxu0 %v9197_v62 }
  0xec   :  { %938 = vmatprep.subr.bf16.mxu0 %v9205_v1 }
  0xef   :  { %939 = vmatpush1.bf16.msra.mxu0 %v9203_v2 }
  0xf0   :  { %940 = vmatprep.subr.bf16.mxu0 %v9211_v5 }
  0xf3   :  { %941 = vmatpush2.bf16.msra.mxu0 %v9209_v6 }
  0xf4   :  { %942 = vmatprep.subr.bf16.mxu0 %v9217_v9 }
  0xf7   :  { %943 = vmatpush2.bf16.msra.mxu0 %v9215_v10 }
  0xf8   :  { %944 = vmatprep.subr.bf16.mxu0 %v9223_v13 }
  0xfb   :  { %945 = vmatpush2.bf16.msra.mxu0 %v9221_v14 }
  0xfc   :  { %946 = vmatprep.subr.bf16.mxu0 %v9229_v17 }
  0xff   :  { %947 = vmatpush2.bf16.msra.mxu0 %v9227_v18  ;;  %v477_v18 = vlaneseq }
 0x100   :  { %948 = vmatprep.subr.bf16.mxu0 %v9235_v21  ;;  %v195_v21 = vld [vmem:[#allocation17] sm:$0xff] }
 0x101   :  { %v10304_v19 = vshrl.u32 %v477_v18, 7  ;;  %v1407_v18 = vld [vmem:[#allocation10 + $0x8c0] sm:$0xff] }
 0x103   :  { %949 = vmatpush2.bf16.msra.mxu0 %v9233_v22  ;;  %v10307_v20 = vsub.s32 0, %v10304_v19  ;;  %v196_v22 = vld [vmem:[#allocation17 + $0x8] sm:$0xff]  ;;  %v10310_v23 = vsub.s32 1, %v10304_v19 }
 0x104   :  { %950 = vmatprep.subr.bf16.mxu0 %v9241_v25 }
 0x105   :  { %v480_v24 = vrot.slane %v195_v21, %v10307_v20  ;;  %v484_v27 = vrot.slane %v196_v22, %v10307_v20  ;;  %v494_v31 = vrot.slane %v196_v22, %v10310_v23 }
 0x107   :  { %951 = vmatpush2.bf16.msra.mxu0 %v9239_v26 }
 0x108   :  { %952 = vmatprep.subr.bf16.mxu0 %v9247_v29  ;;  %v490_v29 = vrot.slane %v195_v21, %v10310_v23 }
 0x10b   :  { %953 = vmatpush2.bf16.msra.mxu0 %v9245_v30 }
 0x10c   :  { %954 = vmatprep.subr.bf16.mxu0 %v9253_v34 }
 0x10f   :  { %955 = vmatpush2.bf16.msra.mxu0 %v9251_v33 }
 0x110   :  { %4322 = vmatprep.subr.bf16.mxu0 %v8565_v43  ;;  %v1231_v43 = vld [vmem:[#allocation10 + $0x340] sm:$0xff] }
 0x192   :  { %v431_v44 = vpop.f32.mrf.mxu0 }
 0x193   :  { %v438_v45 = vrot.slane %v431_v44, 4 }
 0x194   :  { %v433_v46 = vpop.f32.mrf.mxu0 }
 0x195   :  { %v439_v47 = vadd.f32 %v438_v45, %v431_v44  ;;  %v444_v48 = vrot.slane %v433_v46, 4  ;;  %v1487_v45 = vld [vmem:[#allocation10 + $0xb40] sm:$0xff] }
 0x196   :  { %v435_v49 = vpop.f32.mrf.mxu0 }
 0x197   :  { %v440_v50 = vrot.slane %v439_v47, 2  ;;  %v445_v51 = vadd.f32 %v444_v48, %v433_v46  ;;  %v8293_v48 = vcombine.high %v1223_v35, %v1231_v43 }
 0x198   :  { %v436_v52 = vpop.f32.mrf.mxu0 }
 0x199   :  { %v441_v53 = vadd.f32 %v440_v50, %v439_v47  ;;  %v446_v54 = vrot.slane %v445_v51, 2  ;;  %v8292_v50 = vcombine.low %v1223_v35, %v1231_v43  ;;  %v1207_v52 = vld [vmem:[#allocation10 + $0x280] sm:$0xff] }
 0x19a   :  { %v1623_v35 = vld [vmem:[#allocation10 + $0xf80] sm:$0xff] }
 0x19b   :  { %v442_v55 = vrot.slane %v441_v53, 1  ;;  %v447_v56 = vadd.f32 %v446_v54, %v445_v51  ;;  %v1463_v54 = vld [vmem:[#allocation10 + $0xa80] sm:$0xff] }
 0x19c   :  { %v1631_v43 = vld [vmem:[#allocation10 + $0xfc0] sm:$0xff] }
 0x19d   :  { %v443_v57 = vadd.f32 %v442_v55, %v441_v53  ;;  %v448_v58 = vrot.slane %v447_v56, 1  ;;  %v1215_v53 = vld [vmem:[#allocation10 + $0x2c0] sm:$0xff] }
 0x19e   :  { %v8277_v55 = vcombine.high %v1207_v52, %v1215_v53 }
 0x19f   :  { %v451_v59 = vmul.f32 0.125, %v443_v57  ;;  %v449_v60 = vadd.f32 %v448_v58, %v447_v56  ;;  %v1471_v56 = vld [vmem:[#allocation10 + $0xac0] sm:$0xff]  ;;  %v8276_v57 = vcombine.low %v1207_v52, %v1215_v53 }
 0x1a0   :  { %v8532_v58 = vcombine.low %v1463_v54, %v1471_v56 }
 0x1a1   :  { %v453_v61 = vsub.f32 %v431_v44, %v451_v59  ;;  %v452_v62 = vmul.f32 0.125, %v449_v60  ;;  %v1479_v44 = vld [vmem:[#allocation10 + $0xb00] sm:$0xff]  ;;  %v8533_v59 = vcombine.high %v1463_v54, %v1471_v56  ;;  %v8516_v60 = vcombine.low %v1447_v38, %v1455_v41 }
 0x1a2   :  { %v8549_v49 = vcombine.high %v1479_v44, %v1487_v45  ;;  %v8548_v51 = vcombine.low %v1479_v44, %v1487_v45  ;;  %v8692_v45 = vcombine.low %v1623_v35, %v1631_v43  ;;  %v1343_v56 = vld [vmem:[#allocation10 + $0x6c0] sm:$0xff] }
 0x1a3   :  { %v455_v63 = vmul.f32 %v453_v61, %v453_v61  ;;  %v454_v0 = vsub.f32 %v433_v46, %v452_v62  ;;  %v1175_v62 = vld [vmem:[#allocation10 + $0x180] sm:$0xff] }
 0x1a5   :  { %v457_v1 = vrot.slane %v455_v63, 4  ;;  %v456_v2 = vmul.f32 %v454_v0, %v454_v0 }
 0x1a7   :  { %v458_v3 = vadd.f32 %v457_v1, %v455_v63  ;;  %v463_v4 = vrot.slane %v456_v2, 4  ;;  %v1183_v63 = vld [vmem:[#allocation10 + $0x1c0] sm:$0xff] }
 0x1a8   :  { %v8245_v1 = vcombine.high %v1175_v62, %v1183_v63 }
 0x1a9   :  { %v459_v5 = vrot.slane %v458_v3, 2  ;;  %v464_v6 = vadd.f32 %v463_v4, %v456_v2  ;;  %v1439_v2 = vld [vmem:[#allocation10 + $0x9c0] sm:$0xff] }
 0x1ab   :  { %v460_v7 = vadd.f32 %v459_v5, %v458_v3  ;;  %v465_v8 = vrot.slane %v464_v6, 2  ;;  %v8244_v3 = vcombine.low %v1175_v62, %v1183_v63 }
 0x1ad   :  { %v461_v9 = vrot.slane %v460_v7, 1  ;;  %v466_v10 = vadd.f32 %v465_v8, %v464_v6  ;;  %v1159_v6 = vld [vmem:[#allocation10 + $0x100] sm:$0xff] }
 0x1ae   :  { %v1415_v8 = vld [vmem:[#allocation10 + $0x900] sm:$0xff] }
 0x1af   :  { %v462_v11 = vadd.f32 %v461_v9, %v460_v7  ;;  %v467_v12 = vrot.slane %v466_v10, 1  ;;  %v1167_v7 = vld [vmem:[#allocation10 + $0x140] sm:$0xff] }
 0x1b0   :  { %v8229_v9 = vcombine.high %v1159_v6, %v1167_v7 }
 0x1b1   :  { %v469_v13 = vmul.f32 0.125, %v462_v11  ;;  %v468_v14 = vadd.f32 %v467_v12, %v466_v10  ;;  %v1423_v10 = vld [vmem:[#allocation10 + $0x940] sm:$0xff]  ;;  %v8228_v11 = vcombine.low %v1159_v6, %v1167_v7 }
 0x1b2   :  { %v8484_v12 = vcombine.low %v1415_v8, %v1423_v10 }
 0x1b3   :  { %v471_v15 = vadd.f32 1e-05, %v469_v13  ;;  %v470_v16 = vmul.f32 0.125, %v468_v14  ;;  %v8485_v13 = vcombine.high %v1415_v8, %v1423_v10  ;;  %v1143_v14 = vld [vmem:[#allocation10 + $0x80] sm:$0xff] }
 0x1b4   :  { %v1295_v10 = vld [vmem:[#allocation10 + $0x540] sm:$0xff] }
 0x1b5   :  { %9831 = vrsqrt.f32 %v471_v15  ;;  %v472_v17 = vadd.f32 1e-05, %v470_v16  ;;  %v1151_v15 = vld [vmem:[#allocation10 + $0xc0] sm:$0xff] }
 0x1b6   :  { %v1399_v16 = vld [vmem:[#allocation10 + $0x880] sm:$0xff]  ;;  %v8212_v21 = vcombine.low %v1143_v14, %v1151_v15 }
 0x1b7   :  { %9833 = vrsqrt.f32 %v472_v17  ;;  %v8213_v17 = vcombine.high %v1143_v14, %v1151_v15  ;;  %v8468_v22 = vcombine.low %v1399_v16, %v1407_v18 }
 0x1c2   :  { %v9832_v25 = vpop.eup %9831 }
 0x1c3   :  { %v475_v26 = vmul.f32 %v9832_v25, %v453_v61  ;;  %v8517_v61 = vcombine.high %v1447_v38, %v1455_v41  ;;  %v1127_v25 = vld [vmem:[#allocation10] sm:$0xff] }
 0x1c4   :  { %v9834_v28 = vpop.eup %9833  ;;  %v1327_v41 = vld [vmem:[#allocation10 + $0x640] sm:$0xff] }
 0x1c5   :  { %v476_v30 = vmul.f32 %v9834_v28, %v454_v0  ;;  %v485_v32 = vmul.f32 %v480_v24, %v475_v26  ;;  %v1431_v0 = vld [vmem:[#allocation10 + $0x980] sm:$0xff]  ;;  %v8469_v24 = vcombine.high %v1399_v16, %v1407_v18 }
 0x1c6   :  { %v8500_v4 = vcombine.low %v1431_v0, %v1439_v2  ;;  %v8501_v5 = vcombine.high %v1431_v0, %v1439_v2  ;;  %v1135_v26 = vld [vmem:[#allocation10 + $0x40] sm:$0xff] }
 0x1c7   :  { %v486_v33 = vmul.f32 %v484_v27, %v476_v30  ;;  %v495_v34 = vadd.f32 %v490_v29, %v485_v32  ;;  %v1383_v27 = vld [vmem:[#allocation10 + $0x800] sm:$0xff]  ;;  %v8197_v28 = vcombine.high %v1127_v25, %v1135_v26  ;;  %v8196_v30 = vcombine.low %v1127_v25, %v1135_v26 }
 0x1c8   :  { %v1391_v29 = vld [vmem:[#allocation10 + $0x840] sm:$0xff] }
 0x1c9   :  { %v496_v40 = vadd.f32 %v494_v31, %v486_v33  ;;  %v497_v47 = vpack.c.bf16 %v495_v34, %v495_v34  ;;  %v8452_v31 = vcombine.low %v1383_v27, %v1391_v29  ;;  %v8453_v32 = vcombine.high %v1383_v27, %v1391_v29  ;;  %v1367_v33 = vld [vmem:[#allocation10 + $0x780] sm:$0xff] }
 0x1ca   :  { %v1375_v34 = vld [vmem:[#allocation10 + $0x7c0] sm:$0xff] }
 0x1cb   :  { %v498_v46 = vpack.c.bf16 %v496_v40, %v496_v40  ;;  %v8437_v40 = vcombine.high %v1367_v33, %v1375_v34  ;;  %v8436_v44 = vcombine.low %v1367_v33, %v1375_v34  ;;  %v1311_v2 = vld [vmem:[#allocation10 + $0x5c0] sm:$0xff] }
 0x1cc   :  { %v1279_v18 = vld [vmem:[#allocation10 + $0x4c0] sm:$0xff] }
 0x1cd   :  { %915 = vmatprep.mubr.bf16.mxu1 %v498_v46  ;;  %956 = vmatprep.mubr.bf16.mxu0 %v498_v46  ;;  %v8693_v46 = vcombine.high %v1623_v35, %v1631_v43  ;;  %v1263_v29 = vld [vmem:[#allocation10 + $0x440] sm:$0xff]  ;;  %v10324_v43 = vld [vmem:[#allocation10 + $0x3c8] sm:$0xff] }
 0x1ce   :  { %916 = vmatmul.mubr.bf16.vlgmr.msra.gmra.mxu1 %v497_v47  ;;  %957 = vmatmul.mubr.bf16.vlgmr.msra.gmra.mxu0 %v497_v47  ;;  %v1351_v47 = vld [vmem:[#allocation10 + $0x700] sm:$0xff] }
 0x1cf   :  { %4282 = vmatpush1.bf16.msra.mxu1 %v8308_v39  ;;  %4323 = vmatpush1.bf16.msra.mxu0 %v8564_v42  ;;  %v8261_v39 = vcombine.high %v1191_v36, %v1199_v37  ;;  %v8260_v42 = vcombine.low %v1191_v36, %v1199_v37 }
 0x1d0   :  { %4283 = vmatprep.subr.bf16.mxu1 %v8293_v48  ;;  %4324 = vmatprep.subr.bf16.mxu0 %v8549_v49  ;;  %v1359_v48 = vld [vmem:[#allocation10 + $0x740] sm:$0xff] }
 0x1d1   :  { %v1607_v49 = vld [vmem:[#allocation10 + $0xf00] sm:$0xff]  ;;  %v8420_v52 = vcombine.low %v1351_v47, %v1359_v48 }
 0x1d3   :  { %4284 = vmatpush1.bf16.msra.mxu1 %v8292_v50  ;;  %4325 = vmatpush1.bf16.msra.mxu0 %v8548_v51  ;;  %v8421_v50 = vcombine.high %v1351_v47, %v1359_v48  ;;  %v1615_v51 = vld [vmem:[#allocation10 + $0xf40] sm:$0xff] }
 0x1d4   :  { %4285 = vmatprep.subr.bf16.mxu1 %v8277_v55  ;;  %4326 = vmatprep.subr.bf16.mxu0 %v8533_v59  ;;  %v8676_v53 = vcombine.low %v1607_v49, %v1615_v51  ;;  %v8677_v54 = vcombine.high %v1607_v49, %v1615_v51  ;;  %v1335_v55 = vld [vmem:[#allocation10 + $0x680] sm:$0xff] }
 0x1d5   :  { %v1599_v59 = vld [vmem:[#allocation10 + $0xec0] sm:$0xff]  ;;  %v8404_v36 = vcombine.low %v1335_v55, %v1343_v56 }
 0x1d7   :  { %4286 = vmatpush1.bf16.msra.mxu1 %v8276_v57  ;;  %4327 = vmatpush1.bf16.msra.mxu0 %v8532_v58  ;;  %v1591_v57 = vld [vmem:[#allocation10 + $0xe80] sm:$0xff]  ;;  %v8405_v58 = vcombine.high %v1335_v55, %v1343_v56 }
 0x1d8   :  { %4287 = vmatprep.subr.bf16.mxu1 %v8261_v39  ;;  %4328 = vmatprep.subr.bf16.mxu0 %v8517_v61  ;;  %v8660_v37 = vcombine.low %v1591_v57, %v1599_v59  ;;  %v8661_v38 = vcombine.high %v1591_v57, %v1599_v59  ;;  %v1319_v39 = vld [vmem:[#allocation10 + $0x600] sm:$0xff] }
 0x1d9   :  { %v1583_v61 = vld [vmem:[#allocation10 + $0xe40] sm:$0xff]  ;;  %v8388_v62 = vcombine.low %v1319_v39, %v1327_v41 }
 0x1db   :  { %4288 = vmatpush1.bf16.msra.mxu1 %v8260_v42  ;;  %4329 = vmatpush1.bf16.msra.mxu0 %v8516_v60  ;;  %v1575_v42 = vld [vmem:[#allocation10 + $0xe00] sm:$0xff]  ;;  %v8389_v60 = vcombine.high %v1319_v39, %v1327_v41 }
 0x1dc   :  { %4289 = vmatprep.subr.bf16.mxu1 %v8245_v1  ;;  %4330 = vmatprep.subr.bf16.mxu0 %v8501_v5  ;;  %v8644_v63 = vcombine.low %v1575_v42, %v1583_v61  ;;  %v8645_v0 = vcombine.high %v1575_v42, %v1583_v61  ;;  %v1303_v1 = vld [vmem:[#allocation10 + $0x580] sm:$0xff] }
 0x1dd   :  { %v1567_v5 = vld [vmem:[#allocation10 + $0xdc0] sm:$0xff]  ;;  %v8372_v6 = vcombine.low %v1303_v1, %v1311_v2 }
 0x1df   :  { %4290 = vmatpush1.bf16.msra.mxu1 %v8244_v3  ;;  %4331 = vmatpush1.bf16.msra.mxu0 %v8500_v4  ;;  %v1559_v3 = vld [vmem:[#allocation10 + $0xd80] sm:$0xff]  ;;  %v8373_v4 = vcombine.high %v1303_v1, %v1311_v2 }
 0x1e0   :  { %4291 = vmatprep.subr.bf16.mxu1 %v8229_v9  ;;  %4332 = vmatprep.subr.bf16.mxu0 %v8485_v13  ;;  %v8628_v7 = vcombine.low %v1559_v3, %v1567_v5  ;;  %v8629_v8 = vcombine.high %v1559_v3, %v1567_v5  ;;  %v1287_v9 = vld [vmem:[#allocation10 + $0x500] sm:$0xff] }
 0x1e1   :  { %v1551_v13 = vld [vmem:[#allocation10 + $0xd40] sm:$0xff]  ;;  %v8356_v14 = vcombine.low %v1287_v9, %v1295_v10 }
 0x1e3   :  { %4292 = vmatpush1.bf16.msra.mxu1 %v8228_v11  ;;  %4333 = vmatpush1.bf16.msra.mxu0 %v8484_v12  ;;  %v1543_v11 = vld [vmem:[#allocation10 + $0xd00] sm:$0xff]  ;;  %v8357_v12 = vcombine.high %v1287_v9, %v1295_v10 }
 0x1e4   :  { %4293 = vmatprep.subr.bf16.mxu1 %v8213_v17  ;;  %4334 = vmatprep.subr.bf16.mxu0 %v8469_v24  ;;  %v8612_v15 = vcombine.low %v1543_v11, %v1551_v13  ;;  %v8613_v16 = vcombine.high %v1543_v11, %v1551_v13  ;;  %v1271_v17 = vld [vmem:[#allocation10 + $0x480] sm:$0xff] }
 0x1e5   :  { %v8340_v24 = vcombine.low %v1271_v17, %v1279_v18  ;;  %v8341_v25 = vcombine.high %v1271_v17, %v1279_v18 }
 0x1e7   :  { %4294 = vmatpush1.bf16.msra.mxu1 %v8212_v21  ;;  %4335 = vmatpush1.bf16.msra.mxu0 %v8468_v22  ;;  %v1527_v21 = vld [vmem:[#allocation10 + $0xc80] sm:$0xff] }
 0x1e8   :  { %4295 = vmatprep.subr.bf16.mxu1 %v8197_v28  ;;  %4336 = vmatprep.subr.bf16.mxu0 %v8453_v32  ;;  %v1535_v22 = vld [vmem:[#allocation10 + $0xcc0] sm:$0xff] }
 0x1e9   :  { %v8596_v26 = vcombine.low %v1527_v21, %v1535_v22  ;;  %v8597_v27 = vcombine.high %v1527_v21, %v1535_v22  ;;  %v1255_v28 = vld [vmem:[#allocation10 + $0x400] sm:$0xff] }
 0x1ea   :  { %v1519_v32 = vld [vmem:[#allocation10 + $0xc40] sm:$0xff]  ;;  %v8324_v33 = vcombine.low %v1255_v28, %v1263_v29 }
 0x1eb   :  { %4296 = vmatpush1.bf16.msra.mxu1 %v8196_v30  ;;  %4337 = vmatpush1.bf16.msra.mxu0 %v8452_v31  ;;  %v1511_v30 = vld [vmem:[#allocation10 + $0xc00] sm:$0xff]  ;;  %v8325_v31 = vcombine.high %v1255_v28, %v1263_v29 }
 0x1ec   :  { %4297 = vmatprep.subr.bf16.mxu1 %v8437_v40  ;;  %4338 = vmatprep.subr.bf16.mxu0 %v8693_v46  ;;  %v8581_v34 = vcombine.high %v1511_v30, %v1519_v32  ;;  %v8580_v35 = vcombine.low %v1511_v30, %v1519_v32  ;;  %v10322_v40 = vld [vmem:[#allocation10 + $0x388] sm:$0xff] }
 0x1ed   :  { %v10330_v46 = vld [vmem:[#allocation10 + $0xbc8] sm:$0xff]  ;;  %v8310_v47 = vcombine.low %v10322_v40, %v10324_v43 }
 0x1ef   :  { %4298 = vmatpush2.bf16.msra.mxu1 %v8436_v44  ;;  %4339 = vmatpush2.bf16.msra.mxu0 %v8692_v45  ;;  %v10326_v44 = vld [vmem:[#allocation10 + $0xb88] sm:$0xff]  ;;  %v8311_v45 = vcombine.high %v10322_v40, %v10324_v43 }
 0x1f0   :  { %4299 = vmatprep.subr.bf16.mxu1 %v8421_v50  ;;  %4340 = vmatprep.subr.bf16.mxu0 %v8677_v54  ;;  %v8566_v48 = vcombine.low %v10326_v44, %v10330_v46  ;;  %v8567_v49 = vcombine.high %v10326_v44, %v10330_v46 }
 0x1f3   :  { %4300 = vmatpush2.bf16.msra.mxu1 %v8420_v52  ;;  %4341 = vmatpush2.bf16.msra.mxu0 %v8676_v53 }
 0x1f4   :  { %4301 = vmatprep.subr.bf16.mxu1 %v8405_v58  ;;  %4342 = vmatprep.subr.bf16.mxu0 %v8661_v38 }
 0x1f7   :  { %4302 = vmatpush2.bf16.msra.mxu1 %v8404_v36  ;;  %4343 = vmatpush2.bf16.msra.mxu0 %v8660_v37 }
 0x1f8   :  { %4303 = vmatprep.subr.bf16.mxu1 %v8389_v60  ;;  %4344 = vmatprep.subr.bf16.mxu0 %v8645_v0 }
 0x1fb   :  { %4304 = vmatpush2.bf16.msra.mxu1 %v8388_v62  ;;  %4345 = vmatpush2.bf16.msra.mxu0 %v8644_v63 }
 0x1fc   :  { %4305 = vmatprep.subr.bf16.mxu1 %v8373_v4  ;;  %4346 = vmatprep.subr.bf16.mxu0 %v8629_v8 }
 0x1ff   :  { %4306 = vmatpush2.bf16.msra.mxu1 %v8372_v6  ;;  %4347 = vmatpush2.bf16.msra.mxu0 %v8628_v7 }
 0x200   :  { %4307 = vmatprep.subr.bf16.mxu1 %v8357_v12  ;;  %4348 = vmatprep.subr.bf16.mxu0 %v8613_v16 }
 0x203   :  { %4308 = vmatpush2.bf16.msra.mxu1 %v8356_v14  ;;  %4349 = vmatpush2.bf16.msra.mxu0 %v8612_v15 }
 0x204   :  { %4309 = vmatprep.subr.bf16.mxu1 %v8341_v25  ;;  %4350 = vmatprep.subr.bf16.mxu0 %v8597_v27 }
 0x207   :  { %4310 = vmatpush2.bf16.msra.mxu1 %v8340_v24  ;;  %4351 = vmatpush2.bf16.msra.mxu0 %v8596_v26 }
 0x208   :  { %4311 = vmatprep.subr.bf16.mxu1 %v8325_v31  ;;  %4352 = vmatprep.subr.bf16.mxu0 %v8581_v34 }
 0x20b   :  { %4312 = vmatpush2.bf16.msra.mxu1 %v8324_v33  ;;  %4353 = vmatpush2.bf16.msra.mxu0 %v8580_v35 }
 0x20c   :  { %4363 = vmatprep.subr.bf16.mxu1 %v8311_v45  ;;  %4404 = vmatprep.subr.bf16.mxu0 %v8567_v49 }
 0x28e   :  { %v917_v50 = vpop.f32.mrf.mxu1  ;;  %v958_v51 = vpop.f32.mrf.mxu0 }
 0x28f   :  { %v965_v52 = vrot.slane %v917_v50, 4  ;;  %v977_v53 = vrot.slane %v958_v51, 4 }
 0x290   :  { %v919_v54 = vpop.f32.mrf.mxu1  ;;  %v960_v55 = vpop.f32.mrf.mxu0 }
 0x291   :  { %v966_v56 = vadd.f32 %v965_v52, %v917_v50  ;;  %v978_v57 = vadd.f32 %v977_v53, %v958_v51  ;;  %v971_v58 = vrot.slane %v919_v54, 4  ;;  %v983_v59 = vrot.slane %v960_v55, 4 }
 0x292   :  { %v921_v36 = vpop.f32.mrf.mxu1  ;;  %v962_v37 = vpop.f32.mrf.mxu0 }
 0x293   :  { %v967_v38 = vrot.slane %v966_v56, 2  ;;  %v979_v39 = vrot.slane %v978_v57, 2  ;;  %v972_v41 = vadd.f32 %v971_v58, %v919_v54  ;;  %v984_v42 = vadd.f32 %v983_v59, %v960_v55 }
 0x294   :  { %v922_v60 = vpop.f32.mrf.mxu1  ;;  %v963_v61 = vpop.f32.mrf.mxu0 }
 0x295   :  { %v968_v62 = vadd.f32 %v967_v38, %v966_v56  ;;  %v980_v63 = vadd.f32 %v979_v39, %v978_v57  ;;  %v973_v0 = vrot.slane %v972_v41, 2  ;;  %v985_v1 = vrot.slane %v984_v42, 2 }
 0x297   :  { %v969_v2 = vrot.slane %v968_v62, 1  ;;  %v981_v3 = vrot.slane %v980_v63, 1  ;;  %v974_v4 = vadd.f32 %v973_v0, %v972_v41  ;;  %v986_v5 = vadd.f32 %v985_v1, %v984_v42  ;;  %v197_v1 = vld [vmem:[#allocation19] sm:$0xff] }
 0x299   :  { %v970_v6 = vadd.f32 %v969_v2, %v968_v62  ;;  %v982_v7 = vadd.f32 %v981_v3, %v980_v63  ;;  %v975_v8 = vrot.slane %v974_v4, 1  ;;  %v987_v9 = vrot.slane %v986_v5, 1  ;;  %v198_v2 = vld [vmem:[#allocation19 + $0x8] sm:$0xff] }
 0x29a   :  { %v10351_v3 = vsub.s32 4, %v10304_v19 }
 0x29b   :  { %v989_v10 = vmul.f32 0.125, %v970_v6  ;;  %v991_v11 = vmul.f32 0.125, %v982_v7  ;;  %v976_v12 = vadd.f32 %v975_v8, %v974_v4  ;;  %v988_v13 = vadd.f32 %v987_v9, %v986_v5 }
 0x29c   :  { %v1046_v4 = vrot.slane %v197_v1, %v10307_v20  ;;  %v10355_v5 = vsub.s32 5, %v10304_v19  ;;  %v1054_v6 = vrot.slane %v198_v2, %v10307_v20  ;;  %v1050_v7 = vrot.slane %v197_v1, %v10351_v3 }
 0x29d   :  { %v993_v14 = vsub.f32 %v917_v50, %v989_v10  ;;  %v10338_v15 = vsub.f32 %v958_v51, %v991_v11  ;;  %v990_v16 = vmul.f32 0.125, %v976_v12  ;;  %v992_v17 = vmul.f32 0.125, %v988_v13 }
 0x29e   :  { %v1086_v8 = vrot.slane %v197_v1, %v10310_v23  ;;  %v1058_v9 = vrot.slane %v198_v2, %v10351_v3  ;;  %v1066_v10 = vrot.slane %v1046_v4, %v10307_v20  ;;  %v1094_v11 = vrot.slane %v198_v2, %v10310_v23  ;;  %v1456_v4 = vld [vmem:[#allocation10 + $0xa48] sm:$0xff] }
 0x29f   :  { %v997_v18 = vmul.f32 %v993_v14, %v993_v14  ;;  %v999_v21 = vmul.f32 %v10338_v15, %v10338_v15  ;;  %v10342_v22 = vsub.f32 %v919_v54, %v990_v16  ;;  %v10344_v24 = vsub.f32 %v960_v55, %v992_v17 }
 0x2a0   :  { %v1090_v12 = vrot.slane %v197_v1, %v10355_v5  ;;  %v1074_v16 = vrot.slane %v1054_v6, %v10307_v20  ;;  %v1098_v17 = vrot.slane %v198_v2, %v10355_v5  ;;  %v1200_v1 = vld [vmem:[#allocation10 + $0x248] sm:$0xff] }
 0x2a1   :  { %v1001_v25 = vrot.slane %v997_v18, 4  ;;  %v1013_v26 = vrot.slane %v999_v21, 4  ;;  %v998_v27 = vmul.f32 %v10342_v22, %v10342_v22  ;;  %v1000_v28 = vmul.f32 %v10344_v24, %v10344_v24  ;;  %v1448_v2 = vld [vmem:[#allocation10 + $0xa08] sm:$0xff] }
 0x2a2   :  { %v8519_v46 = vcombine.high %v1448_v2, %v1456_v4  ;;  %v1432_v6 = vld [vmem:[#allocation10 + $0x988] sm:$0xff] }
 0x2a3   :  { %v1002_v29 = vadd.f32 %v1001_v25, %v997_v18  ;;  %v1014_v30 = vadd.f32 %v1013_v26, %v999_v21  ;;  %v1007_v31 = vrot.slane %v998_v27, 4  ;;  %v1019_v32 = vrot.slane %v1000_v28, 4 }
 0x2a4   :  { %v1070_v25 = vrot.slane %v1050_v7, %v10307_v20  ;;  %v1440_v7 = vld [vmem:[#allocation10 + $0x9c8] sm:$0xff] }
 0x2a5   :  { %v1003_v33 = vrot.slane %v1002_v29, 2  ;;  %v1015_v34 = vrot.slane %v1014_v30, 2  ;;  %v1008_v35 = vadd.f32 %v1007_v31, %v998_v27  ;;  %v1020_v45 = vadd.f32 %v1019_v32, %v1000_v28 }
 0x2a6   :  { %v1106_v27 = vrot.slane %v1086_v8, %v10310_v23  ;;  %v1114_v32 = vrot.slane %v1094_v11, %v10310_v23  ;;  %v8503_v11 = vcombine.high %v1432_v6, %v1440_v7 }
 0x2a7   :  { %v1004_v49 = vadd.f32 %v1003_v33, %v1002_v29  ;;  %v1016_v50 = vadd.f32 %v1015_v34, %v1014_v30  ;;  %v1009_v51 = vrot.slane %v1008_v35, 2  ;;  %v1021_v52 = vrot.slane %v1020_v45, 2 }
 0x2a8   :  { %v1078_v29 = vrot.slane %v1058_v9, %v10307_v20  ;;  %v1110_v34 = vrot.slane %v1090_v12, %v10310_v23  ;;  %v8518_v9 = vcombine.low %v1448_v2, %v1456_v4  ;;  %v1160_v12 = vld [vmem:[#allocation10 + $0x108] sm:$0xff] }
 0x2a9   :  { %v1005_v53 = vrot.slane %v1004_v49, 1  ;;  %v1017_v54 = vrot.slane %v1016_v50, 1  ;;  %v1010_v55 = vadd.f32 %v1009_v51, %v1008_v35  ;;  %v1022_v56 = vadd.f32 %v1021_v52, %v1020_v45  ;;  %v1344_v2 = vld [vmem:[#allocation10 + $0x6c8] sm:$0xff] }
 0x2aa   :  { %v1118_v45 = vrot.slane %v1098_v17, %v10310_v23  ;;  %v1424_v17 = vld [vmem:[#allocation10 + $0x948] sm:$0xff] }
 0x2ab   :  { %v1006_v57 = vadd.f32 %v1005_v53, %v1004_v49  ;;  %v1018_v58 = vadd.f32 %v1017_v54, %v1016_v50  ;;  %v1011_v59 = vrot.slane %v1010_v55, 1  ;;  %v1023_v36 = vrot.slane %v1022_v56, 1  ;;  %v1224_v54 = vld [vmem:[#allocation10 + $0x308] sm:$0xff] }
 0x2ac   :  { %v1592_v4 = vld [vmem:[#allocation10 + $0xe88] sm:$0xff] }
 0x2ad   :  { %v1025_v37 = vmul.f32 0.125, %v1006_v57  ;;  %v1027_v38 = vmul.f32 0.125, %v1018_v58  ;;  %v1012_v39 = vadd.f32 %v1011_v59, %v1010_v55  ;;  %v1024_v41 = vadd.f32 %v1023_v36, %v1022_v56  ;;  %v1232_v55 = vld [vmem:[#allocation10 + $0x348] sm:$0xff] }
 0x2ae   :  { %v1480_v57 = vld [vmem:[#allocation10 + $0xb08] sm:$0xff] }
 0x2af   :  { %v1029_v42 = vadd.f32 1e-05, %v1025_v37  ;;  %v1031_v60 = vadd.f32 1e-05, %v1027_v38  ;;  %v1026_v61 = vmul.f32 0.125, %v1012_v39  ;;  %v1028_v62 = vmul.f32 0.125, %v1024_v41 }
 0x2b0   :  { %v1488_v58 = vld [vmem:[#allocation10 + $0xb48] sm:$0xff] }
 0x2b1   :  { %9835 = vrsqrt.f32 %v1029_v42  ;;  %v1030_v63 = vadd.f32 1e-05, %v1026_v61  ;;  %v1032_v0 = vadd.f32 1e-05, %v1028_v62  ;;  %v1208_v37 = vld [vmem:[#allocation10 + $0x288] sm:$0xff]  ;;  %v8551_v39 = vcombine.high %v1480_v57, %v1488_v58 }
 0x2b2   :  { %9837 = vrsqrt.f32 %v1031_v60  ;;  %v1216_v38 = vld [vmem:[#allocation10 + $0x2c8] sm:$0xff]  ;;  %v8294_v60 = vcombine.low %v1224_v54, %v1232_v55  ;;  %v8550_v61 = vcombine.low %v1480_v57, %v1488_v58 }
 0x2b3   :  { %9839 = vrsqrt.f32 %v1030_v63  ;;  %v1464_v41 = vld [vmem:[#allocation10 + $0xa88] sm:$0xff]  ;;  %v8279_v62 = vcombine.high %v1208_v37, %v1216_v38  ;;  %v8278_v40 = vcombine.low %v1208_v37, %v1216_v38 }
 0x2b4   :  { %9841 = vrsqrt.f32 %v1032_v0  ;;  %v1472_v42 = vld [vmem:[#allocation10 + $0xac8] sm:$0xff] }
 0x2b5   :  { %v8535_v63 = vcombine.high %v1464_v41, %v1472_v42  ;;  %v1192_v0 = vld [vmem:[#allocation10 + $0x208] sm:$0xff]  ;;  %v8534_v43 = vcombine.low %v1464_v41, %v1472_v42 }
 0x2b6   :  { %v8263_v44 = vcombine.high %v1192_v0, %v1200_v1  ;;  %v8262_v8 = vcombine.low %v1192_v0, %v1200_v1  ;;  %v1632_v57 = vld [vmem:[#allocation10 + $0xfc8] sm:$0xff] }
 0x2b7   :  { %v1360_v41 = vld [vmem:[#allocation10 + $0x748] sm:$0xff] }
 0x2b8   :  { %v1608_v42 = vld [vmem:[#allocation10 + $0xf08] sm:$0xff] }
 0x2b9   :  { %v1336_v1 = vld [vmem:[#allocation10 + $0x688] sm:$0xff] }
 0x2be   :  { %v9836_v13 = vpop.eup %9835 }
 0x2bf   :  { %v9838_v18 = vpop.eup %9837  ;;  %v1037_v21 = vmul.f32 %v9836_v13, %v993_v14  ;;  %v1168_v13 = vld [vmem:[#allocation10 + $0x148] sm:$0xff] }
 0x2c0   :  { %v9840_v26 = vpop.eup %9839  ;;  %v1039_v28 = vmul.f32 %v9838_v18, %v10338_v15 }
 0x2c1   :  { %v9842_v30 = vpop.eup %9841  ;;  %v1079_v31 = vmul.f32 %v1066_v10, %v1037_v21  ;;  %v1038_v33 = vmul.f32 %v9840_v26, %v10342_v22  ;;  %v8502_v21 = vcombine.low %v1432_v6, %v1440_v7  ;;  %v1328_v6 = vld [vmem:[#allocation10 + $0x648] sm:$0xff] }
 0x2c2   :  { %v1081_v35 = vmul.f32 %v1074_v16, %v1039_v28  ;;  %v1040_v14 = vmul.f32 %v9842_v30, %v10344_v24  ;;  %v8295_v24 = vcombine.high %v1224_v54, %v1232_v55  ;;  %v1416_v16 = vld [vmem:[#allocation10 + $0x908] sm:$0xff] }
 0x2c3   :  { %v1080_v49 = vmul.f32 %v1070_v25, %v1038_v33  ;;  %v1119_v50 = vadd.f32 %v1106_v27, %v1079_v31  ;;  %v8231_v25 = vcombine.high %v1160_v12, %v1168_v13  ;;  %v8487_v26 = vcombine.high %v1416_v16, %v1424_v17  ;;  %v1144_v27 = vld [vmem:[#allocation10 + $0x88] sm:$0xff] }
 0x2c4   :  { %v1082_v51 = vmul.f32 %v1078_v29, %v1040_v14  ;;  %v1121_v52 = vadd.f32 %v1114_v32, %v1081_v35  ;;  %v1152_v28 = vld [vmem:[#allocation10 + $0xc8] sm:$0xff]  ;;  %v8230_v31 = vcombine.low %v1160_v12, %v1168_v13  ;;  %v8486_v32 = vcombine.low %v1416_v16, %v1424_v17 }
 0x2c5   :  { %v1120_v15 = vadd.f32 %v1110_v34, %v1080_v49  ;;  %v10377_v22 = vpack.c.bf16 %v1119_v50, %v1119_v50  ;;  %v1400_v29 = vld [vmem:[#allocation10 + $0x888] sm:$0xff]  ;;  %v8215_v33 = vcombine.high %v1144_v27, %v1152_v28  ;;  %v8214_v50 = vcombine.low %v1144_v27, %v1152_v28 }
 0x2c6   :  { %v1122_v53 = vadd.f32 %v1118_v45, %v1082_v51  ;;  %v10381_v36 = vpack.c.bf16 %v1121_v52, %v1121_v52  ;;  %v1408_v30 = vld [vmem:[#allocation10 + $0x8c8] sm:$0xff] }
 0x2c7   :  { %v10375_v56 = vpack.c.bf16 %v1120_v15, %v1120_v15  ;;  %v8471_v34 = vcombine.high %v1400_v29, %v1408_v30  ;;  %v1128_v35 = vld [vmem:[#allocation10 + $0x8] sm:$0xff]  ;;  %v8470_v51 = vcombine.low %v1400_v29, %v1408_v30 }
 0x2c8   :  { %v10379_v59 = vpack.c.bf16 %v1122_v53, %v1122_v53  ;;  %v1136_v14 = vld [vmem:[#allocation10 + $0x48] sm:$0xff] }
 0x2c9   :  { %4313 = vmatprep.mubr.bf16.mxu1 %v10375_v56  ;;  %v1384_v45 = vld [vmem:[#allocation10 + $0x808] sm:$0xff]  ;;  %v8199_v52 = vcombine.high %v1128_v35, %v1136_v14  ;;  %v8198_v58 = vcombine.low %v1128_v35, %v1136_v14 }
 0x2ca   :  { %4354 = vmatprep.mubr.bf16.mxu0 %v10379_v59  ;;  %4314 = vmatmul.mubr.bf16.vlgmr.msra.gmra.mxu1 %v10377_v22  ;;  %v1392_v49 = vld [vmem:[#allocation10 + $0x848] sm:$0xff] }
 0x2cb   :  { %4355 = vmatmul.mubr.bf16.vlgmr.msra.gmra.mxu0 %v10381_v36  ;;  %4364 = vmatpush1.bf16.msra.mxu1 %v8310_v47  ;;  %v1176_v47 = vld [vmem:[#allocation10 + $0x188] sm:$0xff]  ;;  %v8455_v15 = vcombine.high %v1384_v45, %v1392_v49 }
 0x2cc   :  { %4405 = vmatpush1.bf16.msra.mxu0 %v8566_v48  ;;  %4395 = vmatprep.mubr.bf16.mxu1 %v10375_v56  ;;  %v1184_v48 = vld [vmem:[#allocation10 + $0x1c8] sm:$0xff] }
 0x2cd   :  { %4436 = vmatprep.mubr.bf16.mxu0 %v10379_v59  ;;  %4365 = vmatprep.subr.bf16.mxu1 %v8295_v24  ;;  %v8247_v10 = vcombine.high %v1176_v47, %v1184_v48  ;;  %v8246_v18 = vcombine.low %v1176_v47, %v1184_v48  ;;  %v1368_v53 = vld [vmem:[#allocation10 + $0x788] sm:$0xff]  ;;  %v8454_v24 = vcombine.low %v1384_v45, %v1392_v49 }
 0x2ce   :  { %4406 = vmatprep.subr.bf16.mxu0 %v8551_v39  ;;  %v1376_v54 = vld [vmem:[#allocation10 + $0x7c8] sm:$0xff] }
 0x2cf   :  { %4366 = vmatpush1.bf16.msra.mxu1 %v8294_v60  ;;  %v1624_v55 = vld [vmem:[#allocation10 + $0xf88] sm:$0xff]  ;;  %v8439_v37 = vcombine.high %v1368_v53, %v1376_v54 }
 0x2d0   :  { %4407 = vmatpush1.bf16.msra.mxu0 %v8550_v61  ;;  %4367 = vmatprep.subr.bf16.mxu1 %v8279_v62  ;;  %v8695_v38 = vcombine.high %v1624_v55, %v1632_v57  ;;  %v1352_v39 = vld [vmem:[#allocation10 + $0x708] sm:$0xff]  ;;  %v8438_v61 = vcombine.low %v1368_v53, %v1376_v54  ;;  %v8694_v62 = vcombine.low %v1624_v55, %v1632_v57 }
 0x2d1   :  { %4408 = vmatprep.subr.bf16.mxu0 %v8535_v63  ;;  %v1616_v60 = vld [vmem:[#allocation10 + $0xf48] sm:$0xff]  ;;  %v8423_v63 = vcombine.high %v1352_v39, %v1360_v41 }
 0x2d2   :  { %v8679_v0 = vcombine.high %v1608_v42, %v1616_v60  ;;  %v1320_v48 = vld [vmem:[#allocation10 + $0x608] sm:$0xff] }
 0x2d3   :  { %4368 = vmatpush1.bf16.msra.mxu1 %v8278_v40  ;;  %v1600_v40 = vld [vmem:[#allocation10 + $0xec8] sm:$0xff] }
 0x2d4   :  { %4409 = vmatpush1.bf16.msra.mxu0 %v8534_v43  ;;  %4369 = vmatprep.subr.bf16.mxu1 %v8263_v44  ;;  %v8422_v43 = vcombine.low %v1352_v39, %v1360_v41  ;;  %v8678_v44 = vcombine.low %v1608_v42, %v1616_v60  ;;  %v8663_v47 = vcombine.high %v1592_v4, %v1600_v40  ;;  %v1576_v7 = vld [vmem:[#allocation10 + $0xe08] sm:$0xff]  ;;  %v1241_v41 = vld [vmem:[#allocation10 + $0x390] sm:$0xff] }
 0x2d5   :  { %4410 = vmatprep.subr.bf16.mxu0 %v8519_v46  ;;  %v8407_v46 = vcombine.high %v1336_v1, %v1344_v2  ;;  %v1304_v13 = vld [vmem:[#allocation10 + $0x588] sm:$0xff]  ;;  %v1249_v42 = vld [vmem:[#allocation10 + $0x3d0] sm:$0xff] }
 0x2d6   :  { %v1312_v16 = vld [vmem:[#allocation10 + $0x5c8] sm:$0xff]  ;;  %v1497_v60 = vld [vmem:[#allocation10 + $0xb90] sm:$0xff] }
 0x2d7   :  { %4370 = vmatpush1.bf16.msra.mxu1 %v8262_v8  ;;  %v1584_v8 = vld [vmem:[#allocation10 + $0xe48] sm:$0xff] }
 0x2d8   :  { %4411 = vmatpush1.bf16.msra.mxu0 %v8518_v9  ;;  %4371 = vmatprep.subr.bf16.mxu1 %v8247_v10  ;;  %v8406_v9 = vcombine.low %v1336_v1, %v1344_v2  ;;  %v8662_v10 = vcombine.low %v1592_v4, %v1600_v40  ;;  %v8647_v12 = vcombine.high %v1576_v7, %v1584_v8  ;;  %v1560_v17 = vld [vmem:[#allocation10 + $0xd88] sm:$0xff]  ;;  %v1225_v2 = vld [vmem:[#allocation10 + $0x310] sm:$0xff] }
 0x2d9   :  { %4412 = vmatprep.subr.bf16.mxu0 %v8503_v11  ;;  %v8391_v11 = vcombine.high %v1320_v48, %v1328_v6  ;;  %v1288_v28 = vld [vmem:[#allocation10 + $0x508] sm:$0xff]  ;;  %v1233_v4 = vld [vmem:[#allocation10 + $0x350] sm:$0xff]  ;;  %v8312_v40 = vcombine.low %v1241_v41, %v1249_v42 }
 0x2da   :  { %v1296_v29 = vld [vmem:[#allocation10 + $0x548] sm:$0xff] }
 0x2db   :  { %4372 = vmatpush1.bf16.msra.mxu1 %v8246_v18  ;;  %v1568_v18 = vld [vmem:[#allocation10 + $0xdc8] sm:$0xff] }
 0x2dc   :  { %4413 = vmatpush1.bf16.msra.mxu0 %v8502_v21  ;;  %4373 = vmatprep.subr.bf16.mxu1 %v8231_v25  ;;  %v8390_v21 = vcombine.low %v1320_v48, %v1328_v6  ;;  %v8646_v25 = vcombine.low %v1576_v7, %v1584_v8  ;;  %v8631_v27 = vcombine.high %v1560_v17, %v1568_v18  ;;  %v1544_v30 = vld [vmem:[#allocation10 + $0xd08] sm:$0xff]  ;;  %v1209_v48 = vld [vmem:[#allocation10 + $0x290] sm:$0xff] }
 0x2dd   :  { %4414 = vmatprep.subr.bf16.mxu0 %v8487_v26  ;;  %v8375_v26 = vcombine.high %v1304_v13, %v1312_v16  ;;  %v1272_v14 = vld [vmem:[#allocation10 + $0x488] sm:$0xff]  ;;  %v1217_v6 = vld [vmem:[#allocation10 + $0x2d0] sm:$0xff] }
 0x2de   :  { %v1280_v45 = vld [vmem:[#allocation10 + $0x4c8] sm:$0xff]  ;;  %v1465_v8 = vld [vmem:[#allocation10 + $0xa90] sm:$0xff] }
 0x2df   :  { %4374 = vmatpush1.bf16.msra.mxu1 %v8230_v31  ;;  %v1552_v31 = vld [vmem:[#allocation10 + $0xd48] sm:$0xff] }
 0x2e0   :  { %4415 = vmatpush1.bf16.msra.mxu0 %v8486_v32  ;;  %4375 = vmatprep.subr.bf16.mxu1 %v8215_v33  ;;  %v8374_v32 = vcombine.low %v1304_v13, %v1312_v16  ;;  %v8630_v33 = vcombine.low %v1560_v17, %v1568_v18  ;;  %v8615_v35 = vcombine.high %v1544_v30, %v1552_v31  ;;  %v1528_v49 = vld [vmem:[#allocation10 + $0xc88] sm:$0xff]  ;;  %v1193_v16 = vld [vmem:[#allocation10 + $0x210] sm:$0xff] }
 0x2e1   :  { %4416 = vmatprep.subr.bf16.mxu0 %v8471_v34  ;;  %v8359_v34 = vcombine.high %v1288_v28, %v1296_v29  ;;  %v1256_v54 = vld [vmem:[#allocation10 + $0x408] sm:$0xff]  ;;  %v1201_v17 = vld [vmem:[#allocation10 + $0x250] sm:$0xff] }
 0x2e2   :  { %v1264_v55 = vld [vmem:[#allocation10 + $0x448] sm:$0xff]  ;;  %v1449_v18 = vld [vmem:[#allocation10 + $0xa10] sm:$0xff] }
 0x2e3   :  { %4376 = vmatpush1.bf16.msra.mxu1 %v8214_v50  ;;  %v1536_v50 = vld [vmem:[#allocation10 + $0xcc8] sm:$0xff] }
 0x2e4   :  { %4417 = vmatpush1.bf16.msra.mxu0 %v8470_v51  ;;  %4377 = vmatprep.subr.bf16.mxu1 %v8199_v52  ;;  %v8358_v51 = vcombine.low %v1288_v28, %v1296_v29  ;;  %v8614_v52 = vcombine.low %v1544_v30, %v1552_v31  ;;  %v8599_v53 = vcombine.high %v1528_v49, %v1536_v50  ;;  %v1512_v57 = vld [vmem:[#allocation10 + $0xc08] sm:$0xff]  ;;  %v1177_v29 = vld [vmem:[#allocation10 + $0x190] sm:$0xff] }
 0x2e5   :  { %4418 = vmatprep.subr.bf16.mxu0 %v8455_v15  ;;  %v8343_v15 = vcombine.high %v1272_v14, %v1280_v45  ;;  %v1185_v30 = vld [vmem:[#allocation10 + $0x1d0] sm:$0xff] }
 0x2e6   :  { %v1433_v31 = vld [vmem:[#allocation10 + $0x990] sm:$0xff] }
 0x2e7   :  { %4378 = vmatpush1.bf16.msra.mxu1 %v8198_v58  ;;  %v1520_v58 = vld [vmem:[#allocation10 + $0xc48] sm:$0xff] }
 0x2e8   :  { %4419 = vmatpush1.bf16.msra.mxu0 %v8454_v24  ;;  %4379 = vmatprep.subr.bf16.mxu1 %v8439_v37  ;;  %v8342_v24 = vcombine.low %v1272_v14, %v1280_v45  ;;  %v8598_v37 = vcombine.low %v1528_v49, %v1536_v50  ;;  %v8583_v39 = vcombine.high %v1512_v57, %v1520_v58  ;;  %v1161_v45 = vld [vmem:[#allocation10 + $0x110] sm:$0xff] }
 0x2e9   :  { %4420 = vmatprep.subr.bf16.mxu0 %v8695_v38  ;;  %v8327_v38 = vcombine.high %v1256_v54, %v1264_v55  ;;  %v1169_v49 = vld [vmem:[#allocation10 + $0x150] sm:$0xff] }
 0x2ea   :  { %v1417_v50 = vld [vmem:[#allocation10 + $0x910] sm:$0xff] }
 0x2eb   :  { %4380 = vmatpush2.bf16.msra.mxu1 %v8438_v61  ;;  %v1505_v61 = vld [vmem:[#allocation10 + $0xbd0] sm:$0xff] }
 0x2ec   :  { %4421 = vmatpush2.bf16.msra.mxu0 %v8694_v62  ;;  %4381 = vmatprep.subr.bf16.mxu1 %v8423_v63  ;;  %v8326_v62 = vcombine.low %v1256_v54, %v1264_v55  ;;  %v8582_v63 = vcombine.low %v1512_v57, %v1520_v58  ;;  %v8569_v1 = vcombine.high %v1497_v60, %v1505_v61  ;;  %v1145_v55 = vld [vmem:[#allocation10 + $0x90] sm:$0xff] }
 0x2ed   :  { %4422 = vmatprep.subr.bf16.mxu0 %v8679_v0  ;;  %v8313_v0 = vcombine.high %v1241_v41, %v1249_v42  ;;  %v1153_v57 = vld [vmem:[#allocation10 + $0xd0] sm:$0xff] }
 0x2ee   :  { %v1401_v58 = vld [vmem:[#allocation10 + $0x890] sm:$0xff] }
 0x2ef   :  { %4382 = vmatpush2.bf16.msra.mxu1 %v8422_v43  ;;  %v1481_v43 = vld [vmem:[#allocation10 + $0xb10] sm:$0xff] }
 0x2f0   :  { %4423 = vmatpush2.bf16.msra.mxu0 %v8678_v44  ;;  %4383 = vmatprep.subr.bf16.mxu1 %v8407_v46  ;;  %v1489_v44 = vld [vmem:[#allocation10 + $0xb50] sm:$0xff]  ;;  %v8568_v46 = vcombine.low %v1497_v60, %v1505_v61 }
 0x2f1   :  { %4424 = vmatprep.subr.bf16.mxu0 %v8663_v47  ;;  %v8297_v47 = vcombine.high %v1225_v2, %v1233_v4  ;;  %v8553_v7 = vcombine.high %v1481_v43, %v1489_v44  ;;  %v1129_v42 = vld [vmem:[#allocation10 + $0x10] sm:$0xff] }
 0x2f2   :  { %v1137_v60 = vld [vmem:[#allocation10 + $0x50] sm:$0xff] }
 0x2f3   :  { %4384 = vmatpush2.bf16.msra.mxu1 %v8406_v9  ;;  %v1473_v9 = vld [vmem:[#allocation10 + $0xad0] sm:$0xff] }
 0x2f4   :  { %4425 = vmatpush2.bf16.msra.mxu0 %v8662_v10  ;;  %4385 = vmatprep.subr.bf16.mxu1 %v8391_v11  ;;  %v8296_v10 = vcombine.low %v1225_v2, %v1233_v4  ;;  %v8552_v11 = vcombine.low %v1481_v43, %v1489_v44  ;;  %v8537_v13 = vcombine.high %v1465_v8, %v1473_v9  ;;  %v1385_v61 = vld [vmem:[#allocation10 + $0x810] sm:$0xff] }
 0x2f5   :  { %4426 = vmatprep.subr.bf16.mxu0 %v8647_v12  ;;  %v8281_v12 = vcombine.high %v1209_v48, %v1217_v6  ;;  %v1369_v4 = vld [vmem:[#allocation10 + $0x790] sm:$0xff] }
 0x2f6   :  { %v1625_v43 = vld [vmem:[#allocation10 + $0xf90] sm:$0xff] }
 0x2f7   :  { %4386 = vmatpush2.bf16.msra.mxu1 %v8390_v21  ;;  %v1457_v21 = vld [vmem:[#allocation10 + $0xa50] sm:$0xff] }
 0x2f8   :  { %4427 = vmatpush2.bf16.msra.mxu0 %v8646_v25  ;;  %4387 = vmatprep.subr.bf16.mxu1 %v8375_v26  ;;  %v8280_v25 = vcombine.low %v1209_v48, %v1217_v6  ;;  %v8536_v26 = vcombine.low %v1465_v8, %v1473_v9  ;;  %v8521_v28 = vcombine.high %v1449_v18, %v1457_v21  ;;  %v1633_v44 = vld [vmem:[#allocation10 + $0xfd0] sm:$0xff] }
 0x2f9   :  { %4428 = vmatprep.subr.bf16.mxu0 %v8631_v27  ;;  %v8265_v27 = vcombine.high %v1193_v16, %v1201_v17  ;;  %v8697_v6 = vcombine.high %v1625_v43, %v1633_v44  ;;  %v1361_v8 = vld [vmem:[#allocation10 + $0x750] sm:$0xff] }
 0x2fa   :  { %v1609_v9 = vld [vmem:[#allocation10 + $0xf10] sm:$0xff] }
 0x2fb   :  { %4388 = vmatpush2.bf16.msra.mxu1 %v8374_v32  ;;  %v1441_v32 = vld [vmem:[#allocation10 + $0x9d0] sm:$0xff] }
 0x2fc   :  { %4429 = vmatpush2.bf16.msra.mxu0 %v8630_v33  ;;  %4389 = vmatprep.subr.bf16.mxu1 %v8359_v34  ;;  %v8264_v33 = vcombine.low %v1193_v16, %v1201_v17  ;;  %v8520_v34 = vcombine.low %v1449_v18, %v1457_v21  ;;  %v8505_v14 = vcombine.high %v1433_v31, %v1441_v32  ;;  %v1337_v17 = vld [vmem:[#allocation10 + $0x690] sm:$0xff] }
 0x2fd   :  { %4430 = vmatprep.subr.bf16.mxu0 %v8615_v35  ;;  %v8249_v35 = vcombine.high %v1177_v29, %v1185_v30  ;;  %v1345_v18 = vld [vmem:[#allocation10 + $0x6d0] sm:$0xff] }
 0x2fe   :  { %v1593_v21 = vld [vmem:[#allocation10 + $0xe90] sm:$0xff] }
 0x2ff   :  { %4390 = vmatpush2.bf16.msra.mxu1 %v8358_v51  ;;  %v1425_v51 = vld [vmem:[#allocation10 + $0x950] sm:$0xff] }
 0x300   :  { %4431 = vmatpush2.bf16.msra.mxu0 %v8614_v52  ;;  %4391 = vmatprep.subr.bf16.mxu1 %v8343_v15  ;;  %v8248_v52 = vcombine.low %v1177_v29, %v1185_v30  ;;  %v8504_v15 = vcombine.low %v1433_v31, %v1441_v32  ;;  %v8489_v54 = vcombine.high %v1417_v50, %v1425_v51  ;;  %v1321_v30 = vld [vmem:[#allocation10 + $0x610] sm:$0xff] }
 0x301   :  { %4432 = vmatprep.subr.bf16.mxu0 %v8599_v53  ;;  %v8233_v53 = vcombine.high %v1161_v45, %v1169_v49  ;;  %v1329_v31 = vld [vmem:[#allocation10 + $0x650] sm:$0xff] }
 0x302   :  { %v1577_v32 = vld [vmem:[#allocation10 + $0xe10] sm:$0xff] }
 0x303   :  { %4392 = vmatpush2.bf16.msra.mxu1 %v8342_v24  ;;  %v1409_v24 = vld [vmem:[#allocation10 + $0x8d0] sm:$0xff] }
 0x304   :  { %4433 = vmatpush2.bf16.msra.mxu0 %v8598_v37  ;;  %4393 = vmatprep.subr.bf16.mxu1 %v8327_v38  ;;  %v8232_v37 = vcombine.low %v1161_v45, %v1169_v49  ;;  %v8488_v38 = vcombine.low %v1417_v50, %v1425_v51  ;;  %v8473_v41 = vcombine.high %v1401_v58, %v1409_v24  ;;  %v1305_v49 = vld [vmem:[#allocation10 + $0x590] sm:$0xff] }
 0x305   :  { %4434 = vmatprep.subr.bf16.mxu0 %v8583_v39  ;;  %v8217_v39 = vcombine.high %v1145_v55, %v1153_v57  ;;  %v1313_v50 = vld [vmem:[#allocation10 + $0x5d0] sm:$0xff] }
 0x306   :  { %v1561_v51 = vld [vmem:[#allocation10 + $0xd90] sm:$0xff] }
 0x307   :  { %4394 = vmatpush2.bf16.msra.mxu1 %v8326_v62  ;;  %v1393_v62 = vld [vmem:[#allocation10 + $0x850] sm:$0xff] }
 0x308   :  { %4435 = vmatpush2.bf16.msra.mxu0 %v8582_v63  ;;  %4445 = vmatprep.subr.bf16.mxu1 %v8313_v0  ;;  %v8216_v63 = vcombine.low %v1145_v55, %v1153_v57  ;;  %v8472_v0 = vcombine.low %v1401_v58, %v1409_v24  ;;  %v8457_v2 = vcombine.high %v1385_v61, %v1393_v62  ;;  %v1289_v57 = vld [vmem:[#allocation10 + $0x510] sm:$0xff] }
 0x309   :  { %4486 = vmatprep.subr.bf16.mxu0 %v8569_v1  ;;  %v8201_v1 = vcombine.high %v1129_v42, %v1137_v60  ;;  %v1297_v58 = vld [vmem:[#allocation10 + $0x550] sm:$0xff] }
 0x30a   :  { %4396 = vmatmul.mubr.bf16.vlgmr.msra.gmra.mxu1 %v10377_v22  ;;  %v1545_v24 = vld [vmem:[#allocation10 + $0xd10] sm:$0xff] }
 0x30b   :  { %4437 = vmatmul.mubr.bf16.vlgmr.msra.gmra.mxu0 %v10381_v36  ;;  %4446 = vmatpush1.bf16.msra.mxu1 %v8312_v40  ;;  %v1377_v40 = vld [vmem:[#allocation10 + $0x7d0] sm:$0xff] }
 0x30c   :  { %4477 = vmatprep.mubr.bf16.mxu1 %v10375_v56  ;;  %4487 = vmatpush1.bf16.msra.mxu0 %v8568_v46  ;;  %v8200_v46 = vcombine.low %v1129_v42, %v1137_v60  ;;  %v8441_v48 = vcombine.high %v1369_v4, %v1377_v40  ;;  %v1273_v60 = vld [vmem:[#allocation10 + $0x490] sm:$0xff] }
 0x30d   :  { %4518 = vmatprep.mubr.bf16.mxu0 %v10379_v59  ;;  %4447 = vmatprep.subr.bf16.mxu1 %v8297_v47  ;;  %v8456_v47 = vcombine.low %v1385_v61, %v1393_v62  ;;  %v1281_v61 = vld [vmem:[#allocation10 + $0x4d0] sm:$0xff] }
 0x30e   :  { %4488 = vmatprep.subr.bf16.mxu0 %v8553_v7  ;;  %v1353_v7 = vld [vmem:[#allocation10 + $0x710] sm:$0xff] }
 0x30f   :  { %4448 = vmatpush1.bf16.msra.mxu1 %v8296_v10  ;;  %v1617_v10 = vld [vmem:[#allocation10 + $0xf50] sm:$0xff] }
 0x310   :  { %4489 = vmatpush1.bf16.msra.mxu0 %v8552_v11  ;;  %4449 = vmatprep.subr.bf16.mxu1 %v8281_v12  ;;  %v8440_v11 = vcombine.low %v1369_v4, %v1377_v40  ;;  %v8696_v12 = vcombine.low %v1625_v43, %v1633_v44  ;;  %v8681_v16 = vcombine.high %v1609_v9, %v1617_v10  ;;  %v1529_v62 = vld [vmem:[#allocation10 + $0xc90] sm:$0xff] }
 0x311   :  { %4490 = vmatprep.subr.bf16.mxu0 %v8537_v13  ;;  %v8425_v13 = vcombine.high %v1353_v7, %v1361_v8  ;;  %v1257_v40 = vld [vmem:[#allocation10 + $0x410] sm:$0xff] }
 0x312   :  { %v1265_v43 = vld [vmem:[#allocation10 + $0x450] sm:$0xff] }
 0x313   :  { %4450 = vmatpush1.bf16.msra.mxu1 %v8280_v25  ;;  %v1601_v25 = vld [vmem:[#allocation10 + $0xed0] sm:$0xff] }
 0x314   :  { %4491 = vmatpush1.bf16.msra.mxu0 %v8536_v26  ;;  %4451 = vmatprep.subr.bf16.mxu1 %v8265_v27  ;;  %v8424_v26 = vcombine.low %v1353_v7, %v1361_v8  ;;  %v8680_v27 = vcombine.low %v1609_v9, %v1617_v10  ;;  %v8665_v29 = vcombine.high %v1593_v21, %v1601_v25  ;;  %v1513_v44 = vld [vmem:[#allocation10 + $0xc10] sm:$0xff]  ;;  %v1242_v8 = vld [vmem:[#allocation10 + $0x398] sm:$0xff] }
 0x315   :  { %4492 = vmatprep.subr.bf16.mxu0 %v8521_v28  ;;  %v8409_v28 = vcombine.high %v1337_v17, %v1345_v18  ;;  %v1250_v9 = vld [vmem:[#allocation10 + $0x3d8] sm:$0xff] }
 0x316   :  { %v1498_v10 = vld [vmem:[#allocation10 + $0xb98] sm:$0xff] }
 0x317   :  { %4452 = vmatpush1.bf16.msra.mxu1 %v8264_v33  ;;  %v1585_v33 = vld [vmem:[#allocation10 + $0xe50] sm:$0xff] }
 0x318   :  { %4493 = vmatpush1.bf16.msra.mxu0 %v8520_v34  ;;  %4453 = vmatprep.subr.bf16.mxu1 %v8249_v35  ;;  %v8408_v34 = vcombine.low %v1337_v17, %v1345_v18  ;;  %v8664_v35 = vcombine.low %v1593_v21, %v1601_v25  ;;  %v8649_v45 = vcombine.high %v1577_v32, %v1585_v33  ;;  %v1226_v18 = vld [vmem:[#allocation10 + $0x318] sm:$0xff] }
 0x319   :  { %4494 = vmatprep.subr.bf16.mxu0 %v8505_v14  ;;  %v8393_v14 = vcombine.high %v1321_v30, %v1329_v31  ;;  %v1234_v21 = vld [vmem:[#allocation10 + $0x358] sm:$0xff]  ;;  %v8314_v25 = vcombine.low %v1242_v8, %v1250_v9 }
 0x31b   :  { %4454 = vmatpush1.bf16.msra.mxu1 %v8248_v52  ;;  %v1569_v52 = vld [vmem:[#allocation10 + $0xdd0] sm:$0xff] }
 0x31c   :  { %4495 = vmatpush1.bf16.msra.mxu0 %v8504_v15  ;;  %4455 = vmatprep.subr.bf16.mxu1 %v8233_v53  ;;  %v8392_v15 = vcombine.low %v1321_v30, %v1329_v31  ;;  %v8648_v53 = vcombine.low %v1577_v32, %v1585_v33  ;;  %v8633_v55 = vcombine.high %v1561_v51, %v1569_v52  ;;  %v1210_v30 = vld [vmem:[#allocation10 + $0x298] sm:$0xff] }
 0x31d   :  { %4496 = vmatprep.subr.bf16.mxu0 %v8489_v54  ;;  %v8377_v54 = vcombine.high %v1305_v49, %v1313_v50  ;;  %v1218_v31 = vld [vmem:[#allocation10 + $0x2d8] sm:$0xff] }
 0x31e   :  { %v1466_v33 = vld [vmem:[#allocation10 + $0xa98] sm:$0xff] }
 0x31f   :  { %4456 = vmatpush1.bf16.msra.mxu1 %v8232_v37  ;;  %v1553_v37 = vld [vmem:[#allocation10 + $0xd50] sm:$0xff] }
 0x320   :  { %4497 = vmatpush1.bf16.msra.mxu0 %v8488_v38  ;;  %4457 = vmatprep.subr.bf16.mxu1 %v8217_v39  ;;  %v8376_v38 = vcombine.low %v1305_v49, %v1313_v50  ;;  %v8632_v39 = vcombine.low %v1561_v51, %v1569_v52  ;;  %v8617_v42 = vcombine.high %v1545_v24, %v1553_v37  ;;  %v1194_v50 = vld [vmem:[#allocation10 + $0x218] sm:$0xff] }
 0x321   :  { %4498 = vmatprep.subr.bf16.mxu0 %v8473_v41  ;;  %v8361_v41 = vcombine.high %v1289_v57, %v1297_v58  ;;  %v1202_v51 = vld [vmem:[#allocation10 + $0x258] sm:$0xff] }
 0x322   :  { %v1450_v52 = vld [vmem:[#allocation10 + $0xa18] sm:$0xff] }
 0x323   :  { %4458 = vmatpush1.bf16.msra.mxu1 %v8216_v63  ;;  %v1537_v63 = vld [vmem:[#allocation10 + $0xcd0] sm:$0xff] }
 0x324   :  { %4499 = vmatpush1.bf16.msra.mxu0 %v8472_v0  ;;  %4459 = vmatprep.subr.bf16.mxu1 %v8201_v1  ;;  %v8360_v0 = vcombine.low %v1289_v57, %v1297_v58  ;;  %v8616_v1 = vcombine.low %v1545_v24, %v1553_v37  ;;  %v8601_v4 = vcombine.high %v1529_v62, %v1537_v63  ;;  %v1178_v58 = vld [vmem:[#allocation10 + $0x198] sm:$0xff] }
 0x325   :  { %4500 = vmatprep.subr.bf16.mxu0 %v8457_v2  ;;  %v8345_v2 = vcombine.high %v1273_v60, %v1281_v61  ;;  %v1186_v24 = vld [vmem:[#allocation10 + $0x1d8] sm:$0xff] }
 0x326   :  { %v1434_v37 = vld [vmem:[#allocation10 + $0x998] sm:$0xff] }
 0x327   :  { %4460 = vmatpush1.bf16.msra.mxu1 %v8200_v46  ;;  %v1521_v46 = vld [vmem:[#allocation10 + $0xc50] sm:$0xff] }
 0x328   :  { %4501 = vmatpush1.bf16.msra.mxu0 %v8456_v47  ;;  %4461 = vmatprep.subr.bf16.mxu1 %v8441_v48  ;;  %v8344_v47 = vcombine.low %v1273_v60, %v1281_v61  ;;  %v8600_v48 = vcombine.low %v1529_v62, %v1537_v63  ;;  %v8585_v7 = vcombine.high %v1513_v44, %v1521_v46  ;;  %v1162_v61 = vld [vmem:[#allocation10 + $0x118] sm:$0xff] }
 0x329   :  { %4502 = vmatprep.subr.bf16.mxu0 %v8697_v6  ;;  %v8329_v6 = vcombine.high %v1257_v40, %v1265_v43  ;;  %v1170_v62 = vld [vmem:[#allocation10 + $0x158] sm:$0xff] }
 0x32a   :  { %v1418_v63 = vld [vmem:[#allocation10 + $0x918] sm:$0xff] }
 0x32b   :  { %4462 = vmatpush2.bf16.msra.mxu1 %v8440_v11  ;;  %v1506_v11 = vld [vmem:[#allocation10 + $0xbd8] sm:$0xff] }
 0x32c   :  { %4503 = vmatpush2.bf16.msra.mxu0 %v8696_v12  ;;  %4463 = vmatprep.subr.bf16.mxu1 %v8425_v13  ;;  %v8328_v12 = vcombine.low %v1257_v40, %v1265_v43  ;;  %v8584_v13 = vcombine.low %v1513_v44, %v1521_v46  ;;  %v8571_v17 = vcombine.high %v1498_v10, %v1506_v11  ;;  %v1146_v43 = vld [vmem:[#allocation10 + $0x98] sm:$0xff] }
 0x32d   :  { %4504 = vmatprep.subr.bf16.mxu0 %v8681_v16  ;;  %v8315_v16 = vcombine.high %v1242_v8, %v1250_v9  ;;  %v1154_v44 = vld [vmem:[#allocation10 + $0xd8] sm:$0xff] }
 0x32e   :  { %v1402_v46 = vld [vmem:[#allocation10 + $0x898] sm:$0xff] }
 0x32f   :  { %4464 = vmatpush2.bf16.msra.mxu1 %v8424_v26  ;;  %v1482_v26 = vld [vmem:[#allocation10 + $0xb18] sm:$0xff] }
 0x330   :  { %4505 = vmatpush2.bf16.msra.mxu0 %v8680_v27  ;;  %4465 = vmatprep.subr.bf16.mxu1 %v8409_v28  ;;  %v1490_v27 = vld [vmem:[#allocation10 + $0xb58] sm:$0xff]  ;;  %v8570_v28 = vcombine.low %v1498_v10, %v1506_v11 }
 0x331   :  { %4506 = vmatprep.subr.bf16.mxu0 %v8665_v29  ;;  %v8299_v29 = vcombine.high %v1226_v18, %v1234_v21  ;;  %v8555_v32 = vcombine.high %v1482_v26, %v1490_v27  ;;  %v1130_v9 = vld [vmem:[#allocation10 + $0x18] sm:$0xff] }
 0x332   :  { %v1138_v10 = vld [vmem:[#allocation10 + $0x58] sm:$0xff] }
 0x333   :  { %4466 = vmatpush2.bf16.msra.mxu1 %v8408_v34  ;;  %v1474_v34 = vld [vmem:[#allocation10 + $0xad8] sm:$0xff] }
 0x334   :  { %4507 = vmatpush2.bf16.msra.mxu0 %v8664_v35  ;;  %4467 = vmatprep.subr.bf16.mxu1 %v8393_v14  ;;  %v8298_v35 = vcombine.low %v1226_v18, %v1234_v21  ;;  %v8554_v14 = vcombine.low %v1482_v26, %v1490_v27  ;;  %v8539_v49 = vcombine.high %v1466_v33, %v1474_v34  ;;  %v1386_v11 = vld [vmem:[#allocation10 + $0x818] sm:$0xff] }
 0x335   :  { %4508 = vmatprep.subr.bf16.mxu0 %v8649_v45  ;;  %v8283_v45 = vcombine.high %v1210_v30, %v1218_v31  ;;  %v1370_v21 = vld [vmem:[#allocation10 + $0x798] sm:$0xff] }
 0x336   :  { %v1626_v26 = vld [vmem:[#allocation10 + $0xf98] sm:$0xff] }
 0x337   :  { %4468 = vmatpush2.bf16.msra.mxu1 %v8392_v15  ;;  %v1458_v15 = vld [vmem:[#allocation10 + $0xa58] sm:$0xff] }
 0x338   :  { %4509 = vmatpush2.bf16.msra.mxu0 %v8648_v53  ;;  %4469 = vmatprep.subr.bf16.mxu1 %v8377_v54  ;;  %v8282_v53 = vcombine.low %v1210_v30, %v1218_v31  ;;  %v8538_v54 = vcombine.low %v1466_v33, %v1474_v34  ;;  %v8523_v57 = vcombine.high %v1450_v52, %v1458_v15  ;;  %v1634_v27 = vld [vmem:[#allocation10 + $0xfd8] sm:$0xff] }
 0x339   :  { %4510 = vmatprep.subr.bf16.mxu0 %v8633_v55  ;;  %v8267_v55 = vcombine.high %v1194_v50, %v1202_v51  ;;  %v8699_v31 = vcombine.high %v1626_v26, %v1634_v27  ;;  %v1362_v33 = vld [vmem:[#allocation10 + $0x758] sm:$0xff] }
 0x33a   :  { %v1610_v34 = vld [vmem:[#allocation10 + $0xf18] sm:$0xff] }
 0x33b   :  { %4470 = vmatpush2.bf16.msra.mxu1 %v8376_v38  ;;  %v1442_v38 = vld [vmem:[#allocation10 + $0x9d8] sm:$0xff] }
 0x33c   :  { %4511 = vmatpush2.bf16.msra.mxu0 %v8632_v39  ;;  %4471 = vmatprep.subr.bf16.mxu1 %v8361_v41  ;;  %v8266_v39 = vcombine.low %v1194_v50, %v1202_v51  ;;  %v8522_v41 = vcombine.low %v1450_v52, %v1458_v15  ;;  %v8507_v60 = vcombine.high %v1434_v37, %v1442_v38  ;;  %v1338_v51 = vld [vmem:[#allocation10 + $0x698] sm:$0xff] }
 0x33d   :  { %4512 = vmatprep.subr.bf16.mxu0 %v8617_v42  ;;  %v8251_v42 = vcombine.high %v1178_v58, %v1186_v24  ;;  %v1346_v52 = vld [vmem:[#allocation10 + $0x6d8] sm:$0xff] }
 0x33e   :  { %v1594_v15 = vld [vmem:[#allocation10 + $0xe98] sm:$0xff] }
 0x33f   :  { %4472 = vmatpush2.bf16.msra.mxu1 %v8360_v0  ;;  %v1426_v0 = vld [vmem:[#allocation10 + $0x958] sm:$0xff] }
 0x340   :  { %4513 = vmatpush2.bf16.msra.mxu0 %v8616_v1  ;;  %4473 = vmatprep.subr.bf16.mxu1 %v8345_v2  ;;  %v8250_v1 = vcombine.low %v1178_v58, %v1186_v24  ;;  %v8506_v2 = vcombine.low %v1434_v37, %v1442_v38  ;;  %v8491_v40 = vcombine.high %v1418_v63, %v1426_v0  ;;  %v1322_v24 = vld [vmem:[#allocation10 + $0x618] sm:$0xff] }
 0x341   :  { %4514 = vmatprep.subr.bf16.mxu0 %v8601_v4  ;;  %v8235_v4 = vcombine.high %v1162_v61, %v1170_v62  ;;  %v1330_v37 = vld [vmem:[#allocation10 + $0x658] sm:$0xff] }
 0x342   :  { %v1578_v38 = vld [vmem:[#allocation10 + $0xe18] sm:$0xff] }
 0x343   :  { %4474 = vmatpush2.bf16.msra.mxu1 %v8344_v47  ;;  %v1410_v47 = vld [vmem:[#allocation10 + $0x8d8] sm:$0xff] }
 0x344   :  { %4515 = vmatpush2.bf16.msra.mxu0 %v8600_v48  ;;  %4475 = vmatprep.subr.bf16.mxu1 %v8329_v6  ;;  %v8234_v48 = vcombine.low %v1162_v61, %v1170_v62  ;;  %v8490_v6 = vcombine.low %v1418_v63, %v1426_v0  ;;  %v8475_v8 = vcombine.high %v1402_v46, %v1410_v47  ;;  %v1306_v62 = vld [vmem:[#allocation10 + $0x598] sm:$0xff] }
 0x345   :  { %4516 = vmatprep.subr.bf16.mxu0 %v8585_v7  ;;  %v8219_v7 = vcombine.high %v1146_v43, %v1154_v44  ;;  %v1314_v63 = vld [vmem:[#allocation10 + $0x5d8] sm:$0xff] }
 0x346   :  { %v1562_v0 = vld [vmem:[#allocation10 + $0xd98] sm:$0xff] }
 0x347   :  { %4476 = vmatpush2.bf16.msra.mxu1 %v8328_v12  ;;  %v1394_v12 = vld [vmem:[#allocation10 + $0x858] sm:$0xff] }
 0x348   :  { %4517 = vmatpush2.bf16.msra.mxu0 %v8584_v13  ;;  %4527 = vmatprep.subr.bf16.mxu1 %v8315_v16  ;;  %v8218_v13 = vcombine.low %v1146_v43, %v1154_v44  ;;  %v8474_v16 = vcombine.low %v1402_v46, %v1410_v47  ;;  %v8459_v18 = vcombine.high %v1386_v11, %v1394_v12  ;;  %v1290_v44 = vld [vmem:[#allocation10 + $0x518] sm:$0xff] }
 0x349   :  { %4568 = vmatprep.subr.bf16.mxu0 %v8571_v17  ;;  %v8203_v17 = vcombine.high %v1130_v9, %v1138_v10  ;;  %v1298_v46 = vld [vmem:[#allocation10 + $0x558] sm:$0xff] }
 0x34a   :  { %4478 = vmatmul.mubr.bf16.vlgmr.msra.gmra.mxu1 %v10377_v22  ;;  %v1546_v47 = vld [vmem:[#allocation10 + $0xd18] sm:$0xff] }
 0x34b   :  { %4519 = vmatmul.mubr.bf16.vlgmr.msra.gmra.mxu0 %v10381_v36  ;;  %4528 = vmatpush1.bf16.msra.mxu1 %v8314_v25  ;;  %v1378_v25 = vld [vmem:[#allocation10 + $0x7d8] sm:$0xff] }
 0x34c   :  { %4559 = vmatprep.mubr.bf16.mxu1 %v10375_v56  ;;  %4569 = vmatpush1.bf16.msra.mxu0 %v8570_v28  ;;  %v8202_v28 = vcombine.low %v1130_v9, %v1138_v10  ;;  %v8443_v30 = vcombine.high %v1370_v21, %v1378_v25  ;;  %v1274_v10 = vld [vmem:[#allocation10 + $0x498] sm:$0xff] }
 0x34d   :  { %4600 = vmatprep.mubr.bf16.mxu0 %v10379_v59  ;;  %4529 = vmatprep.subr.bf16.mxu1 %v8299_v29  ;;  %v8458_v29 = vcombine.low %v1386_v11, %v1394_v12  ;;  %v1282_v11 = vld [vmem:[#allocation10 + $0x4d8] sm:$0xff] }
 0x34e   :  { %4570 = vmatprep.subr.bf16.mxu0 %v8555_v32  ;;  %v1354_v32 = vld [vmem:[#allocation10 + $0x718] sm:$0xff] }
 0x34f   :  { %4530 = vmatpush1.bf16.msra.mxu1 %v8298_v35  ;;  %v1618_v35 = vld [vmem:[#allocation10 + $0xf58] sm:$0xff] }
 0x350   :  { %4571 = vmatpush1.bf16.msra.mxu0 %v8554_v14  ;;  %4531 = vmatprep.subr.bf16.mxu1 %v8283_v45  ;;  %v8442_v14 = vcombine.low %v1370_v21, %v1378_v25  ;;  %v8698_v45 = vcombine.low %v1626_v26, %v1634_v27  ;;  %v8683_v50 = vcombine.high %v1610_v34, %v1618_v35  ;;  %v1530_v12 = vld [vmem:[#allocation10 + $0xc98] sm:$0xff] }
 0x351   :  { %4572 = vmatprep.subr.bf16.mxu0 %v8539_v49  ;;  %v8427_v49 = vcombine.high %v1354_v32, %v1362_v33  ;;  %v1258_v25 = vld [vmem:[#allocation10 + $0x418] sm:$0xff] }
 0x352   :  { %v1266_v26 = vld [vmem:[#allocation10 + $0x458] sm:$0xff] }
 0x353   :  { %4532 = vmatpush1.bf16.msra.mxu1 %v8282_v53  ;;  %v1602_v53 = vld [vmem:[#allocation10 + $0xed8] sm:$0xff] }
 0x354   :  { %4573 = vmatpush1.bf16.msra.mxu0 %v8538_v54  ;;  %4533 = vmatprep.subr.bf16.mxu1 %v8267_v55  ;;  %v8426_v54 = vcombine.low %v1354_v32, %v1362_v33  ;;  %v8682_v55 = vcombine.low %v1610_v34, %v1618_v35  ;;  %v8667_v58 = vcombine.high %v1594_v15, %v1602_v53  ;;  %v1514_v27 = vld [vmem:[#allocation10 + $0xc18] sm:$0xff]  ;;  %v1243_v33 = vld [vmem:[#allocation10 + $0x3a0] sm:$0xff] }
 0x355   :  { %4574 = vmatprep.subr.bf16.mxu0 %v8523_v57  ;;  %v8411_v57 = vcombine.high %v1338_v51, %v1346_v52  ;;  %v1251_v34 = vld [vmem:[#allocation10 + $0x3e0] sm:$0xff] }
 0x356   :  { %v1499_v35 = vld [vmem:[#allocation10 + $0xba0] sm:$0xff] }
 0x357   :  { %4534 = vmatpush1.bf16.msra.mxu1 %v8266_v39  ;;  %v1586_v39 = vld [vmem:[#allocation10 + $0xe58] sm:$0xff] }
 0x358   :  { %4575 = vmatpush1.bf16.msra.mxu0 %v8522_v41  ;;  %4535 = vmatprep.subr.bf16.mxu1 %v8251_v42  ;;  %v8410_v41 = vcombine.low %v1338_v51, %v1346_v52  ;;  %v8666_v42 = vcombine.low %v1594_v15, %v1602_v53  ;;  %v8651_v61 = vcombine.high %v1578_v38, %v1586_v39  ;;  %v10403_v51 = vld [vmem:[#allocation20] sm:$0xff] }
 0x359   :  { %4576 = vmatprep.subr.bf16.mxu0 %v8507_v60  ;;  %v8395_v60 = vcombine.high %v1322_v24, %v1330_v37  ;;  %v1227_v15 = vld [vmem:[#allocation10 + $0x320] sm:$0xff] }
 0x35a   :  { %v1235_v53 = vld [vmem:[#allocation10 + $0x360] sm:$0xff] }
 0x35b   :  { %4536 = vmatpush1.bf16.msra.mxu1 %v8250_v1  ;;  %v1570_v1 = vld [vmem:[#allocation10 + $0xdd8] sm:$0xff] }
 0x35c   :  { %4577 = vmatpush1.bf16.msra.mxu0 %v8506_v2  ;;  %4537 = vmatprep.subr.bf16.mxu1 %v8235_v4  ;;  %v8394_v2 = vcombine.low %v1322_v24, %v1330_v37  ;;  %v8650_v4 = vcombine.low %v1578_v38, %v1586_v39  ;;  %v8635_v43 = vcombine.high %v1562_v0, %v1570_v1  ;;  %v1211_v39 = vld [vmem:[#allocation10 + $0x2a0] sm:$0xff] }
 0x35d   :  { %4578 = vmatprep.subr.bf16.mxu0 %v8491_v40  ;;  %v8379_v40 = vcombine.high %v1306_v62, %v1314_v63  ;;  %v1648_v37 = vrot.slane %v10403_v51, %v10310_v23  ;;  %v8301_v38 = vcombine.high %v1227_v15, %v1235_v53 }
 0x35f   :  { %4538 = vmatpush1.bf16.msra.mxu1 %v8234_v48  ;;  %v1554_v48 = vld [vmem:[#allocation10 + $0xd58] sm:$0xff] }
 0x360   :  { %4579 = vmatpush1.bf16.msra.mxu0 %v8490_v6  ;;  %4539 = vmatprep.subr.bf16.mxu1 %v8219_v7  ;;  %v8378_v6 = vcombine.low %v1306_v62, %v1314_v63  ;;  %v8634_v7 = vcombine.low %v1562_v0, %v1570_v1  ;;  %v8619_v9 = vcombine.high %v1546_v47, %v1554_v48  ;;  %v1475_v62 = vld [vmem:[#allocation10 + $0xae0] sm:$0xff] }
 0x361   :  { %4580 = vmatprep.subr.bf16.mxu0 %v8475_v8  ;;  %v8363_v8 = vcombine.high %v1290_v44, %v1298_v46  ;;  %v8300_v1 = vcombine.low %v1227_v15, %v1235_v53  ;;  %v1147_v15 = vld [vmem:[#allocation10 + $0xa0] sm:$0xff] }
 0x362   :  { %v1155_v53 = vld [vmem:[#allocation10 + $0xe0] sm:$0xff] }
 0x363   :  { %4540 = vmatpush1.bf16.msra.mxu1 %v8218_v13  ;;  %v1538_v13 = vld [vmem:[#allocation10 + $0xcd8] sm:$0xff] }
 0x364   :  { %4581 = vmatpush1.bf16.msra.mxu0 %v8474_v16  ;;  %4541 = vmatprep.subr.bf16.mxu1 %v8203_v17  ;;  %v8362_v16 = vcombine.low %v1290_v44, %v1298_v46  ;;  %v8618_v17 = vcombine.low %v1546_v47, %v1554_v48  ;;  %v8603_v21 = vcombine.high %v1530_v12, %v1538_v13  ;;  %v1195_v48 = vld [vmem:[#allocation10 + $0x220] sm:$0xff] }
 0x365   :  { %4582 = vmatprep.subr.bf16.mxu0 %v8459_v18  ;;  %v8347_v18 = vcombine.high %v1274_v10, %v1282_v11 }
 0x367   :  { %4542 = vmatpush1.bf16.msra.mxu1 %v8202_v28  ;;  %v1522_v28 = vld [vmem:[#allocation10 + $0xc58] sm:$0xff] }
 0x368   :  { %4583 = vmatpush1.bf16.msra.mxu0 %v8458_v29  ;;  %4543 = vmatprep.subr.bf16.mxu1 %v8443_v30  ;;  %v8346_v29 = vcombine.low %v1274_v10, %v1282_v11  ;;  %v8602_v30 = vcombine.low %v1530_v12, %v1538_v13  ;;  %v8587_v32 = vcombine.high %v1514_v27, %v1522_v28 }
 0x369   :  { %4584 = vmatprep.subr.bf16.mxu0 %v8699_v31  ;;  %v8331_v31 = vcombine.high %v1258_v25, %v1266_v26 }
 0x36b   :  { %4544 = vmatpush2.bf16.msra.mxu1 %v8442_v14  ;;  %v1507_v14 = vld [vmem:[#allocation10 + $0xbe0] sm:$0xff] }
 0x36c   :  { %4585 = vmatpush2.bf16.msra.mxu0 %v8698_v45  ;;  %4545 = vmatprep.subr.bf16.mxu1 %v8427_v49  ;;  %v8330_v45 = vcombine.low %v1258_v25, %v1266_v26  ;;  %v8586_v49 = vcombine.low %v1514_v27, %v1522_v28  ;;  %v8573_v52 = vcombine.high %v1499_v35, %v1507_v14  ;;  %v1179_v25 = vld [vmem:[#allocation10 + $0x1a0] sm:$0xff] }
 0x36d   :  { %4586 = vmatprep.subr.bf16.mxu0 %v8683_v50  ;;  %v8317_v50 = vcombine.high %v1243_v33, %v1251_v34  ;;  %v8572_v24 = vcombine.low %v1499_v35, %v1507_v14  ;;  %v1187_v26 = vld [vmem:[#allocation10 + $0x1e0] sm:$0xff] }
 0x36e   :  { %v1435_v27 = vld [vmem:[#allocation10 + $0x9a0] sm:$0xff] }
 0x36f   :  { %4546 = vmatpush2.bf16.msra.mxu1 %v8426_v54  ;;  %v8316_v54 = vcombine.low %v1243_v33, %v1251_v34  ;;  %v1443_v28 = vld [vmem:[#allocation10 + $0x9e0] sm:$0xff] }
 0x370   :  { %4587 = vmatpush2.bf16.msra.mxu0 %v8682_v55  ;;  %4547 = vmatprep.subr.bf16.mxu1 %v8411_v57  ;;  %v1644_v55 = vrot.slane %v10403_v51, %v10307_v20  ;;  %v1483_v57 = vld [vmem:[#allocation10 + $0xb20] sm:$0xff] }
 0x371   :  { %4588 = vmatprep.subr.bf16.mxu0 %v8667_v58  ;;  %v1491_v58 = vld [vmem:[#allocation10 + $0xb60] sm:$0xff] }
 0x372   :  { %v1163_v33 = vld [vmem:[#allocation10 + $0x120] sm:$0xff] }
 0x373   :  { %4548 = vmatpush2.bf16.msra.mxu1 %v8410_v41  ;;  %v1219_v41 = vld [vmem:[#allocation10 + $0x2e0] sm:$0xff] }
 0x374   :  { %4589 = vmatpush2.bf16.msra.mxu0 %v8666_v42  ;;  %4549 = vmatprep.subr.bf16.mxu1 %v8395_v60  ;;  %v8557_v60 = vcombine.high %v1483_v57, %v1491_v58  ;;  %v8284_v12 = vcombine.low %v1211_v39, %v1219_v41  ;;  %v1171_v34 = vld [vmem:[#allocation10 + $0x160] sm:$0xff] }
 0x375   :  { %4590 = vmatprep.subr.bf16.mxu0 %v8651_v61  ;;  %v1467_v61 = vld [vmem:[#allocation10 + $0xaa0] sm:$0xff] }
 0x376   :  { %v8541_v47 = vcombine.high %v1467_v61, %v1475_v62  ;;  %v1419_v35 = vld [vmem:[#allocation10 + $0x920] sm:$0xff] }
 0x377   :  { %4550 = vmatpush2.bf16.msra.mxu1 %v8394_v2  ;;  %v1427_v14 = vld [vmem:[#allocation10 + $0x960] sm:$0xff] }
 0x378   :  { %4591 = vmatpush2.bf16.msra.mxu0 %v8650_v4  ;;  %4551 = vmatprep.subr.bf16.mxu1 %v8379_v40  ;;  %v8556_v4 = vcombine.low %v1483_v57, %v1491_v58  ;;  %v8285_v40 = vcombine.high %v1211_v39, %v1219_v41  ;;  %v8236_v57 = vcombine.low %v1163_v33, %v1171_v34  ;;  %v1139_v39 = vld [vmem:[#allocation10 + $0x60] sm:$0xff] }
 0x379   :  { %4592 = vmatprep.subr.bf16.mxu0 %v8635_v43  ;;  %v8492_v58 = vcombine.low %v1419_v35, %v1427_v14  ;;  %v1387_v41 = vld [vmem:[#allocation10 + $0x820] sm:$0xff] }
 0x37b   :  { %4552 = vmatpush2.bf16.msra.mxu1 %v8378_v6  ;;  %v1203_v6 = vld [vmem:[#allocation10 + $0x260] sm:$0xff] }
 0x37c   :  { %4593 = vmatpush2.bf16.msra.mxu0 %v8634_v7  ;;  %4553 = vmatprep.subr.bf16.mxu1 %v8363_v8  ;;  %v1451_v8 = vld [vmem:[#allocation10 + $0xa20] sm:$0xff] }
 0x37d   :  { %4594 = vmatprep.subr.bf16.mxu0 %v8619_v9  ;;  %v1459_v9 = vld [vmem:[#allocation10 + $0xa60] sm:$0xff] }
 0x37f   :  { %4554 = vmatpush2.bf16.msra.mxu1 %v8362_v16  ;;  %v8540_v16 = vcombine.low %v1467_v61, %v1475_v62 }
 0x380   :  { %4595 = vmatpush2.bf16.msra.mxu0 %v8618_v17  ;;  %4555 = vmatprep.subr.bf16.mxu1 %v8347_v18  ;;  %v8269_v17 = vcombine.high %v1195_v48, %v1203_v6 }
 0x381   :  { %4596 = vmatprep.subr.bf16.mxu0 %v8603_v21  ;;  %v8525_v21 = vcombine.high %v1451_v8, %v1459_v9 }
 0x383   :  { %4556 = vmatpush2.bf16.msra.mxu1 %v8346_v29  ;;  %v8268_v29 = vcombine.low %v1195_v48, %v1203_v6  ;;  %v1355_v48 = vld [vmem:[#allocation10 + $0x720] sm:$0xff] }
 0x384   :  { %4597 = vmatpush2.bf16.msra.mxu0 %v8602_v30  ;;  %4557 = vmatprep.subr.bf16.mxu1 %v8331_v31  ;;  %v8524_v30 = vcombine.low %v1451_v8, %v1459_v9  ;;  %v8253_v31 = vcombine.high %v1179_v25, %v1187_v26  ;;  %v1363_v6 = vld [vmem:[#allocation10 + $0x760] sm:$0xff] }
 0x385   :  { %4598 = vmatprep.subr.bf16.mxu0 %v8587_v32  ;;  %v8509_v32 = vcombine.high %v1435_v27, %v1443_v28  ;;  %v1619_v8 = vld [vmem:[#allocation10 + $0xf60] sm:$0xff] }
 0x387   :  { %4558 = vmatpush2.bf16.msra.mxu1 %v8330_v45  ;;  %v8252_v45 = vcombine.low %v1179_v25, %v1187_v26  ;;  %v8428_v25 = vcombine.low %v1355_v48, %v1363_v6 }
 0x388   :  { %4599 = vmatpush2.bf16.msra.mxu0 %v8586_v49  ;;  %4609 = vmatprep.subr.bf16.mxu1 %v8317_v50  ;;  %v8508_v49 = vcombine.low %v1435_v27, %v1443_v28  ;;  %v8237_v50 = vcombine.high %v1163_v33, %v1171_v34 }
 0x389   :  { %4650 = vmatprep.subr.bf16.mxu0 %v8573_v52  ;;  %v8493_v52 = vcombine.high %v1419_v35, %v1427_v14 }
 0x38a   :  { %4560 = vmatmul.mubr.bf16.vlgmr.msra.gmra.mxu1 %v10377_v22  ;;  %v4315_v42 = vpop.f32.mrf.mxu1 }
 0x38b   :  { %4601 = vmatmul.mubr.bf16.vlgmr.msra.gmra.mxu0 %v10381_v36  ;;  %v4316_v63 = vadd.f32 %v4315_v42, %v1644_v55  ;;  %v4356_v0 = vpop.f32.mrf.mxu0  ;;  %4610 = vmatpush1.bf16.msra.mxu1 %v8316_v54  ;;  %v1403_v54 = vld [vmem:[#allocation10 + $0x8a0] sm:$0xff] }
 0x38c   :  { %4641 = vmatprep.mubr.bf16.mxu1 %v10375_v56  ;;  %4651 = vmatpush1.bf16.msra.mxu0 %v8572_v24  ;;  %v4317_v2 = vpop.f32.mrf.mxu1  ;;  %v1411_v55 = vld [vmem:[#allocation10 + $0x8e0] sm:$0xff]  ;;  %v8221_v24 = vcombine.high %v1147_v15, %v1155_v53 }
 0x38d   :  { %v10412_v43 = vadd.f32 %v4356_v0, %v4316_v63  ;;  %4682 = vmatprep.mubr.bf16.mxu0 %v10379_v59  ;;  %v4318_v44 = vadd.f32 %v4317_v2, %v1648_v37  ;;  %v4358_v46 = vpop.f32.mrf.mxu0  ;;  %4611 = vmatprep.subr.bf16.mxu1 %v8301_v38  ;;  %v8477_v37 = vcombine.high %v1403_v54, %v1411_v55  ;;  %v1131_v38 = vld [vmem:[#allocation10 + $0x20] sm:$0xff] }
 0x38e   :  { %4652 = vmatprep.subr.bf16.mxu0 %v8557_v60  ;;  %v4319_v7 = vpop.f32.mrf.mxu1  ;;  %v1395_v42 = vld [vmem:[#allocation10 + $0x860] sm:$0xff]  ;;  %v8220_v60 = vcombine.low %v1147_v15, %v1155_v53  ;;  %v8476_v61 = vcombine.low %v1403_v54, %v1411_v55  ;;  %v8205_v62 = vcombine.high %v1131_v38, %v1139_v39 }
 0x38f   :  { %v10415_v10 = vadd.f32 %v4358_v46, %v4318_v44  ;;  %v4360_v11 = vpop.f32.mrf.mxu0  ;;  %4612 = vmatpush1.bf16.msra.mxu1 %v8300_v1  ;;  %v8461_v63 = vcombine.high %v1387_v41, %v1395_v42  ;;  %v1371_v0 = vld [vmem:[#allocation10 + $0x7a0] sm:$0xff]  ;;  %v8460_v44 = vcombine.low %v1387_v41, %v1395_v42 }
 0x390   :  { %4653 = vmatpush1.bf16.msra.mxu0 %v8556_v4  ;;  %v4320_v13 = vpop.f32.mrf.mxu1  ;;  %4613 = vmatprep.subr.bf16.mxu1 %v8285_v40  ;;  %v1379_v1 = vld [vmem:[#allocation10 + $0x7e0] sm:$0xff]  ;;  %v8204_v40 = vcombine.low %v1131_v38, %v1139_v39 }
 0x391   :  { %v4361_v18 = vpop.f32.mrf.mxu0  ;;  %4654 = vmatprep.subr.bf16.mxu0 %v8541_v47  ;;  %v1627_v2 = vld [vmem:[#allocation10 + $0xfa0] sm:$0xff]  ;;  %v8445_v46 = vcombine.high %v1371_v0, %v1379_v1  ;;  %v8444_v9 = vcombine.low %v1371_v0, %v1379_v1 }
 0x392   :  { %v1635_v4 = vld [vmem:[#allocation10 + $0xfe0] sm:$0xff] }
 0x393   :  { %4614 = vmatpush1.bf16.msra.mxu1 %v8284_v12  ;;  %v8701_v47 = vcombine.high %v1627_v2, %v1635_v4  ;;  %v1611_v7 = vld [vmem:[#allocation10 + $0xf20] sm:$0xff]  ;;  %v8700_v11 = vcombine.low %v1627_v2, %v1635_v4  ;;  %v8429_v12 = vcombine.high %v1355_v48, %v1363_v6 }
 0x394   :  { %4655 = vmatpush1.bf16.msra.mxu0 %v8540_v16  ;;  %4615 = vmatprep.subr.bf16.mxu1 %v8269_v17  ;;  %v8685_v13 = vcombine.high %v1611_v7, %v1619_v8  ;;  %v1339_v16 = vld [vmem:[#allocation10 + $0x6a0] sm:$0xff]  ;;  %v8684_v26 = vcombine.low %v1611_v7, %v1619_v8 }
 0x395   :  { %4656 = vmatprep.subr.bf16.mxu0 %v8525_v21  ;;  %v1347_v17 = vld [vmem:[#allocation10 + $0x6e0] sm:$0xff] }
 0x396   :  { %v1595_v18 = vld [vmem:[#allocation10 + $0xea0] sm:$0xff]  ;;  %v8413_v27 = vcombine.high %v1339_v16, %v1347_v17  ;;  %v8412_v33 = vcombine.low %v1339_v16, %v1347_v17  ;;  %v10418_v17 = vsub.s32 2, %v10304_v19 }
 0x397   :  { %4616 = vmatpush1.bf16.msra.mxu1 %v8268_v29  ;;  %v1603_v21 = vld [vmem:[#allocation10 + $0xee0] sm:$0xff] }
 0x398   :  { %4657 = vmatpush1.bf16.msra.mxu0 %v8524_v30  ;;  %4617 = vmatprep.subr.bf16.mxu1 %v8253_v31  ;;  %v8669_v28 = vcombine.high %v1595_v18, %v1603_v21  ;;  %v1323_v29 = vld [vmem:[#allocation10 + $0x620] sm:$0xff]  ;;  %v8668_v34 = vcombine.low %v1595_v18, %v1603_v21 }
 0x399   :  { %4658 = vmatprep.subr.bf16.mxu0 %v8509_v32  ;;  %v1331_v30 = vld [vmem:[#allocation10 + $0x660] sm:$0xff] }
 0x39a   :  { %v1579_v31 = vld [vmem:[#allocation10 + $0xe20] sm:$0xff]  ;;  %v8397_v35 = vcombine.high %v1323_v29, %v1331_v30  ;;  %v8396_v15 = vcombine.low %v1323_v29, %v1331_v30  ;;  %v1652_v29 = vrot.slane %v10403_v51, %v10418_v17 }
 0x39b   :  { %4618 = vmatpush1.bf16.msra.mxu1 %v8252_v45  ;;  %v1587_v32 = vld [vmem:[#allocation10 + $0xe60] sm:$0xff] }
 0x39c   :  { %4659 = vmatpush1.bf16.msra.mxu0 %v8508_v49  ;;  %4619 = vmatprep.subr.bf16.mxu1 %v8237_v50  ;;  %v8653_v14 = vcombine.high %v1579_v31, %v1587_v32  ;;  %v1307_v45 = vld [vmem:[#allocation10 + $0x5a0] sm:$0xff]  ;;  %v8652_v53 = vcombine.low %v1579_v31, %v1587_v32  ;;  %v1484_v31 = vld [vmem:[#allocation10 + $0xb28] sm:$0xff] }
 0x39d   :  { %4660 = vmatprep.subr.bf16.mxu0 %v8493_v52  ;;  %v1315_v49 = vld [vmem:[#allocation10 + $0x5e0] sm:$0xff]  ;;  %v1492_v32 = vld [vmem:[#allocation10 + $0xb68] sm:$0xff] }
 0x39e   :  { %v1563_v50 = vld [vmem:[#allocation10 + $0xda0] sm:$0xff]  ;;  %v8381_v54 = vcombine.high %v1307_v45, %v1315_v49  ;;  %v8380_v38 = vcombine.low %v1307_v45, %v1315_v49  ;;  %v1220_v45 = vld [vmem:[#allocation10 + $0x2e8] sm:$0xff] }
 0x39f   :  { %4620 = vmatpush1.bf16.msra.mxu1 %v8236_v57  ;;  %v1571_v52 = vld [vmem:[#allocation10 + $0xde0] sm:$0xff] }
 0x3a0   :  { %4661 = vmatpush1.bf16.msra.mxu0 %v8492_v58  ;;  %4621 = vmatprep.subr.bf16.mxu1 %v8221_v24  ;;  %v8637_v55 = vcombine.high %v1563_v50, %v1571_v52  ;;  %v1291_v57 = vld [vmem:[#allocation10 + $0x520] sm:$0xff]  ;;  %v8636_v39 = vcombine.low %v1563_v50, %v1571_v52  ;;  %v8559_v50 = vcombine.high %v1484_v31, %v1492_v32  ;;  %v1468_v52 = vld [vmem:[#allocation10 + $0xaa8] sm:$0xff] }
 0x3a1   :  { %4662 = vmatprep.subr.bf16.mxu0 %v8477_v37  ;;  %v1299_v58 = vld [vmem:[#allocation10 + $0x560] sm:$0xff] }
 0x3a2   :  { %v1547_v24 = vld [vmem:[#allocation10 + $0xd20] sm:$0xff]  ;;  %v8365_v41 = vcombine.high %v1291_v57, %v1299_v58  ;;  %v8364_v0 = vcombine.low %v1291_v57, %v1299_v58  ;;  %v8558_v58 = vcombine.low %v1484_v31, %v1492_v32  ;;  %v1148_v31 = vld [vmem:[#allocation10 + $0xa8] sm:$0xff] }
 0x3a3   :  { %4622 = vmatpush1.bf16.msra.mxu1 %v8220_v60  ;;  %v1555_v37 = vld [vmem:[#allocation10 + $0xd60] sm:$0xff]  ;;  %v1156_v32 = vld [vmem:[#allocation10 + $0xe8] sm:$0xff] }
 0x3a4   :  { %4663 = vmatpush1.bf16.msra.mxu0 %v8476_v61  ;;  %4623 = vmatprep.subr.bf16.mxu1 %v8205_v62  ;;  %v8621_v42 = vcombine.high %v1547_v24, %v1555_v37  ;;  %v1275_v60 = vld [vmem:[#allocation10 + $0x4a0] sm:$0xff]  ;;  %v8620_v1 = vcombine.low %v1547_v24, %v1555_v37 }
 0x3a5   :  { %4664 = vmatprep.subr.bf16.mxu0 %v8461_v63  ;;  %v1283_v61 = vld [vmem:[#allocation10 + $0x4e0] sm:$0xff] }
 0x3a6   :  { %v1531_v62 = vld [vmem:[#allocation10 + $0xca0] sm:$0xff]  ;;  %v8349_v2 = vcombine.high %v1275_v60, %v1283_v61  ;;  %v8348_v48 = vcombine.low %v1275_v60, %v1283_v61  ;;  %v1204_v60 = vld [vmem:[#allocation10 + $0x268] sm:$0xff] }
 0x3a7   :  { %4624 = vmatpush1.bf16.msra.mxu1 %v8204_v40  ;;  %v1539_v63 = vld [vmem:[#allocation10 + $0xce0] sm:$0xff] }
 0x3a8   :  { %4665 = vmatpush1.bf16.msra.mxu0 %v8460_v44  ;;  %4625 = vmatprep.subr.bf16.mxu1 %v8445_v46  ;;  %v8605_v4 = vcombine.high %v1531_v62, %v1539_v63  ;;  %v1259_v40 = vld [vmem:[#allocation10 + $0x420] sm:$0xff]  ;;  %v8604_v6 = vcombine.low %v1531_v62, %v1539_v63  ;;  %v1452_v62 = vld [vmem:[#allocation10 + $0xa28] sm:$0xff] }
 0x3a9   :  { %4666 = vmatprep.subr.bf16.mxu0 %v8701_v47  ;;  %v1267_v44 = vld [vmem:[#allocation10 + $0x460] sm:$0xff]  ;;  %v1460_v63 = vld [vmem:[#allocation10 + $0xa68] sm:$0xff] }
 0x3aa   :  { %v1515_v46 = vld [vmem:[#allocation10 + $0xc20] sm:$0xff]  ;;  %v8333_v7 = vcombine.high %v1259_v40, %v1267_v44  ;;  %v8332_v16 = vcombine.low %v1259_v40, %v1267_v44 }
 0x3ab   :  { %4626 = vmatpush2.bf16.msra.mxu1 %v8444_v9  ;;  %v1523_v47 = vld [vmem:[#allocation10 + $0xc60] sm:$0xff]  ;;  %v1244_v9 = vld [vmem:[#allocation10 + $0x3a8] sm:$0xff] }
 0x3ac   :  { %4667 = vmatpush2.bf16.msra.mxu0 %v8700_v11  ;;  %4627 = vmatprep.subr.bf16.mxu1 %v8429_v12  ;;  %v8589_v8 = vcombine.high %v1515_v46, %v1523_v47  ;;  %v1252_v11 = vld [vmem:[#allocation10 + $0x3e8] sm:$0xff]  ;;  %v8588_v18 = vcombine.low %v1515_v46, %v1523_v47  ;;  %v8527_v47 = vcombine.high %v1452_v62, %v1460_v63 }
 0x3ad   :  { %4668 = vmatprep.subr.bf16.mxu0 %v8685_v13  ;;  %v1500_v12 = vld [vmem:[#allocation10 + $0xba8] sm:$0xff]  ;;  %v8319_v21 = vcombine.high %v1244_v9, %v1252_v11  ;;  %v8318_v30 = vcombine.low %v1244_v9, %v1252_v11  ;;  %v8526_v11 = vcombine.low %v1452_v62, %v1460_v63 }
 0x3ae   :  { %v1508_v13 = vld [vmem:[#allocation10 + $0xbe8] sm:$0xff] }
 0x3af   :  { %4628 = vmatpush2.bf16.msra.mxu1 %v8428_v25  ;;  %v8575_v25 = vcombine.high %v1500_v12, %v1508_v13  ;;  %v1356_v63 = vld [vmem:[#allocation10 + $0x728] sm:$0xff] }
 0x3b0   :  { %4669 = vmatpush2.bf16.msra.mxu0 %v8684_v26  ;;  %4629 = vmatprep.subr.bf16.mxu1 %v8413_v27  ;;  %v10421_v26 = vsub.s32 3, %v10304_v19  ;;  %v1228_v27 = vld [vmem:[#allocation10 + $0x328] sm:$0xff] }
 0x3b1   :  { %4670 = vmatprep.subr.bf16.mxu0 %v8669_v28  ;;  %v1236_v28 = vld [vmem:[#allocation10 + $0x368] sm:$0xff] }
 0x3b3   :  { %4630 = vmatpush2.bf16.msra.mxu1 %v8412_v33  ;;  %v8574_v33 = vcombine.low %v1500_v12, %v1508_v13 }
 0x3b4   :  { %4671 = vmatpush2.bf16.msra.mxu0 %v8668_v34  ;;  %4631 = vmatprep.subr.bf16.mxu1 %v8397_v35  ;;  %v1656_v34 = vrot.slane %v10403_v51, %v10421_v26  ;;  %v8303_v35 = vcombine.high %v1228_v27, %v1236_v28 }
 0x3b5   :  { %4672 = vmatprep.subr.bf16.mxu0 %v8653_v14  ;;  %v1212_v14 = vld [vmem:[#allocation10 + $0x2a8] sm:$0xff] }
 0x3b6   :  { %v8287_v24 = vcombine.high %v1212_v14, %v1220_v45 }
 0x3b7   :  { %4632 = vmatpush2.bf16.msra.mxu1 %v8396_v15  ;;  %v1476_v15 = vld [vmem:[#allocation10 + $0xae8] sm:$0xff] }
 0x3b8   :  { %4673 = vmatpush2.bf16.msra.mxu0 %v8652_v53  ;;  %4633 = vmatprep.subr.bf16.mxu1 %v8381_v54  ;;  %v8542_v40 = vcombine.low %v1468_v52, %v1476_v15 }
 0x3b9   :  { %4674 = vmatprep.subr.bf16.mxu0 %v8637_v55  ;;  %v8302_v55 = vcombine.low %v1228_v27, %v1236_v28 }
 0x3bb   :  { %4634 = vmatpush2.bf16.msra.mxu1 %v8380_v38 }
 0x3bc   :  { %4675 = vmatpush2.bf16.msra.mxu0 %v8636_v39  ;;  %4635 = vmatprep.subr.bf16.mxu1 %v8365_v41  ;;  %v8543_v41 = vcombine.high %v1468_v52, %v1476_v15  ;;  %v1140_v52 = vld [vmem:[#allocation10 + $0x68] sm:$0xff] }
 0x3bd   :  { %4676 = vmatprep.subr.bf16.mxu0 %v8621_v42  ;;  %v1196_v42 = vld [vmem:[#allocation10 + $0x228] sm:$0xff] }
 0x3be   :  { %v8271_v44 = vcombine.high %v1196_v42, %v1204_v60  ;;  %v8270_v9 = vcombine.low %v1196_v42, %v1204_v60  ;;  %v1388_v15 = vld [vmem:[#allocation10 + $0x828] sm:$0xff] }
 0x3bf   :  { %4636 = vmatpush2.bf16.msra.mxu1 %v8364_v0 }
 0x3c0   :  { %4677 = vmatpush2.bf16.msra.mxu0 %v8620_v1  ;;  %4637 = vmatprep.subr.bf16.mxu1 %v8349_v2  ;;  %v8286_v2 = vcombine.low %v1212_v14, %v1220_v45  ;;  %v8223_v45 = vcombine.high %v1148_v31, %v1156_v32 }
 0x3c1   :  { %4678 = vmatprep.subr.bf16.mxu0 %v8605_v4 }
 0x3c3   :  { %4638 = vmatpush2.bf16.msra.mxu1 %v8348_v48  ;;  %v1180_v48 = vld [vmem:[#allocation10 + $0x1a8] sm:$0xff] }
 0x3c4   :  { %4679 = vmatpush2.bf16.msra.mxu0 %v8604_v6  ;;  %4639 = vmatprep.subr.bf16.mxu1 %v8333_v7  ;;  %v1188_v6 = vld [vmem:[#allocation10 + $0x1e8] sm:$0xff] }
 0x3c5   :  { %4680 = vmatprep.subr.bf16.mxu0 %v8589_v8  ;;  %v1436_v7 = vld [vmem:[#allocation10 + $0x9a8] sm:$0xff]  ;;  %v8255_v12 = vcombine.high %v1180_v48, %v1188_v6  ;;  %v8254_v27 = vcombine.low %v1180_v48, %v1188_v6 }
 0x3c6   :  { %v1444_v8 = vld [vmem:[#allocation10 + $0x9e8] sm:$0xff] }
 0x3c7   :  { %4640 = vmatpush2.bf16.msra.mxu1 %v8332_v16  ;;  %v8511_v13 = vcombine.high %v1436_v7, %v1444_v8  ;;  %v1164_v16 = vld [vmem:[#allocation10 + $0x128] sm:$0xff]  ;;  %v8510_v28 = vcombine.low %v1436_v7, %v1444_v8 }
 0x3c8   :  { %4681 = vmatpush2.bf16.msra.mxu0 %v8588_v18  ;;  %4691 = vmatprep.subr.bf16.mxu1 %v8319_v21  ;;  %v1172_v18 = vld [vmem:[#allocation10 + $0x168] sm:$0xff] }
 0x3c9   :  { %4732 = vmatprep.subr.bf16.mxu0 %v8575_v25  ;;  %v1420_v21 = vld [vmem:[#allocation10 + $0x928] sm:$0xff] }
 0x3ca   :  { %v4397_v49 = vpop.f32.mrf.mxu1  ;;  %4642 = vmatmul.mubr.bf16.vlgmr.msra.gmra.mxu1 %v10377_v22  ;;  %v1428_v25 = vld [vmem:[#allocation10 + $0x968] sm:$0xff] }
 0x3cb   :  { %v4398_v53 = vadd.f32 %v4397_v49, %v1652_v29  ;;  %v4438_v54 = vpop.f32.mrf.mxu0  ;;  %4683 = vmatmul.mubr.bf16.vlgmr.msra.gmra.mxu0 %v10381_v36  ;;  %4692 = vmatpush1.bf16.msra.mxu1 %v8318_v30  ;;  %v8239_v29 = vcombine.high %v1164_v16, %v1172_v18  ;;  %v8495_v30 = vcombine.high %v1420_v21, %v1428_v25  ;;  %v1340_v48 = vld [vmem:[#allocation10 + $0x6a8] sm:$0xff] }
 0x3cc   :  { %4723 = vmatprep.mubr.bf16.mxu1 %v10375_v56  ;;  %4733 = vmatpush1.bf16.msra.mxu0 %v8574_v33  ;;  %v4399_v57 = vpop.f32.mrf.mxu1  ;;  %v1404_v33 = vld [vmem:[#allocation10 + $0x8a8] sm:$0xff]  ;;  %v8494_v14 = vcombine.low %v1420_v21, %v1428_v25 }
 0x3cd   :  { %v10430_v37 = vadd.f32 %v4438_v54, %v4398_v53  ;;  %4764 = vmatprep.mubr.bf16.mxu0 %v10379_v59  ;;  %v4400_v38 = vadd.f32 %v4399_v57, %v1656_v34  ;;  %v4440_v39 = vpop.f32.mrf.mxu0  ;;  %4693 = vmatprep.subr.bf16.mxu1 %v8303_v35  ;;  %v1412_v34 = vld [vmem:[#allocation10 + $0x8e8] sm:$0xff]  ;;  %v8238_v35 = vcombine.low %v1164_v16, %v1172_v18 }
 0x3ce   :  { %v4401_v61 = vpop.f32.mrf.mxu1  ;;  %4734 = vmatprep.subr.bf16.mxu0 %v8559_v50  ;;  %v8479_v49 = vcombine.high %v1404_v33, %v1412_v34  ;;  %v1132_v50 = vld [vmem:[#allocation10 + $0x28] sm:$0xff]  ;;  %v8222_v54 = vcombine.low %v1148_v31, %v1156_v32 }
 0x3cf   :  { %v10433_v0 = vadd.f32 %v4440_v39, %v4400_v38  ;;  %v4442_v1 = vpop.f32.mrf.mxu0  ;;  %4694 = vmatpush1.bf16.msra.mxu1 %v8302_v55  ;;  %v1396_v53 = vld [vmem:[#allocation10 + $0x868] sm:$0xff]  ;;  %v8478_v55 = vcombine.low %v1404_v33, %v1412_v34  ;;  %v8207_v57 = vcombine.high %v1132_v50, %v1140_v52  ;;  %v8206_v42 = vcombine.low %v1132_v50, %v1140_v52 }
 0x3d0   :  { %4735 = vmatpush1.bf16.msra.mxu0 %v8558_v58  ;;  %v4402_v4 = vpop.f32.mrf.mxu1  ;;  %4695 = vmatprep.subr.bf16.mxu1 %v8287_v24  ;;  %v8463_v58 = vcombine.high %v1388_v15, %v1396_v53  ;;  %v1372_v24 = vld [vmem:[#allocation10 + $0x7a8] sm:$0xff]  ;;  %v8462_v60 = vcombine.low %v1388_v15, %v1396_v53 }
 0x3d1   :  { %v4443_v46 = vpop.f32.mrf.mxu0  ;;  %4736 = vmatprep.subr.bf16.mxu0 %v8543_v41  ;;  %v1380_v38 = vld [vmem:[#allocation10 + $0x7e8] sm:$0xff] }
 0x3d2   :  { %v1628_v39 = vld [vmem:[#allocation10 + $0xfa8] sm:$0xff]  ;;  %v8447_v61 = vcombine.high %v1372_v24, %v1380_v38 }
 0x3d3   :  { %4696 = vmatpush1.bf16.msra.mxu1 %v8286_v2  ;;  %v1636_v41 = vld [vmem:[#allocation10 + $0xfe8] sm:$0xff] }
 0x3d4   :  { %4737 = vmatpush1.bf16.msra.mxu0 %v8542_v40  ;;  %4697 = vmatprep.subr.bf16.mxu1 %v8271_v44  ;;  %v8703_v62 = vcombine.high %v1628_v39, %v1636_v41  ;;  %v1364_v1 = vld [vmem:[#allocation10 + $0x768] sm:$0xff]  ;;  %v8446_v40 = vcombine.low %v1372_v24, %v1380_v38  ;;  %v8702_v44 = vcombine.low %v1628_v39, %v1636_v41 }
 0x3d5   :  { %4738 = vmatprep.subr.bf16.mxu0 %v8527_v47  ;;  %v1612_v2 = vld [vmem:[#allocation10 + $0xf28] sm:$0xff]  ;;  %v8431_v46 = vcombine.high %v1356_v63, %v1364_v1 }
 0x3d6   :  { %v1620_v4 = vld [vmem:[#allocation10 + $0xf68] sm:$0xff] }
 0x3d7   :  { %4698 = vmatpush1.bf16.msra.mxu1 %v8270_v9  ;;  %v8687_v47 = vcombine.high %v1612_v2, %v1620_v4  ;;  %v1348_v6 = vld [vmem:[#allocation10 + $0x6e8] sm:$0xff]  ;;  %v8430_v9 = vcombine.low %v1356_v63, %v1364_v1 }
 0x3d8   :  { %4739 = vmatpush1.bf16.msra.mxu0 %v8526_v11  ;;  %4699 = vmatprep.subr.bf16.mxu1 %v8255_v12  ;;  %v1596_v7 = vld [vmem:[#allocation10 + $0xea8] sm:$0xff]  ;;  %v8686_v11 = vcombine.low %v1612_v2, %v1620_v4  ;;  %v8415_v12 = vcombine.high %v1340_v48, %v1348_v6 }
 0x3d9   :  { %4740 = vmatprep.subr.bf16.mxu0 %v8511_v13  ;;  %v1604_v8 = vld [vmem:[#allocation10 + $0xee8] sm:$0xff] }
 0x3da   :  { %v8671_v13 = vcombine.high %v1596_v7, %v1604_v8  ;;  %v1324_v16 = vld [vmem:[#allocation10 + $0x628] sm:$0xff] }
 0x3db   :  { %4700 = vmatpush1.bf16.msra.mxu1 %v8254_v27  ;;  %v1332_v18 = vld [vmem:[#allocation10 + $0x668] sm:$0xff]  ;;  %v8414_v27 = vcombine.low %v1340_v48, %v1348_v6  ;;  %v1245_v48 = vld [vmem:[#allocation10 + $0x3b0] sm:$0xff] }
 0x3dc   :  { %4741 = vmatpush1.bf16.msra.mxu0 %v8510_v28  ;;  %4701 = vmatprep.subr.bf16.mxu1 %v8239_v29  ;;  %v1580_v21 = vld [vmem:[#allocation10 + $0xe28] sm:$0xff]  ;;  %v8670_v28 = vcombine.low %v1596_v7, %v1604_v8  ;;  %v8399_v29 = vcombine.high %v1324_v16, %v1332_v18  ;;  %v1253_v6 = vld [vmem:[#allocation10 + $0x3f0] sm:$0xff] }
 0x3dd   :  { %4742 = vmatprep.subr.bf16.mxu0 %v8495_v30  ;;  %v1588_v25 = vld [vmem:[#allocation10 + $0xe68] sm:$0xff]  ;;  %v1501_v7 = vld [vmem:[#allocation10 + $0xbb0] sm:$0xff] }
 0x3de   :  { %v8655_v30 = vcombine.high %v1580_v21, %v1588_v25  ;;  %v1308_v31 = vld [vmem:[#allocation10 + $0x5a8] sm:$0xff]  ;;  %v1509_v8 = vld [vmem:[#allocation10 + $0xbf0] sm:$0xff] }
 0x3df   :  { %4702 = vmatpush1.bf16.msra.mxu1 %v8238_v35  ;;  %v1316_v32 = vld [vmem:[#allocation10 + $0x5e8] sm:$0xff]  ;;  %v8398_v35 = vcombine.low %v1324_v16, %v1332_v18  ;;  %v1229_v16 = vld [vmem:[#allocation10 + $0x330] sm:$0xff] }
 0x3e0   :  { %4743 = vmatpush1.bf16.msra.mxu0 %v8494_v14  ;;  %4703 = vmatprep.subr.bf16.mxu1 %v8223_v45  ;;  %v1564_v33 = vld [vmem:[#allocation10 + $0xda8] sm:$0xff]  ;;  %v8654_v14 = vcombine.low %v1580_v21, %v1588_v25  ;;  %v8383_v45 = vcombine.high %v1308_v31, %v1316_v32  ;;  %v1237_v18 = vld [vmem:[#allocation10 + $0x370] sm:$0xff]  ;;  %v1660_v21 = vrot.slane %v10403_v51, %v10351_v3 }
 0x3e1   :  { %4744 = vmatprep.subr.bf16.mxu0 %v8479_v49  ;;  %v1572_v34 = vld [vmem:[#allocation10 + $0xde8] sm:$0xff]  ;;  %v8320_v25 = vcombine.low %v1245_v48, %v1253_v6 }
 0x3e2   :  { %v8639_v49 = vcombine.high %v1564_v33, %v1572_v34  ;;  %v1292_v50 = vld [vmem:[#allocation10 + $0x528] sm:$0xff] }
 0x3e3   :  { %4704 = vmatpush1.bf16.msra.mxu1 %v8222_v54  ;;  %v1300_v52 = vld [vmem:[#allocation10 + $0x568] sm:$0xff]  ;;  %v8382_v54 = vcombine.low %v1308_v31, %v1316_v32  ;;  %v8305_v31 = vcombine.high %v1229_v16, %v1237_v18  ;;  %v1213_v32 = vld [vmem:[#allocation10 + $0x2b0] sm:$0xff] }
 0x3e4   :  { %4745 = vmatpush1.bf16.msra.mxu0 %v8478_v55  ;;  %4705 = vmatprep.subr.bf16.mxu1 %v8207_v57  ;;  %v1548_v15 = vld [vmem:[#allocation10 + $0xd28] sm:$0xff]  ;;  %v8638_v55 = vcombine.low %v1564_v33, %v1572_v34  ;;  %v8367_v57 = vcombine.high %v1292_v50, %v1300_v52  ;;  %v1221_v33 = vld [vmem:[#allocation10 + $0x2f0] sm:$0xff] }
 0x3e5   :  { %4746 = vmatprep.subr.bf16.mxu0 %v8463_v58  ;;  %v1556_v53 = vld [vmem:[#allocation10 + $0xd68] sm:$0xff] }
 0x3e6   :  { %v8623_v58 = vcombine.high %v1548_v15, %v1556_v53  ;;  %v1276_v24 = vld [vmem:[#allocation10 + $0x4a8] sm:$0xff] }
 0x3e7   :  { %4706 = vmatpush1.bf16.msra.mxu1 %v8206_v42  ;;  %v1284_v38 = vld [vmem:[#allocation10 + $0x4e8] sm:$0xff]  ;;  %v8366_v42 = vcombine.low %v1292_v50, %v1300_v52  ;;  %v8304_v52 = vcombine.low %v1229_v16, %v1237_v18  ;;  %v1429_v16 = vld [vmem:[#allocation10 + $0x970] sm:$0xff] }
 0x3e8   :  { %4747 = vmatpush1.bf16.msra.mxu0 %v8462_v60  ;;  %4707 = vmatprep.subr.bf16.mxu1 %v8447_v61  ;;  %v1532_v39 = vld [vmem:[#allocation10 + $0xca8] sm:$0xff]  ;;  %v8622_v60 = vcombine.low %v1548_v15, %v1556_v53  ;;  %v8351_v61 = vcombine.high %v1276_v24, %v1284_v38  ;;  %v8289_v53 = vcombine.high %v1213_v32, %v1221_v33 }
 0x3e9   :  { %4748 = vmatprep.subr.bf16.mxu0 %v8703_v62  ;;  %v1540_v41 = vld [vmem:[#allocation10 + $0xce8] sm:$0xff] }
 0x3ea   :  { %v8607_v62 = vcombine.high %v1532_v39, %v1540_v41  ;;  %v1260_v63 = vld [vmem:[#allocation10 + $0x428] sm:$0xff] }
 0x3eb   :  { %4708 = vmatpush2.bf16.msra.mxu1 %v8446_v40  ;;  %v1268_v1 = vld [vmem:[#allocation10 + $0x468] sm:$0xff]  ;;  %v8350_v40 = vcombine.low %v1276_v24, %v1284_v38  ;;  %v1197_v24 = vld [vmem:[#allocation10 + $0x230] sm:$0xff] }
 0x3ec   :  { %4749 = vmatpush2.bf16.msra.mxu0 %v8702_v44  ;;  %4709 = vmatprep.subr.bf16.mxu1 %v8431_v46  ;;  %v1516_v2 = vld [vmem:[#allocation10 + $0xc28] sm:$0xff]  ;;  %v8606_v44 = vcombine.low %v1532_v39, %v1540_v41  ;;  %v8335_v46 = vcombine.high %v1260_v63, %v1268_v1  ;;  %v1205_v38 = vld [vmem:[#allocation10 + $0x270] sm:$0xff] }
 0x3ed   :  { %4750 = vmatprep.subr.bf16.mxu0 %v8687_v47  ;;  %v1524_v4 = vld [vmem:[#allocation10 + $0xc68] sm:$0xff]  ;;  %v1453_v41 = vld [vmem:[#allocation10 + $0xa30] sm:$0xff] }
 0x3ee   :  { %v8591_v47 = vcombine.high %v1516_v2, %v1524_v4 }
 0x3ef   :  { %4710 = vmatpush2.bf16.msra.mxu1 %v8430_v9  ;;  %v8334_v9 = vcombine.low %v1260_v63, %v1268_v1 }
 0x3f0   :  { %4751 = vmatpush2.bf16.msra.mxu0 %v8686_v11  ;;  %4711 = vmatprep.subr.bf16.mxu1 %v8415_v12  ;;  %v8590_v11 = vcombine.low %v1516_v2, %v1524_v4  ;;  %v8321_v12 = vcombine.high %v1245_v48, %v1253_v6  ;;  %v8273_v2 = vcombine.high %v1197_v24, %v1205_v38  ;;  %v1445_v48 = vld [vmem:[#allocation10 + $0x9f0] sm:$0xff] }
 0x3f1   :  { %4752 = vmatprep.subr.bf16.mxu0 %v8671_v13  ;;  %v8577_v13 = vcombine.high %v1501_v7, %v1509_v8  ;;  %v8272_v6 = vcombine.low %v1197_v24, %v1205_v38  ;;  %v1637_v24 = vld [vmem:[#allocation10 + $0xff0] sm:$0xff] }
 0x3f3   :  { %4712 = vmatpush2.bf16.msra.mxu1 %v8414_v27  ;;  %v1485_v27 = vld [vmem:[#allocation10 + $0xb30] sm:$0xff] }
 0x3f4   :  { %4753 = vmatpush2.bf16.msra.mxu0 %v8670_v28  ;;  %4713 = vmatprep.subr.bf16.mxu1 %v8399_v29  ;;  %v1493_v28 = vld [vmem:[#allocation10 + $0xb70] sm:$0xff]  ;;  %v8576_v29 = vcombine.low %v1501_v7, %v1509_v8 }
 0x3f5   :  { %4754 = vmatprep.subr.bf16.mxu0 %v8655_v30  ;;  %v1664_v30 = vrot.slane %v10403_v51, %v10355_v5  ;;  %v8560_v51 = vcombine.low %v1485_v27, %v1493_v28 }
 0x3f7   :  { %4714 = vmatpush2.bf16.msra.mxu1 %v8398_v35  ;;  %v8561_v35 = vcombine.high %v1485_v27, %v1493_v28  ;;  %v1149_v28 = vld [vmem:[#allocation10 + $0xb0] sm:$0xff] }
 0x3f8   :  { %4755 = vmatpush2.bf16.msra.mxu0 %v8654_v14  ;;  %4715 = vmatprep.subr.bf16.mxu1 %v8383_v45  ;;  %v1469_v14 = vld [vmem:[#allocation10 + $0xab0] sm:$0xff] }
 0x3f9   :  { %4756 = vmatprep.subr.bf16.mxu0 %v8639_v49  ;;  %v1477_v45 = vld [vmem:[#allocation10 + $0xaf0] sm:$0xff] }
 0x3fa   :  { %v8544_v1 = vcombine.low %v1469_v14, %v1477_v45 }
 0x3fb   :  { %4716 = vmatpush2.bf16.msra.mxu1 %v8382_v54 }
 0x3fc   :  { %4757 = vmatpush2.bf16.msra.mxu0 %v8638_v55  ;;  %4717 = vmatprep.subr.bf16.mxu1 %v8367_v57 }
 0x3fd   :  { %4758 = vmatprep.subr.bf16.mxu0 %v8623_v58  ;;  %v8545_v58 = vcombine.high %v1469_v14, %v1477_v45  ;;  %v1133_v14 = vld [vmem:[#allocation10 + $0x30] sm:$0xff] }
 0x3fe   :  { %v1141_v45 = vld [vmem:[#allocation10 + $0x70] sm:$0xff] }
 0x3ff   :  { %4718 = vmatpush2.bf16.msra.mxu1 %v8366_v42  ;;  %v1461_v42 = vld [vmem:[#allocation10 + $0xa70] sm:$0xff]  ;;  %v8208_v38 = vcombine.low %v1133_v14, %v1141_v45 }
 0x400   :  { %4759 = vmatpush2.bf16.msra.mxu0 %v8622_v60  ;;  %4719 = vmatprep.subr.bf16.mxu1 %v8351_v61  ;;  %v8528_v7 = vcombine.low %v1453_v41, %v1461_v42 }
 0x401   :  { %4760 = vmatprep.subr.bf16.mxu0 %v8607_v62  ;;  %v8288_v62 = vcombine.low %v1213_v32, %v1221_v33 }
 0x403   :  { %4720 = vmatpush2.bf16.msra.mxu1 %v8350_v40  ;;  %v8529_v40 = vcombine.high %v1453_v41, %v1461_v42 }
 0x404   :  { %4761 = vmatpush2.bf16.msra.mxu0 %v8606_v44  ;;  %4721 = vmatprep.subr.bf16.mxu1 %v8335_v46  ;;  %v1181_v44 = vld [vmem:[#allocation10 + $0x1b0] sm:$0xff] }
 0x405   :  { %4762 = vmatprep.subr.bf16.mxu0 %v8591_v47  ;;  %v1189_v46 = vld [vmem:[#allocation10 + $0x1f0] sm:$0xff] }
 0x406   :  { %v1437_v47 = vld [vmem:[#allocation10 + $0x9b0] sm:$0xff]  ;;  %v8257_v8 = vcombine.high %v1181_v44, %v1189_v46  ;;  %v8256_v18 = vcombine.low %v1181_v44, %v1189_v46 }
 0x407   :  { %4722 = vmatpush2.bf16.msra.mxu1 %v8334_v9  ;;  %v8513_v9 = vcombine.high %v1437_v47, %v1445_v48  ;;  %v1341_v46 = vld [vmem:[#allocation10 + $0x6b0] sm:$0xff] }
 0x408   :  { %4763 = vmatpush2.bf16.msra.mxu0 %v8590_v11  ;;  %4773 = vmatprep.subr.bf16.mxu1 %v8321_v12  ;;  %v1165_v11 = vld [vmem:[#allocation10 + $0x130] sm:$0xff] }
 0x409   :  { %4814 = vmatprep.subr.bf16.mxu0 %v8577_v13  ;;  %v1173_v12 = vld [vmem:[#allocation10 + $0x170] sm:$0xff] }
 0x40a   :  { %v4479_v34 = vpop.f32.mrf.mxu1  ;;  %4724 = vmatmul.mubr.bf16.vlgmr.msra.gmra.mxu1 %v10377_v22  ;;  %v1421_v13 = vld [vmem:[#allocation10 + $0x930] sm:$0xff]  ;;  %v8240_v32 = vcombine.low %v1165_v11, %v1173_v12 }
 0x40b   :  { %v4480_v49 = vadd.f32 %v4479_v34, %v1660_v21  ;;  %v4520_v50 = vpop.f32.mrf.mxu0  ;;  %4765 = vmatmul.mubr.bf16.vlgmr.msra.gmra.mxu0 %v10381_v36  ;;  %4774 = vmatpush1.bf16.msra.mxu1 %v8320_v25  ;;  %v8512_v21 = vcombine.low %v1437_v47, %v1445_v48  ;;  %v8241_v25 = vcombine.high %v1165_v11, %v1173_v12  ;;  %v1349_v47 = vld [vmem:[#allocation10 + $0x6f0] sm:$0xff] }
 0x40c   :  { %4805 = vmatprep.mubr.bf16.mxu1 %v10375_v56  ;;  %4815 = vmatpush1.bf16.msra.mxu0 %v8576_v29  ;;  %v4481_v15 = vpop.f32.mrf.mxu1  ;;  %v8497_v27 = vcombine.high %v1421_v13, %v1429_v16  ;;  %v1157_v29 = vld [vmem:[#allocation10 + $0xf0] sm:$0xff]  ;;  %v8496_v33 = vcombine.low %v1421_v13, %v1429_v16 }
 0x40d   :  { %v10442_v54 = vadd.f32 %v4520_v50, %v4480_v49  ;;  %4846 = vmatprep.mubr.bf16.mxu0 %v10379_v59  ;;  %v4482_v55 = vadd.f32 %v4481_v15, %v1664_v30  ;;  %v4522_v57 = vpop.f32.mrf.mxu0  ;;  %4775 = vmatprep.subr.bf16.mxu1 %v8305_v31  ;;  %v1405_v30 = vld [vmem:[#allocation10 + $0x8b0] sm:$0xff]  ;;  %v8225_v34 = vcombine.high %v1149_v28, %v1157_v29 }
 0x40e   :  { %v4483_v39 = vpop.f32.mrf.mxu1  ;;  %4816 = vmatprep.subr.bf16.mxu0 %v8561_v35  ;;  %v1413_v31 = vld [vmem:[#allocation10 + $0x8f0] sm:$0xff] }
 0x40f   :  { %v10445_v60 = vadd.f32 %v4522_v57, %v4482_v55  ;;  %v4524_v61 = vpop.f32.mrf.mxu0  ;;  %4776 = vmatpush1.bf16.msra.mxu1 %v8304_v52  ;;  %v8481_v35 = vcombine.high %v1405_v30, %v1413_v31  ;;  %v1389_v49 = vld [vmem:[#allocation10 + $0x830] sm:$0xff]  ;;  %v8224_v52 = vcombine.low %v1149_v28, %v1157_v29  ;;  %v8480_v15 = vcombine.low %v1405_v30, %v1413_v31 }
 0x410   :  { %4817 = vmatpush1.bf16.msra.mxu0 %v8560_v51  ;;  %v4484_v63 = vpop.f32.mrf.mxu1  ;;  %4777 = vmatprep.subr.bf16.mxu1 %v8289_v53  ;;  %v1397_v50 = vld [vmem:[#allocation10 + $0x870] sm:$0xff]  ;;  %v8209_v51 = vcombine.high %v1133_v14, %v1141_v45 }
 0x411   :  { %v4525_v4 = vpop.f32.mrf.mxu0  ;;  %4818 = vmatprep.subr.bf16.mxu0 %v8545_v58  ;;  %v8465_v53 = vcombine.high %v1389_v49, %v1397_v50  ;;  %v1373_v55 = vld [vmem:[#allocation10 + $0x7b0] sm:$0xff]  ;;  %v8464_v39 = vcombine.low %v1389_v49, %v1397_v50 }
 0x412   :  { %v1381_v57 = vld [vmem:[#allocation10 + $0x7f0] sm:$0xff] }
 0x413   :  { %4778 = vmatpush1.bf16.msra.mxu1 %v8288_v62  ;;  %v1629_v58 = vld [vmem:[#allocation10 + $0xfb0] sm:$0xff]  ;;  %v8449_v41 = vcombine.high %v1373_v55, %v1381_v57 }
 0x414   :  { %4819 = vmatpush1.bf16.msra.mxu0 %v8544_v1  ;;  %4779 = vmatprep.subr.bf16.mxu1 %v8273_v2  ;;  %v8705_v42 = vcombine.high %v1629_v58, %v1637_v24  ;;  %v1357_v61 = vld [vmem:[#allocation10 + $0x730] sm:$0xff]  ;;  %v8448_v2 = vcombine.low %v1373_v55, %v1381_v57  ;;  %v8704_v4 = vcombine.low %v1629_v58, %v1637_v24 }
 0x415   :  { %4820 = vmatprep.subr.bf16.mxu0 %v8529_v40  ;;  %v1365_v62 = vld [vmem:[#allocation10 + $0x770] sm:$0xff] }
 0x416   :  { %v1613_v63 = vld [vmem:[#allocation10 + $0xf30] sm:$0xff]  ;;  %v8433_v40 = vcombine.high %v1357_v61, %v1365_v62 }
 0x417   :  { %4780 = vmatpush1.bf16.msra.mxu1 %v8272_v6  ;;  %v1621_v1 = vld [vmem:[#allocation10 + $0xf70] sm:$0xff] }
 0x418   :  { %4821 = vmatpush1.bf16.msra.mxu0 %v8528_v7  ;;  %4781 = vmatprep.subr.bf16.mxu1 %v8257_v8  ;;  %v8689_v44 = vcombine.high %v1613_v63, %v1621_v1  ;;  %v1597_v48 = vld [vmem:[#allocation10 + $0xeb0] sm:$0xff]  ;;  %v8432_v7 = vcombine.low %v1357_v61, %v1365_v62  ;;  %v8688_v8 = vcombine.low %v1613_v63, %v1621_v1 }
 0x419   :  { %4822 = vmatprep.subr.bf16.mxu0 %v8513_v9  ;;  %v1605_v6 = vld [vmem:[#allocation10 + $0xef0] sm:$0xff]  ;;  %v8417_v9 = vcombine.high %v1341_v46, %v1349_v47 }
 0x41a   :  { %v8673_v11 = vcombine.high %v1597_v48, %v1605_v6  ;;  %v1325_v12 = vld [vmem:[#allocation10 + $0x630] sm:$0xff] }
 0x41b   :  { %4782 = vmatpush1.bf16.msra.mxu1 %v8256_v18  ;;  %v1333_v13 = vld [vmem:[#allocation10 + $0x670] sm:$0xff] }
 0x41c   :  { %4823 = vmatpush1.bf16.msra.mxu0 %v8512_v21  ;;  %4783 = vmatprep.subr.bf16.mxu1 %v8241_v25  ;;  %v1581_v16 = vld [vmem:[#allocation10 + $0xe30] sm:$0xff]  ;;  %v8416_v21 = vcombine.low %v1341_v46, %v1349_v47  ;;  %v8672_v25 = vcombine.low %v1597_v48, %v1605_v6  ;;  %v1246_v47 = vld [vmem:[#allocation10 + $0x3b8] sm:$0xff] }
 0x41d   :  { %4824 = vmatprep.subr.bf16.mxu0 %v8497_v27  ;;  %v1589_v18 = vld [vmem:[#allocation10 + $0xe70] sm:$0xff]  ;;  %v8401_v27 = vcombine.high %v1325_v12, %v1333_v13  ;;  %v1254_v48 = vld [vmem:[#allocation10 + $0x3f8] sm:$0xff] }
 0x41e   :  { %v8657_v28 = vcombine.high %v1581_v16, %v1589_v18  ;;  %v1309_v29 = vld [vmem:[#allocation10 + $0x5b0] sm:$0xff]  ;;  %v1502_v6 = vld [vmem:[#allocation10 + $0xbb8] sm:$0xff] }
 0x41f   :  { %4784 = vmatpush1.bf16.msra.mxu1 %v8240_v32  ;;  %v1317_v30 = vld [vmem:[#allocation10 + $0x5f0] sm:$0xff] }
 0x420   :  { %4825 = vmatpush1.bf16.msra.mxu0 %v8496_v33  ;;  %4785 = vmatprep.subr.bf16.mxu1 %v8225_v34  ;;  %v1565_v31 = vld [vmem:[#allocation10 + $0xdb0] sm:$0xff]  ;;  %v8400_v33 = vcombine.low %v1325_v12, %v1333_v13  ;;  %v8656_v34 = vcombine.low %v1581_v16, %v1589_v18  ;;  %v8323_v12 = vcombine.high %v1246_v47, %v1254_v48  ;;  %v10451_v16 = vsub.s32 7, %v10304_v19  ;;  %v1230_v18 = vld [vmem:[#allocation10 + $0x338] sm:$0xff] }
 0x421   :  { %4826 = vmatprep.subr.bf16.mxu0 %v8481_v35  ;;  %v1573_v32 = vld [vmem:[#allocation10 + $0xdf0] sm:$0xff]  ;;  %v8385_v35 = vcombine.high %v1309_v29, %v1317_v30 }
 0x422   :  { %v8641_v14 = vcombine.high %v1565_v31, %v1573_v32  ;;  %v1293_v45 = vld [vmem:[#allocation10 + $0x530] sm:$0xff] }
 0x423   :  { %4786 = vmatpush1.bf16.msra.mxu1 %v8224_v52  ;;  %v1301_v49 = vld [vmem:[#allocation10 + $0x570] sm:$0xff] }
 0x424   :  { %4827 = vmatpush1.bf16.msra.mxu0 %v8480_v15  ;;  %4787 = vmatprep.subr.bf16.mxu1 %v8209_v51  ;;  %v1549_v50 = vld [vmem:[#allocation10 + $0xd30] sm:$0xff]  ;;  %v8384_v15 = vcombine.low %v1309_v29, %v1317_v30  ;;  %v8640_v51 = vcombine.low %v1565_v31, %v1573_v32  ;;  %v1486_v29 = vld [vmem:[#allocation10 + $0xb38] sm:$0xff] }
 0x425   :  { %4828 = vmatprep.subr.bf16.mxu0 %v8465_v53  ;;  %v1557_v52 = vld [vmem:[#allocation10 + $0xd70] sm:$0xff]  ;;  %v8369_v53 = vcombine.high %v1293_v45, %v1301_v49  ;;  %v1494_v30 = vld [vmem:[#allocation10 + $0xb78] sm:$0xff] }
 0x426   :  { %v8625_v55 = vcombine.high %v1549_v50, %v1557_v52  ;;  %v1277_v57 = vld [vmem:[#allocation10 + $0x4b0] sm:$0xff] }
 0x427   :  { %4788 = vmatpush1.bf16.msra.mxu1 %v8208_v38  ;;  %v1285_v58 = vld [vmem:[#allocation10 + $0x4f0] sm:$0xff] }
 0x428   :  { %4829 = vmatpush1.bf16.msra.mxu0 %v8464_v39  ;;  %4789 = vmatprep.subr.bf16.mxu1 %v8449_v41  ;;  %v1533_v24 = vld [vmem:[#allocation10 + $0xcb0] sm:$0xff]  ;;  %v8368_v39 = vcombine.low %v1293_v45, %v1301_v49  ;;  %v8624_v41 = vcombine.low %v1549_v50, %v1557_v52  ;;  %v1470_v45 = vld [vmem:[#allocation10 + $0xab8] sm:$0xff] }
 0x429   :  { %4830 = vmatprep.subr.bf16.mxu0 %v8705_v42  ;;  %v1541_v38 = vld [vmem:[#allocation10 + $0xcf0] sm:$0xff]  ;;  %v8353_v42 = vcombine.high %v1277_v57, %v1285_v58  ;;  %v1478_v49 = vld [vmem:[#allocation10 + $0xaf8] sm:$0xff] }
 0x42a   :  { %v8609_v61 = vcombine.high %v1533_v24, %v1541_v38  ;;  %v1261_v62 = vld [vmem:[#allocation10 + $0x430] sm:$0xff] }
 0x42b   :  { %4790 = vmatpush2.bf16.msra.mxu1 %v8448_v2  ;;  %v1269_v63 = vld [vmem:[#allocation10 + $0x470] sm:$0xff] }
 0x42c   :  { %4831 = vmatpush2.bf16.msra.mxu0 %v8704_v4  ;;  %4791 = vmatprep.subr.bf16.mxu1 %v8433_v40  ;;  %v1517_v1 = vld [vmem:[#allocation10 + $0xc30] sm:$0xff]  ;;  %v8352_v4 = vcombine.low %v1277_v57, %v1285_v58  ;;  %v8608_v40 = vcombine.low %v1533_v24, %v1541_v38  ;;  %v8547_v38 = vcombine.high %v1470_v45, %v1478_v49 }
 0x42d   :  { %4832 = vmatprep.subr.bf16.mxu0 %v8689_v44  ;;  %v1525_v2 = vld [vmem:[#allocation10 + $0xc70] sm:$0xff]  ;;  %v8337_v44 = vcombine.high %v1261_v62, %v1269_v63 }
 0x42e   :  { %v8593_v46 = vcombine.high %v1517_v1, %v1525_v2 }
 0x42f   :  { %4792 = vmatpush2.bf16.msra.mxu1 %v8432_v7  ;;  %v1510_v7 = vld [vmem:[#allocation10 + $0xbf8] sm:$0xff] }
 0x430   :  { %4833 = vmatpush2.bf16.msra.mxu0 %v8688_v8  ;;  %4793 = vmatprep.subr.bf16.mxu1 %v8417_v9  ;;  %v8336_v8 = vcombine.low %v1261_v62, %v1269_v63  ;;  %v10448_v9 = vsub.s32 6, %v10304_v19  ;;  %v8579_v13 = vcombine.high %v1502_v6, %v1510_v7  ;;  %v8578_v31 = vcombine.low %v1502_v6, %v1510_v7  ;;  %v1462_v62 = vld [vmem:[#allocation10 + $0xa78] sm:$0xff] }
 0x431   :  { %4834 = vmatprep.subr.bf16.mxu0 %v8673_v11  ;;  %v8592_v11 = vcombine.low %v1517_v1, %v1525_v2  ;;  %v1446_v6 = vld [vmem:[#allocation10 + $0x9f8] sm:$0xff] }
 0x433   :  { %4794 = vmatpush2.bf16.msra.mxu1 %v8416_v21  ;;  %v1238_v21 = vld [vmem:[#allocation10 + $0x378] sm:$0xff] }
 0x434   :  { %4835 = vmatpush2.bf16.msra.mxu0 %v8672_v25  ;;  %4795 = vmatprep.subr.bf16.mxu1 %v8401_v27  ;;  %v9875_v25 = vld [vmem:[#allocation20] sm:$0xff] }
 0x435   :  { %4836 = vmatprep.subr.bf16.mxu0 %v8657_v28  ;;  %v1668_v27 = vrot.slane %v9875_v25, %v10448_v9  ;;  %v8322_v28 = vcombine.low %v1246_v47, %v1254_v48  ;;  %v1672_v32 = vrot.slane %v9875_v25, %v10451_v16  ;;  %v1190_v47 = vld [vmem:[#allocation10 + $0x1f8] sm:$0xff] }
 0x436   :  { %v1438_v48 = vld [vmem:[#allocation10 + $0x9b8] sm:$0xff] }
 0x437   :  { %4796 = vmatpush2.bf16.msra.mxu1 %v8400_v33  ;;  %v8307_v33 = vcombine.high %v1230_v18, %v1238_v21  ;;  %v1430_v25 = vld [vmem:[#allocation10 + $0x978] sm:$0xff] }
 0x438   :  { %4837 = vmatpush2.bf16.msra.mxu0 %v8656_v34  ;;  %4797 = vmatprep.subr.bf16.mxu1 %v8385_v35  ;;  %v1214_v34 = vld [vmem:[#allocation10 + $0x2b8] sm:$0xff] }
 0x439   :  { %4838 = vmatprep.subr.bf16.mxu0 %v8641_v14  ;;  %v1222_v35 = vld [vmem:[#allocation10 + $0x2f8] sm:$0xff]  ;;  %v8563_v14 = vcombine.high %v1486_v29, %v1494_v30 }
 0x43a   :  { %v8290_v1 = vcombine.low %v1214_v34, %v1222_v35 }
 0x43b   :  { %4798 = vmatpush2.bf16.msra.mxu1 %v8384_v15  ;;  %v8306_v15 = vcombine.low %v1230_v18, %v1238_v21  ;;  %v1174_v18 = vld [vmem:[#allocation10 + $0x178] sm:$0xff] }
 0x43c   :  { %4839 = vmatpush2.bf16.msra.mxu0 %v8640_v51  ;;  %4799 = vmatprep.subr.bf16.mxu1 %v8369_v53  ;;  %v8562_v53 = vcombine.low %v1486_v29, %v1494_v30  ;;  %v1422_v21 = vld [vmem:[#allocation10 + $0x938] sm:$0xff] }
 0x43d   :  { %4840 = vmatprep.subr.bf16.mxu0 %v8625_v55  ;;  %v8291_v55 = vcombine.high %v1214_v34, %v1222_v35  ;;  %v8499_v30 = vcombine.high %v1422_v21, %v1430_v25  ;;  %v1414_v34 = vld [vmem:[#allocation10 + $0x8f8] sm:$0xff] }
 0x43f   :  { %4800 = vmatpush2.bf16.msra.mxu1 %v8368_v39  ;;  %v1198_v39 = vld [vmem:[#allocation10 + $0x238] sm:$0xff] }
 0x440   :  { %4841 = vmatpush2.bf16.msra.mxu0 %v8624_v41  ;;  %4801 = vmatprep.subr.bf16.mxu1 %v8353_v42  ;;  %v1206_v41 = vld [vmem:[#allocation10 + $0x278] sm:$0xff] }
 0x441   :  { %4842 = vmatprep.subr.bf16.mxu0 %v8609_v61  ;;  %v1454_v61 = vld [vmem:[#allocation10 + $0xa38] sm:$0xff]  ;;  %v8274_v7 = vcombine.low %v1198_v39, %v1206_v41 }
 0x443   :  { %4802 = vmatpush2.bf16.msra.mxu1 %v8352_v4  ;;  %v8546_v4 = vcombine.low %v1470_v45, %v1478_v49  ;;  %v1134_v49 = vld [vmem:[#allocation10 + $0x38] sm:$0xff] }
 0x444   :  { %4843 = vmatpush2.bf16.msra.mxu0 %v8608_v40  ;;  %4803 = vmatprep.subr.bf16.mxu1 %v8337_v44  ;;  %v8531_v44 = vcombine.high %v1454_v61, %v1462_v62 }
 0x445   :  { %4844 = vmatprep.subr.bf16.mxu0 %v8593_v46  ;;  %v1182_v46 = vld [vmem:[#allocation10 + $0x1b8] sm:$0xff] }
 0x447   :  { %4804 = vmatpush2.bf16.msra.mxu1 %v8336_v8  ;;  %v8530_v8 = vcombine.low %v1454_v61, %v1462_v62 }
 0x448   :  { %4845 = vmatpush2.bf16.msra.mxu0 %v8592_v11  ;;  %4855 = vmatprep.subr.bf16.mxu1 %v8323_v12  ;;  %v8259_v11 = vcombine.high %v1182_v46, %v1190_v47  ;;  %v8515_v12 = vcombine.high %v1438_v48, %v1446_v6 }
 0x449   :  { %4896 = vmatprep.subr.bf16.mxu0 %v8579_v13  ;;  %v1166_v13 = vld [vmem:[#allocation10 + $0x138] sm:$0xff] }
 0x44a   :  { %v4561_v19 = vpop.f32.mrf.mxu1  ;;  %4806 = vmatmul.mubr.bf16.vlgmr.msra.gmra.mxu1 %v10377_v22  ;;  %v8243_v29 = vcombine.high %v1166_v13, %v1174_v18  ;;  %v8242_v35 = vcombine.low %v1166_v13, %v1174_v18 }
 0x44b   :  { %v4562_v50 = vadd.f32 %v4561_v19, %v1668_v27  ;;  %v4602_v52 = vpop.f32.mrf.mxu0  ;;  %4847 = vmatmul.mubr.bf16.vlgmr.msra.gmra.mxu0 %v10381_v36  ;;  %4856 = vmatpush1.bf16.msra.mxu1 %v8322_v28  ;;  %v8258_v27 = vcombine.low %v1182_v46, %v1190_v47  ;;  %v8514_v28 = vcombine.low %v1438_v48, %v1446_v6  ;;  %v1342_v48 = vld [vmem:[#allocation10 + $0x6b8] sm:$0xff] }
 0x44c   :  { %4887 = vmatprep.mubr.bf16.mxu1 %v10375_v56  ;;  %4897 = vmatpush1.bf16.msra.mxu0 %v8578_v31  ;;  %v4563_v51 = vpop.f32.mrf.mxu1  ;;  %v1150_v31 = vld [vmem:[#allocation10 + $0xb8] sm:$0xff]  ;;  %v8498_v19 = vcombine.low %v1422_v21, %v1430_v25 }
 0x44d   :  { %v10458_v57 = vadd.f32 %v4602_v52, %v4562_v50  ;;  %4928 = vmatprep.mubr.bf16.mxu0 %v10379_v59  ;;  %v4564_v58 = vadd.f32 %v4563_v51, %v1672_v32  ;;  %v4604_v24 = vpop.f32.mrf.mxu0  ;;  %4857 = vmatprep.subr.bf16.mxu1 %v8307_v33  ;;  %v8275_v59 = vcombine.high %v1198_v39, %v1206_v41  ;;  %v1158_v32 = vld [vmem:[#allocation10 + $0xf8] sm:$0xff] }
 0x44e   :  { %v4565_v42 = vpop.f32.mrf.mxu1  ;;  %4898 = vmatprep.subr.bf16.mxu0 %v8563_v14  ;;  %v1406_v33 = vld [vmem:[#allocation10 + $0x8b8] sm:$0xff]  ;;  %v8227_v14 = vcombine.high %v1150_v31, %v1158_v32  ;;  %v8226_v51 = vcombine.low %v1150_v31, %v1158_v32 }
 0x44f   :  { %v10461_v63 = vadd.f32 %v4604_v24, %v4564_v58  ;;  %v4606_v56 = vpop.f32.mrf.mxu0  ;;  %4858 = vmatpush1.bf16.msra.mxu1 %v8306_v15  ;;  %v8483_v45 = vcombine.high %v1406_v33, %v1414_v34  ;;  %v1142_v50 = vld [vmem:[#allocation10 + $0x78] sm:$0xff] }
 0x450   :  { %4899 = vmatpush1.bf16.msra.mxu0 %v8562_v53  ;;  %v4566_v2 = vpop.f32.mrf.mxu1  ;;  %4859 = vmatprep.subr.bf16.mxu1 %v8291_v55  ;;  %v1390_v52 = vld [vmem:[#allocation10 + $0x838] sm:$0xff]  ;;  %v8482_v53 = vcombine.low %v1406_v33, %v1414_v34  ;;  %v8211_v55 = vcombine.high %v1134_v49, %v1142_v50  ;;  %v8210_v42 = vcombine.low %v1134_v49, %v1142_v50 }
 0x451   :  { %v4607_v40 = vpop.f32.mrf.mxu0  ;;  %4900 = vmatprep.subr.bf16.mxu0 %v8547_v38  ;;  %v1398_v15 = vld [vmem:[#allocation10 + $0x878] sm:$0xff] }
 0x452   :  { %v8467_v58 = vcombine.high %v1390_v52, %v1398_v15  ;;  %v1374_v24 = vld [vmem:[#allocation10 + $0x7b8] sm:$0xff]  ;;  %v8466_v61 = vcombine.low %v1390_v52, %v1398_v15 }
 0x453   :  { %4860 = vmatpush1.bf16.msra.mxu1 %v8290_v1  ;;  %v1382_v38 = vld [vmem:[#allocation10 + $0x7f8] sm:$0xff] }
 0x454   :  { %4901 = vmatpush1.bf16.msra.mxu0 %v8546_v4  ;;  %4861 = vmatprep.subr.bf16.mxu1 %v8275_v59  ;;  %v1630_v39 = vld [vmem:[#allocation10 + $0xfb8] sm:$0xff]  ;;  %v8451_v62 = vcombine.high %v1374_v24, %v1382_v38  ;;  %v8450_v40 = vcombine.low %v1374_v24, %v1382_v38 }
 0x455   :  { %4902 = vmatprep.subr.bf16.mxu0 %v8531_v44  ;;  %v1638_v41 = vld [vmem:[#allocation10 + $0xff8] sm:$0xff] }
 0x456   :  { %v8707_v56 = vcombine.high %v1630_v39, %v1638_v41  ;;  %v1358_v1 = vld [vmem:[#allocation10 + $0x738] sm:$0xff]  ;;  %v8706_v44 = vcombine.low %v1630_v39, %v1638_v41 }
 0x457   :  { %4862 = vmatpush1.bf16.msra.mxu1 %v8274_v7  ;;  %v1366_v2 = vld [vmem:[#allocation10 + $0x778] sm:$0xff] }
 0x458   :  { %4903 = vmatpush1.bf16.msra.mxu0 %v8530_v8  ;;  %4863 = vmatprep.subr.bf16.mxu1 %v8259_v11  ;;  %v1614_v4 = vld [vmem:[#allocation10 + $0xf38] sm:$0xff]  ;;  %v8435_v46 = vcombine.high %v1358_v1, %v1366_v2  ;;  %v8434_v11 = vcombine.low %v1358_v1, %v1366_v2 }
 0x459   :  { %4904 = vmatprep.subr.bf16.mxu0 %v8515_v12  ;;  %v1622_v59 = vld [vmem:[#allocation10 + $0xf78] sm:$0xff] }
 0x45a   :  { %v8691_v47 = vcombine.high %v1614_v4, %v1622_v59  ;;  %v1350_v6 = vld [vmem:[#allocation10 + $0x6f8] sm:$0xff]  ;;  %v8690_v12 = vcombine.low %v1614_v4, %v1622_v59 }
 0x45b   :  { %4864 = vmatpush1.bf16.msra.mxu1 %v8258_v27  ;;  %v1598_v7 = vld [vmem:[#allocation10 + $0xeb8] sm:$0xff]  ;;  %v8419_v13 = vcombine.high %v1342_v48, %v1350_v6 }
 0x45c   :  { %4905 = vmatpush1.bf16.msra.mxu0 %v8514_v28  ;;  %4865 = vmatprep.subr.bf16.mxu1 %v8243_v29  ;;  %v1606_v8 = vld [vmem:[#allocation10 + $0xef8] sm:$0xff]  ;;  %v8418_v29 = vcombine.low %v1342_v48, %v1350_v6 }
 0x45d   :  { %4906 = vmatprep.subr.bf16.mxu0 %v8499_v30  ;;  %v8675_v18 = vcombine.high %v1598_v7, %v1606_v8  ;;  %v1326_v21 = vld [vmem:[#allocation10 + $0x638] sm:$0xff]  ;;  %v8674_v30 = vcombine.low %v1598_v7, %v1606_v8 }
 0x45e   :  { %v1334_v25 = vld [vmem:[#allocation10 + $0x678] sm:$0xff] }
 0x45f   :  { %4866 = vmatpush1.bf16.msra.mxu1 %v8242_v35  ;;  %v1582_v27 = vld [vmem:[#allocation10 + $0xe38] sm:$0xff]  ;;  %v8403_v31 = vcombine.high %v1326_v21, %v1334_v25 }
 0x460   :  { %4907 = vmatpush1.bf16.msra.mxu0 %v8498_v19  ;;  %4867 = vmatprep.subr.bf16.mxu1 %v8227_v14  ;;  %v1590_v28 = vld [vmem:[#allocation10 + $0xe78] sm:$0xff]  ;;  %v8402_v14 = vcombine.low %v1326_v21, %v1334_v25  ;;  %v9260_v21 = vld [vmem:[#allocation11 + $0xc4] ss:$16 sps:$4 sm:$0xff]   ;;  %v9282_v25 = vld [vmem:[#allocation11 + $0x2e0] ss:$16 sps:$4 sm:$0xff]  }
 0x461   :  { %4908 = vmatprep.subr.bf16.mxu0 %v8483_v45  ;;  %v8659_v32 = vcombine.high %v1582_v27, %v1590_v28  ;;  %v1310_v33 = vld [vmem:[#allocation10 + $0x5b8] sm:$0xff]  ;;  %v8658_v45 = vcombine.low %v1582_v27, %v1590_v28  ;;  %v9290_v28 = vld [vmem:[#allocation11 + $0x2c4] ss:$16 sps:$4 sm:$0xff]  }
 0x462   :  { %v1318_v34 = vld [vmem:[#allocation10 + $0x5f8] sm:$0xff] }
 0x463   :  { %4868 = vmatpush1.bf16.msra.mxu1 %v8226_v51  ;;  %v1566_v35 = vld [vmem:[#allocation10 + $0xdb8] sm:$0xff]  ;;  %v8387_v49 = vcombine.high %v1310_v33, %v1318_v34 }
 0x464   :  { %4909 = vmatpush1.bf16.msra.mxu0 %v8482_v53  ;;  %4869 = vmatprep.subr.bf16.mxu1 %v8211_v55  ;;  %v1574_v19 = vld [vmem:[#allocation10 + $0xdf8] sm:$0xff]  ;;  %v8386_v55 = vcombine.low %v1310_v33, %v1318_v34  ;;  %v9263_v33 = vld [vmem:[#allocation11 + $0xa4] ss:$16 sps:$4 sm:$0xff]   ;;  %v9288_v34 = vld [vmem:[#allocation11 + $0x2c0] ss:$16 sps:$4 sm:$0xff]  }
 0x465   :  { %4910 = vmatprep.subr.bf16.mxu0 %v8467_v58  ;;  %v8643_v50 = vcombine.high %v1566_v35, %v1574_v19  ;;  %v1294_v52 = vld [vmem:[#allocation10 + $0x538] sm:$0xff]  ;;  %v8642_v58 = vcombine.low %v1566_v35, %v1574_v19 }
 0x466   :  { %v1302_v15 = vld [vmem:[#allocation10 + $0x578] sm:$0xff] }
 0x467   :  { %4870 = vmatpush1.bf16.msra.mxu1 %v8210_v42  ;;  %v1550_v51 = vld [vmem:[#allocation10 + $0xd38] sm:$0xff]  ;;  %v8371_v24 = vcombine.high %v1294_v52, %v1302_v15 }
 0x468   :  { %4911 = vmatpush1.bf16.msra.mxu0 %v8466_v61  ;;  %4871 = vmatprep.subr.bf16.mxu1 %v8451_v62  ;;  %v1558_v53 = vld [vmem:[#allocation10 + $0xd78] sm:$0xff]  ;;  %v8370_v62 = vcombine.low %v1294_v52, %v1302_v15  ;;  %v9266_v52 = vld [vmem:[#allocation11 + $0x84] ss:$16 sps:$4 sm:$0xff]  }
 0x469   :  { %4912 = vmatprep.subr.bf16.mxu0 %v8707_v56  ;;  %v8627_v38 = vcombine.high %v1550_v51, %v1558_v53  ;;  %v1278_v39 = vld [vmem:[#allocation10 + $0x4b8] sm:$0xff]  ;;  %v8626_v56 = vcombine.low %v1550_v51, %v1558_v53  ;;  %v9302_v53 = vld [vmem:[#allocation11 + $0x284] ss:$16 sps:$4 sm:$0xff]  }
 0x46a   :  { %v1286_v41 = vld [vmem:[#allocation10 + $0x4f8] sm:$0xff] }
 0x46b   :  { %4872 = vmatpush2.bf16.msra.mxu1 %v8450_v40  ;;  %v1534_v42 = vld [vmem:[#allocation10 + $0xcb8] sm:$0xff]  ;;  %v8355_v1 = vcombine.high %v1278_v39, %v1286_v41 }
 0x46c   :  { %4913 = vmatpush2.bf16.msra.mxu0 %v8706_v44  ;;  %4873 = vmatprep.subr.bf16.mxu1 %v8435_v46  ;;  %v1542_v61 = vld [vmem:[#allocation10 + $0xcf8] sm:$0xff]  ;;  %v8354_v46 = vcombine.low %v1278_v39, %v1286_v41  ;;  %v9308_v39 = vld [vmem:[#allocation11 + $0x264] ss:$16 sps:$4 sm:$0xff]   ;;  %v9267_v41 = vld [vmem:[#allocation11 + $0x60] ss:$16 sps:$4 sm:$0xff]  }
 0x46d   :  { %4914 = vmatprep.subr.bf16.mxu0 %v8691_v47  ;;  %v8611_v2 = vcombine.high %v1534_v42, %v1542_v61  ;;  %v1262_v4 = vld [vmem:[#allocation10 + $0x438] sm:$0xff]  ;;  %v8610_v47 = vcombine.low %v1534_v42, %v1542_v61  ;;  %v9272_v42 = vld [vmem:[#allocation11 + $0x44] ss:$16 sps:$4 sm:$0xff]   ;;  %v9306_v61 = vld [vmem:[#allocation11 + $0x260] ss:$16 sps:$4 sm:$0xff]  }
 0x46e   :  { %v1270_v59 = vld [vmem:[#allocation10 + $0x478] sm:$0xff] }
 0x46f   :  { %4874 = vmatpush2.bf16.msra.mxu1 %v8434_v11  ;;  %v1518_v40 = vld [vmem:[#allocation10 + $0xc38] sm:$0xff]  ;;  %v8339_v48 = vcombine.high %v1262_v4, %v1270_v59  ;;  %v8338_v7 = vcombine.low %v1262_v4, %v1270_v59  ;;  %v9257_v11 = vld [vmem:[#allocation11 + $0xe4] ss:$16 sps:$4 sm:$0xff]   ;;  %v9312_v4 = vld [vmem:[#allocation11 + $0x240] ss:$16 sps:$4 sm:$0xff]  }
 0x470   :  { %4915 = vmatpush2.bf16.msra.mxu0 %v8690_v12  ;;  %4875 = vmatprep.subr.bf16.mxu1 %v8419_v13  ;;  %v1526_v44 = vld [vmem:[#allocation10 + $0xc78] sm:$0xff]  ;;  %v9284_v12 = vld [vmem:[#allocation11 + $0x2e4] ss:$16 sps:$4 sm:$0xff]   ;;  %v9255_v13 = vld [vmem:[#allocation11 + $0xe0] ss:$16 sps:$4 sm:$0xff]  }
 0x471   :  { %4916 = vmatprep.subr.bf16.mxu0 %v8675_v18  ;;  %v8595_v6 = vcombine.high %v1518_v40, %v1526_v44  ;;  %v8594_v8 = vcombine.low %v1518_v40, %v1526_v44  ;;  %v10463_v18 = vld [vmem:[#allocation20 + $0x8] sm:$0xff]  ;;  %v9320_v59 = vld [vmem:[#allocation11 + $0x224] ss:$16 sps:$4 sm:$0xff]   ;;  %v9273_v40 = vld [vmem:[#allocation11 + $0x20] ss:$16 sps:$4 sm:$0xff]  }
 0x472   :  { %v1680_v27 = vrot.slane %v10463_v18, %v10310_v23  ;;  %v9296_v23 = vld [vmem:[#allocation11 + $0x2a4] ss:$16 sps:$4 sm:$0xff]  }
 0x473   :  { %4876 = vmatpush2.bf16.msra.mxu1 %v8418_v29 }
 0x474   :  { %4917 = vmatpush2.bf16.msra.mxu0 %v8674_v30  ;;  %4877 = vmatprep.subr.bf16.mxu1 %v8403_v31  ;;  %v9258_v31 = vld [vmem:[#allocation11 + $0xc0] ss:$16 sps:$4 sm:$0xff]  }
 0x475   :  { %4918 = vmatprep.subr.bf16.mxu0 %v8659_v32 }
 0x477   :  { %4878 = vmatpush2.bf16.msra.mxu1 %v8402_v14 }
 0x478   :  { %4919 = vmatpush2.bf16.msra.mxu0 %v8658_v45  ;;  %4879 = vmatprep.subr.bf16.mxu1 %v8387_v49 }
 0x479   :  { %4920 = vmatprep.subr.bf16.mxu0 %v8643_v50 }
 0x47b   :  { %4880 = vmatpush2.bf16.msra.mxu1 %v8386_v55 }
 0x47c   :  { %4921 = vmatpush2.bf16.msra.mxu0 %v8642_v58  ;;  %4881 = vmatprep.subr.bf16.mxu1 %v8371_v24  ;;  %v9264_v58 = vld [vmem:[#allocation11 + $0x80] ss:$16 sps:$4 sm:$0xff]   ;;  %v9269_v24 = vld [vmem:[#allocation11 + $0x64] ss:$16 sps:$4 sm:$0xff]  }
 0x47d   :  { %4922 = vmatprep.subr.bf16.mxu0 %v8627_v38  ;;  %v9300_v38 = vld [vmem:[#allocation11 + $0x280] ss:$16 sps:$4 sm:$0xff]  }
 0x47f   :  { %4882 = vmatpush2.bf16.msra.mxu1 %v8370_v62  ;;  %v9314_v62 = vld [vmem:[#allocation11 + $0x244] ss:$16 sps:$4 sm:$0xff]  }
 0x480   :  { %4923 = vmatpush2.bf16.msra.mxu0 %v8626_v56  ;;  %4883 = vmatprep.subr.bf16.mxu1 %v8355_v1  ;;  %v9270_v56 = vld [vmem:[#allocation11 + $0x40] ss:$16 sps:$4 sm:$0xff]   ;;  %v1676_v1 = vrot.slane %v10463_v18, %v10307_v20 }
 0x481   :  { %4924 = vmatprep.subr.bf16.mxu0 %v8611_v2  ;;  %v9275_v2 = vld [vmem:[#allocation11 + $0x24] ss:$16 sps:$4 sm:$0xff]  }
 0x483   :  { %4884 = vmatpush2.bf16.msra.mxu1 %v8354_v46  ;;  %v9278_v46 = vld [vmem:[#allocation11 + $0x4] ss:$16 sps:$4 sm:$0xff]  }
 0x484   :  { %4925 = vmatpush2.bf16.msra.mxu0 %v8610_v47  ;;  %4885 = vmatprep.subr.bf16.mxu1 %v8339_v48  ;;  %v4938_v47 = vld [vmem:[#allocation5 + $0x8] sm:$0xff]  ;;  %v9318_v48 = vld [vmem:[#allocation11 + $0x220] ss:$16 sps:$4 sm:$0xff]  }
 0x485   :  { %4926 = vmatprep.subr.bf16.mxu0 %v8595_v6  ;;  %v9326_v6 = vld [vmem:[#allocation11 + $0x204] ss:$16 sps:$4 sm:$0xff]  }
 0x487   :  { %4886 = vmatpush2.bf16.msra.mxu1 %v8338_v7 }
 0x488   :  { %4927 = vmatpush2.bf16.msra.mxu0 %v8594_v8  ;;  %6529 = vmatprep.subr.bf16.mxu1 %v9257_v11  ;;  %v9276_v8 = vld [vmem:[#allocation11] ss:$16 sps:$4 sm:$0xff]  }
 0x489   :  { %6570 = vmatprep.subr.bf16.mxu0 %v9284_v12  ;;  %v9281_v12 = vld [vmem:[#allocation11 + $0x1e4] ss:$16 sps:$4 sm:$0xff]  }
 0x48a   :  { %v4643_v29 = vpop.f32.mrf.mxu1  ;;  %4888 = vmatmul.mubr.bf16.vlgmr.msra.gmra.mxu1 %v10377_v22  ;;  %v9261_v22 = vld [vmem:[#allocation11 + $0xa0] ss:$16 sps:$4 sm:$0xff]  }
 0x48b   :  { %v10468_v30 = vpop.f32.mrf.mxu0  ;;  %4929 = vmatmul.mubr.bf16.vlgmr.msra.gmra.mxu0 %v10381_v36  ;;  %6530 = vmatpush1.bf16.msra.mxu1 %v9255_v13  ;;  %v9294_v36 = vld [vmem:[#allocation11 + $0x2a0] ss:$16 sps:$4 sm:$0xff]   ;;  %v4644_v44 = vadd.f32 %v4643_v29, %v1676_v1 }
 0x48c   :  { %v4645_v32 = vpop.f32.mrf.mxu1  ;;  %6531 = vmatprep.subr.bf16.mxu1 %v9260_v21  ;;  %6571 = vmatpush1.bf16.msra.mxu0 %v9282_v25  ;;  %v9324_v13 = vld [vmem:[#allocation11 + $0x200] ss:$16 sps:$4 sm:$0xff]   ;;  %v9329_v25 = vld [vmem:[#allocation11 + $0x3e4] ss:$16 sps:$4 sm:$0xff]  }
 0x48d   :  { %v4646_v35 = vadd.f32 %v4645_v32, %v1680_v27  ;;  %v4686_v19 = vpop.f32.mrf.mxu0  ;;  %6572 = vmatprep.subr.bf16.mxu0 %v9290_v28  ;;  %v4685_v11 = vadd.f32 %v10468_v30, %v4644_v44  ;;  %v9279_v28 = vld [vmem:[#allocation11 + $0x1e0] ss:$16 sps:$4 sm:$0xff]   ;;  %v9332_v30 = vld [vmem:[#allocation11 + $0x3c4] ss:$16 sps:$4 sm:$0xff]  }
 0x48e   :  { %v4647_v14 = vpop.f32.mrf.mxu1  ;;  %v9327_v32 = vld [vmem:[#allocation11 + $0x3e0] ss:$16 sps:$4 sm:$0xff]   ;;  %v9353_v44 = vld [vmem:[#allocation11 + $0x4e4] ss:$16 sps:$4 sm:$0xff]  }
 0x48f   :  { %v4687_v45 = vadd.f32 %v4686_v19, %v4646_v35  ;;  %v4688_v49 = vpop.f32.mrf.mxu0  ;;  %6532 = vmatpush1.bf16.msra.mxu1 %v9258_v31  ;;  %v4945_v29 = vmul.f32 0.5, %v4685_v11  ;;  %v9287_v31 = vld [vmem:[#allocation11 + $0x1c4] ss:$16 sps:$4 sm:$0xff]   ;;  %v9330_v35 = vld [vmem:[#allocation11 + $0x3c0] ss:$16 sps:$4 sm:$0xff]  }
 0x490   :  { %v4648_v50 = vpop.f32.mrf.mxu1  ;;  %6533 = vmatprep.subr.bf16.mxu1 %v9263_v33  ;;  %6573 = vmatpush1.bf16.msra.mxu0 %v9288_v34  ;;  %v9285_v33 = vld [vmem:[#allocation11 + $0x1c0] ss:$16 sps:$4 sm:$0xff]   ;;  %v9335_v19 = vld [vmem:[#allocation11 + $0x3a4] ss:$16 sps:$4 sm:$0xff]  }
 0x491   :  { %v4946_v15 = vmul.f32 0.5, %v4687_v45  ;;  %v4689_v51 = vpop.f32.mrf.mxu0  ;;  %6574 = vmatprep.subr.bf16.mxu0 %v9296_v23  ;;  %v4953_v34 = vmul.f32 1.442695, %v4945_v29  ;;  %v9291_v23 = vld [vmem:[#allocation11 + $0x1a0] ss:$16 sps:$4 sm:$0xff]  }
 0x492   :  { %v9299_v14 = vld [vmem:[#allocation11 + $0x184] ss:$16 sps:$4 sm:$0xff]   ;;  %v9333_v45 = vld [vmem:[#allocation11 + $0x3a0] ss:$16 sps:$4 sm:$0xff]  }
 0x493   :  { %v4955_v55 = vmul.f32 1.442695, %v4946_v15  ;;  %6534 = vmatpush1.bf16.msra.mxu1 %v9261_v22  ;;  %v9338_v49 = vld [vmem:[#allocation11 + $0x384] ss:$16 sps:$4 sm:$0xff]   ;;  %v9297_v22 = vld [vmem:[#allocation11 + $0x180] ss:$16 sps:$4 sm:$0xff]  }
 0x494   :  { %6535 = vmatprep.subr.bf16.mxu1 %v9266_v52  ;;  %6575 = vmatpush1.bf16.msra.mxu0 %v9294_v36  ;;  %v9305_v50 = vld [vmem:[#allocation11 + $0x164] ss:$16 sps:$4 sm:$0xff]   ;;  %v9336_v52 = vld [vmem:[#allocation11 + $0x380] ss:$16 sps:$4 sm:$0xff]  }
 0x495   :  { %9843 = vpow2.f32 %v4955_v55  ;;  %6576 = vmatprep.subr.bf16.mxu0 %v9302_v53  ;;  %v9341_v36 = vld [vmem:[#allocation11 + $0x364] ss:$16 sps:$4 sm:$0xff]   ;;  %v9303_v15 = vld [vmem:[#allocation11 + $0x160] ss:$16 sps:$4 sm:$0xff]  }
 0x496   :  { %9845 = vpow2.f32 %v4953_v34  ;;  %v9311_v51 = vld [vmem:[#allocation11 + $0x144] ss:$16 sps:$4 sm:$0xff]   ;;  %v9339_v53 = vld [vmem:[#allocation11 + $0x360] ss:$16 sps:$4 sm:$0xff]  }
 0x497   :  { %6536 = vmatpush1.bf16.msra.mxu1 %v9264_v58  ;;  %v9344_v55 = vld [vmem:[#allocation11 + $0x344] ss:$16 sps:$4 sm:$0xff]   ;;  %v9309_v58 = vld [vmem:[#allocation11 + $0x140] ss:$16 sps:$4 sm:$0xff]  }
 0x498   :  { %6537 = vmatprep.subr.bf16.mxu1 %v9269_v24  ;;  %6577 = vmatpush1.bf16.msra.mxu0 %v9300_v38  ;;  %v9317_v24 = vld [vmem:[#allocation11 + $0x124] ss:$16 sps:$4 sm:$0xff]   ;;  %v9342_v38 = vld [vmem:[#allocation11 + $0x340] ss:$16 sps:$4 sm:$0xff]  }
 0x499   :  { %6578 = vmatprep.subr.bf16.mxu0 %v9308_v39  ;;  %v9345_v1 = vld [vmem:[#allocation11 + $0x320] ss:$16 sps:$4 sm:$0xff]  }
 0x49a   :  { %v9357_v34 = vld [vmem:[#allocation11 + $0x4a0] ss:$16 sps:$4 sm:$0xff]  }
 0x49b   :  { %6538 = vmatpush1.bf16.msra.mxu1 %v9267_v41  ;;  %v4937_v41 = vld [vmem:[#allocation5] sm:$0xff] }
 0x49c   :  { %6539 = vmatprep.subr.bf16.mxu1 %v9272_v42  ;;  %6579 = vmatpush1.bf16.msra.mxu0 %v9306_v61  ;;  %v9347_v42 = vld [vmem:[#allocation11 + $0x324] ss:$16 sps:$4 sm:$0xff]   ;;  %v9315_v61 = vld [vmem:[#allocation11 + $0x120] ss:$16 sps:$4 sm:$0xff]  }
 0x49d   :  { %6580 = vmatprep.subr.bf16.mxu0 %v9314_v62  ;;  %v9323_v62 = vld [vmem:[#allocation11 + $0x104] ss:$16 sps:$4 sm:$0xff]  }
 0x49f   :  { %6540 = vmatpush1.bf16.msra.mxu1 %v9270_v56 }
 0x4a0   :  { %6541 = vmatprep.subr.bf16.mxu1 %v9275_v2  ;;  %6581 = vmatpush1.bf16.msra.mxu0 %v9312_v4  ;;  %v9350_v2 = vld [vmem:[#allocation11 + $0x304] ss:$16 sps:$4 sm:$0xff]   ;;  %v9321_v4 = vld [vmem:[#allocation11 + $0x100] ss:$16 sps:$4 sm:$0xff]  }
 0x4a1   :  { %6582 = vmatprep.subr.bf16.mxu0 %v9320_v59 }
 0x4a2   :  { %v9844_v7 = vpop.eup %9843 }
 0x4a3   :  { %6542 = vmatpush1.bf16.msra.mxu1 %v9273_v40  ;;  %v4970_v20 = vmul.f32 %v9844_v7, %v4938_v47  ;;  %v9846_v39 = vpop.eup %9845  ;;  %v9348_v40 = vld [vmem:[#allocation11 + $0x300] ss:$16 sps:$4 sm:$0xff]   ;;  %v1684_v47 = vrot.slane %v10463_v18, %v10418_v17  ;;  %v9356_v7 = vld [vmem:[#allocation11 + $0x4c4] ss:$16 sps:$4 sm:$0xff]  }
 0x4a4   :  { %6543 = vmatprep.subr.bf16.mxu1 %v9278_v46  ;;  %6583 = vmatpush1.bf16.msra.mxu0 %v9318_v48  ;;  %v4969_v56 = vmul.f32 %v9846_v39, %v4937_v41  ;;  %v9401_v46 = vld [vmem:[#allocation11 + $0x6e4] ss:$16 sps:$4 sm:$0xff]   ;;  %v9351_v48 = vld [vmem:[#allocation11 + $0x4e0] ss:$16 sps:$4 sm:$0xff]  }
 0x4a5   :  { %v4978_v21 = vadd.f32 %v4970_v20, %v10415_v10  ;;  %6584 = vmatprep.subr.bf16.mxu0 %v9326_v6  ;;  %v9293_v10 = vld [vmem:[#allocation11 + $0x1a4] ss:$16 sps:$4 sm:$0xff]  }
 0x4a6   :  { %v4977_v59 = vadd.f32 %v4969_v56, %v10412_v43 }
 0x4a7   :  { %6544 = vmatpush1.bf16.msra.mxu1 %v9276_v8  ;;  %v10475_v27 = vpack.c.bf16 %v4978_v21, %v4978_v21  ;;  %v1688_v8 = vrot.slane %v10463_v18, %v10421_v26  ;;  %v9359_v21 = vld [vmem:[#allocation11 + $0x4a4] ss:$16 sps:$4 sm:$0xff]  }
 0x4a8   :  { %6545 = vmatprep.subr.bf16.mxu1 %v9281_v12  ;;  %6585 = vmatpush1.bf16.msra.mxu0 %v9324_v13  ;;  %v10481_v6 = vpack.c.bf16 %v4977_v59, %v4977_v59  ;;  %v9354_v12 = vld [vmem:[#allocation11 + $0x4c0] ss:$16 sps:$4 sm:$0xff]  }
 0x4a9   :  { %6561 = vmatprep.mubr.bf16.mxu1 %v10475_v27  ;;  %6586 = vmatprep.subr.bf16.mxu0 %v9329_v25 }
 0x4ab   :  { %6546 = vmatpush2.bf16.msra.mxu1 %v9279_v28 }
 0x4ac   :  { %6547 = vmatprep.subr.bf16.mxu1 %v9287_v31  ;;  %6587 = vmatpush2.bf16.msra.mxu0 %v9327_v32 }
 0x4ad   :  { %6588 = vmatprep.subr.bf16.mxu0 %v9332_v30 }
 0x4af   :  { %6548 = vmatpush2.bf16.msra.mxu1 %v9285_v33 }
 0x4b0   :  { %6549 = vmatprep.subr.bf16.mxu1 %v9293_v10  ;;  %6589 = vmatpush2.bf16.msra.mxu0 %v9330_v35  ;;  %v9362_v35 = vld [vmem:[#allocation11 + $0x484] ss:$16 sps:$4 sm:$0xff]  }
 0x4b1   :  { %6590 = vmatprep.subr.bf16.mxu0 %v9335_v19 }
 0x4b3   :  { %6550 = vmatpush2.bf16.msra.mxu1 %v9291_v23 }
 0x4b4   :  { %6551 = vmatprep.subr.bf16.mxu1 %v9299_v14  ;;  %6591 = vmatpush2.bf16.msra.mxu0 %v9333_v45 }
 0x4b5   :  { %6592 = vmatprep.subr.bf16.mxu0 %v9338_v49  ;;  %v9360_v49 = vld [vmem:[#allocation11 + $0x480] ss:$16 sps:$4 sm:$0xff]  }
 0x4b7   :  { %6552 = vmatpush2.bf16.msra.mxu1 %v9297_v22  ;;  %v9365_v22 = vld [vmem:[#allocation11 + $0x464] ss:$16 sps:$4 sm:$0xff]  }
 0x4b8   :  { %6553 = vmatprep.subr.bf16.mxu1 %v9305_v50  ;;  %6593 = vmatpush2.bf16.msra.mxu0 %v9336_v52  ;;  %v9363_v50 = vld [vmem:[#allocation11 + $0x460] ss:$16 sps:$4 sm:$0xff]   ;;  %v9368_v52 = vld [vmem:[#allocation11 + $0x444] ss:$16 sps:$4 sm:$0xff]  }
 0x4b9   :  { %6594 = vmatprep.subr.bf16.mxu0 %v9341_v36  ;;  %v9366_v36 = vld [vmem:[#allocation11 + $0x440] ss:$16 sps:$4 sm:$0xff]  }
 0x4bb   :  { %6554 = vmatpush2.bf16.msra.mxu1 %v9303_v15  ;;  %v9371_v15 = vld [vmem:[#allocation11 + $0x424] ss:$16 sps:$4 sm:$0xff]  }
 0x4bc   :  { %6555 = vmatprep.subr.bf16.mxu1 %v9311_v51  ;;  %6595 = vmatpush2.bf16.msra.mxu0 %v9339_v53  ;;  %v4939_v51 = vld [vmem:[#allocation5 + $0x10] sm:$0xff] }
 0x4bd   :  { %6596 = vmatprep.subr.bf16.mxu0 %v9344_v55  ;;  %v9369_v53 = vld [vmem:[#allocation11 + $0x420] ss:$16 sps:$4 sm:$0xff]  }
 0x4bf   :  { %6556 = vmatpush2.bf16.msra.mxu1 %v9309_v58  ;;  %v4940_v58 = vld [vmem:[#allocation5 + $0x18] sm:$0xff] }
 0x4c0   :  { %6557 = vmatprep.subr.bf16.mxu1 %v9317_v24  ;;  %6597 = vmatpush2.bf16.msra.mxu0 %v9342_v38  ;;  %v9374_v24 = vld [vmem:[#allocation11 + $0x404] ss:$16 sps:$4 sm:$0xff]  }
 0x4c1   :  { %6598 = vmatprep.subr.bf16.mxu0 %v9347_v42  ;;  %v9372_v42 = vld [vmem:[#allocation11 + $0x400] ss:$16 sps:$4 sm:$0xff]  }
 0x4c3   :  { %6558 = vmatpush2.bf16.msra.mxu1 %v9315_v61 }
 0x4c4   :  { %6559 = vmatprep.subr.bf16.mxu1 %v9323_v62  ;;  %6599 = vmatpush2.bf16.msra.mxu0 %v9345_v1  ;;  %v9377_v62 = vld [vmem:[#allocation11 + $0x5e4] ss:$16 sps:$4 sm:$0xff]  }
 0x4c5   :  { %6600 = vmatprep.subr.bf16.mxu0 %v9350_v2  ;;  %v9375_v2 = vld [vmem:[#allocation11 + $0x5e0] ss:$16 sps:$4 sm:$0xff]  }
 0x4c7   :  { %6560 = vmatpush2.bf16.msra.mxu1 %v9321_v4  ;;  %v9399_v4 = vld [vmem:[#allocation11 + $0x6e0] ss:$16 sps:$4 sm:$0xff]  }
 0x4c8   :  { %6601 = vmatpush2.bf16.msra.mxu0 %v9348_v40  ;;  %6611 = vmatprep.subr.bf16.mxu1 %v9353_v44  ;;  %v9380_v40 = vld [vmem:[#allocation11 + $0x5c4] ss:$16 sps:$4 sm:$0xff]  }
 0x4c9   :  { %6652 = vmatprep.subr.bf16.mxu0 %v9401_v46  ;;  %v9407_v44 = vld [vmem:[#allocation11 + $0x6c4] ss:$16 sps:$4 sm:$0xff]   ;;  %v9405_v46 = vld [vmem:[#allocation11 + $0x6c0] ss:$16 sps:$4 sm:$0xff]  }
 0x4ca   :  { %v4725_v43 = vpop.f32.mrf.mxu1  ;;  %6562 = vmatmul.mubr.bf16.vlgmr.msra.gmra.mxu1 %v10481_v6 }
 0x4cb   :  { %v4726_v20 = vadd.f32 %v4725_v43, %v1684_v47  ;;  %v4766_v11 = vpop.f32.mrf.mxu0  ;;  %6612 = vmatpush1.bf16.msra.mxu1 %v9351_v48  ;;  %v9413_v47 = vld [vmem:[#allocation11 + $0x6a4] ss:$16 sps:$4 sm:$0xff]   ;;  %v9381_v48 = vld [vmem:[#allocation11 + $0x5a0] ss:$16 sps:$4 sm:$0xff]  }
 0x4cc   :  { %v4727_v13 = vpop.f32.mrf.mxu1  ;;  %6613 = vmatprep.subr.bf16.mxu1 %v9356_v7  ;;  %v9411_v7 = vld [vmem:[#allocation11 + $0x6a0] ss:$16 sps:$4 sm:$0xff]   ;;  %v9419_v43 = vld [vmem:[#allocation11 + $0x684] ss:$16 sps:$4 sm:$0xff]  }
 0x4cd   :  { %v4767_v25 = vadd.f32 %v4766_v11, %v4726_v20  ;;  %v4728_v28 = vadd.f32 %v4727_v13, %v1688_v8  ;;  %v4768_v29 = vpop.f32.mrf.mxu0  ;;  %v9386_v8 = vld [vmem:[#allocation11 + $0x584] ss:$16 sps:$4 sm:$0xff]   ;;  %v9384_v20 = vld [vmem:[#allocation11 + $0x580] ss:$16 sps:$4 sm:$0xff]  }
 0x4ce   :  { %v4729_v31 = vpop.f32.mrf.mxu1  ;;  %v9417_v11 = vld [vmem:[#allocation11 + $0x680] ss:$16 sps:$4 sm:$0xff]   ;;  %v9425_v13 = vld [vmem:[#allocation11 + $0x664] ss:$16 sps:$4 sm:$0xff]  }
 0x4cf   :  { %v4947_v32 = vmul.f32 0.5, %v4767_v25  ;;  %v4769_v30 = vadd.f32 %v4768_v29, %v4728_v28  ;;  %v4770_v33 = vpop.f32.mrf.mxu0  ;;  %6614 = vmatpush1.bf16.msra.mxu1 %v9354_v12  ;;  %v9389_v12 = vld [vmem:[#allocation11 + $0x564] ss:$16 sps:$4 sm:$0xff]   ;;  %v9423_v25 = vld [vmem:[#allocation11 + $0x660] ss:$16 sps:$4 sm:$0xff]  }
 0x4d0   :  { %v4730_v10 = vpop.f32.mrf.mxu1  ;;  %6615 = vmatprep.subr.bf16.mxu1 %v9359_v21  ;;  %v9387_v21 = vld [vmem:[#allocation11 + $0x560] ss:$16 sps:$4 sm:$0xff]   ;;  %v9392_v28 = vld [vmem:[#allocation11 + $0x544] ss:$16 sps:$4 sm:$0xff]  }
 0x4d1   :  { %v4957_v19 = vmul.f32 1.442695, %v4947_v32  ;;  %v4948_v23 = vmul.f32 0.5, %v4769_v30  ;;  %v4771_v14 = vpop.f32.mrf.mxu0  ;;  %v9431_v29 = vld [vmem:[#allocation11 + $0x644] ss:$16 sps:$4 sm:$0xff]  }
 0x4d2   :  { %v9390_v31 = vld [vmem:[#allocation11 + $0x540] ss:$16 sps:$4 sm:$0xff]   ;;  %v9395_v30 = vld [vmem:[#allocation11 + $0x524] ss:$16 sps:$4 sm:$0xff]  }
 0x4d3   :  { %9847 = vpow2.f32 %v4957_v19  ;;  %v4959_v45 = vmul.f32 1.442695, %v4948_v23  ;;  %6616 = vmatpush1.bf16.msra.mxu1 %v9357_v34  ;;  %v9429_v32 = vld [vmem:[#allocation11 + $0x640] ss:$16 sps:$4 sm:$0xff]   ;;  %v9437_v33 = vld [vmem:[#allocation11 + $0x624] ss:$16 sps:$4 sm:$0xff]  }
 0x4d4   :  { %6617 = vmatprep.subr.bf16.mxu1 %v9362_v35  ;;  %v9393_v34 = vld [vmem:[#allocation11 + $0x520] ss:$16 sps:$4 sm:$0xff]   ;;  %v9398_v35 = vld [vmem:[#allocation11 + $0x504] ss:$16 sps:$4 sm:$0xff]  }
 0x4d5   :  { %9849 = vpow2.f32 %v4959_v45  ;;  %v9435_v10 = vld [vmem:[#allocation11 + $0x620] ss:$16 sps:$4 sm:$0xff]   ;;  %v9443_v19 = vld [vmem:[#allocation11 + $0x604] ss:$16 sps:$4 sm:$0xff]   ;;  %v9404_v45 = vld [vmem:[#allocation11 + $0xec] ss:$16 sps:$4 sm:$0xff]  }
 0x4d6   :  { %v9396_v23 = vld [vmem:[#allocation11 + $0x500] ss:$16 sps:$4 sm:$0xff]  }
 0x4d7   :  { %6618 = vmatpush1.bf16.msra.mxu1 %v9360_v49  ;;  %v9441_v14 = vld [vmem:[#allocation11 + $0x600] ss:$16 sps:$4 sm:$0xff]   ;;  %v9449_v49 = vld [vmem:[#allocation11 + $0x7e4] ss:$16 sps:$4 sm:$0xff]  }
 0x4d8   :  { %6619 = vmatprep.subr.bf16.mxu1 %v9365_v22  ;;  %v1692_v22 = vrot.slane %v10463_v18, %v10351_v3 }
 0x4db   :  { %6620 = vmatpush1.bf16.msra.mxu1 %v9363_v50  ;;  %v9447_v50 = vld [vmem:[#allocation11 + $0x7e0] ss:$16 sps:$4 sm:$0xff]  }
 0x4dc   :  { %6621 = vmatprep.subr.bf16.mxu1 %v9368_v52  ;;  %v9455_v52 = vld [vmem:[#allocation11 + $0x7c4] ss:$16 sps:$4 sm:$0xff]  }
 0x4df   :  { %6622 = vmatpush1.bf16.msra.mxu1 %v9366_v36  ;;  %v1696_v36 = vrot.slane %v10463_v18, %v10355_v5 }
 0x4e0   :  { %v9848_v55 = vpop.eup %9847  ;;  %6623 = vmatprep.subr.bf16.mxu1 %v9371_v15 }
 0x4e1   :  { %v4971_v38 = vmul.f32 %v9848_v55, %v4939_v51  ;;  %v9453_v55 = vld [vmem:[#allocation11 + $0x7c0] ss:$16 sps:$4 sm:$0xff]  }
 0x4e2   :  { %v9850_v39 = vpop.eup %9849 }
 0x4e3   :  { %v4972_v41 = vmul.f32 %v9850_v39, %v4940_v58  ;;  %6624 = vmatpush1.bf16.msra.mxu1 %v9369_v53  ;;  %v4979_v61 = vadd.f32 %v4971_v38, %v10430_v37  ;;  %v9378_v37 = vld [vmem:[#allocation11 + $0x5c0] ss:$16 sps:$4 sm:$0xff]  }
 0x4e4   :  { %6625 = vmatprep.subr.bf16.mxu1 %v9374_v24  ;;  %v9461_v24 = vld [vmem:[#allocation11 + $0x7a4] ss:$16 sps:$4 sm:$0xff]  }
 0x4e5   :  { %v4980_v56 = vadd.f32 %v4972_v41, %v10433_v0  ;;  %v10490_v59 = vpack.c.bf16 %v4979_v61, %v4979_v61  ;;  %v9383_v0 = vld [vmem:[#allocation11 + $0x5a4] ss:$16 sps:$4 sm:$0xff]  }
 0x4e7   :  { %v10488_v1 = vpack.c.bf16 %v4980_v56, %v4980_v56  ;;  %6626 = vmatpush1.bf16.msra.mxu1 %v9372_v42 }
 0x4e8   :  { %6627 = vmatprep.subr.bf16.mxu1 %v9377_v62 }
 0x4e9   :  { %6602 = vmatprep.mubr.bf16.mxu0 %v10488_v1 }
 0x4ea   :  { %6603 = vmatmul.mubr.bf16.vlgmr.msra.gmra.mxu0 %v10490_v59 }
 0x4eb   :  { %6628 = vmatpush2.bf16.msra.mxu1 %v9375_v2  ;;  %6653 = vmatpush1.bf16.msra.mxu0 %v9399_v4  ;;  %v9459_v2 = vld [vmem:[#allocation11 + $0x7a0] ss:$16 sps:$4 sm:$0xff]  }
 0x4ec   :  { %6629 = vmatprep.subr.bf16.mxu1 %v9380_v40  ;;  %6654 = vmatprep.subr.bf16.mxu0 %v9407_v44  ;;  %v9467_v40 = vld [vmem:[#allocation11 + $0x784] ss:$16 sps:$4 sm:$0xff]  }
 0x4ef   :  { %6630 = vmatpush2.bf16.msra.mxu1 %v9378_v37  ;;  %6655 = vmatpush1.bf16.msra.mxu0 %v9405_v46 }
 0x4f0   :  { %6631 = vmatprep.subr.bf16.mxu1 %v9383_v0  ;;  %6656 = vmatprep.subr.bf16.mxu0 %v9413_v47  ;;  %v9465_v47 = vld [vmem:[#allocation11 + $0x780] ss:$16 sps:$4 sm:$0xff]  }
 0x4f3   :  { %6632 = vmatpush2.bf16.msra.mxu1 %v9381_v48  ;;  %6657 = vmatpush1.bf16.msra.mxu0 %v9411_v7  ;;  %v9473_v48 = vld [vmem:[#allocation11 + $0x764] ss:$16 sps:$4 sm:$0xff]   ;;  %v9471_v7 = vld [vmem:[#allocation11 + $0x760] ss:$16 sps:$4 sm:$0xff]  }
 0x4f4   :  { %6633 = vmatprep.subr.bf16.mxu1 %v9386_v8  ;;  %6658 = vmatprep.subr.bf16.mxu0 %v9419_v43  ;;  %v9479_v8 = vld [vmem:[#allocation11 + $0x744] ss:$16 sps:$4 sm:$0xff]   ;;  %v9477_v43 = vld [vmem:[#allocation11 + $0x740] ss:$16 sps:$4 sm:$0xff]  }
 0x4f7   :  { %6634 = vmatpush2.bf16.msra.mxu1 %v9384_v20  ;;  %6659 = vmatpush1.bf16.msra.mxu0 %v9417_v11  ;;  %v9485_v20 = vld [vmem:[#allocation11 + $0x724] ss:$16 sps:$4 sm:$0xff]  }
 0x4f8   :  { %6635 = vmatprep.subr.bf16.mxu1 %v9389_v12  ;;  %6660 = vmatprep.subr.bf16.mxu0 %v9425_v13  ;;  %v4941_v11 = vld [vmem:[#allocation5 + $0x20] sm:$0xff] }
 0x4f9   :  { %v9483_v12 = vld [vmem:[#allocation11 + $0x720] ss:$16 sps:$4 sm:$0xff]  }
 0x4fb   :  { %6636 = vmatpush2.bf16.msra.mxu1 %v9387_v21  ;;  %6661 = vmatpush1.bf16.msra.mxu0 %v9423_v25  ;;  %v4942_v21 = vld [vmem:[#allocation5 + $0x28] sm:$0xff]  ;;  %v9491_v25 = vld [vmem:[#allocation11 + $0x704] ss:$16 sps:$4 sm:$0xff]  }
 0x4fc   :  { %6637 = vmatprep.subr.bf16.mxu1 %v9392_v28  ;;  %6662 = vmatprep.subr.bf16.mxu0 %v9431_v29 }
 0x4ff   :  { %6638 = vmatpush2.bf16.msra.mxu1 %v9390_v31  ;;  %6663 = vmatpush1.bf16.msra.mxu0 %v9429_v32  ;;  %v9489_v32 = vld [vmem:[#allocation11 + $0x700] ss:$16 sps:$4 sm:$0xff]  }
 0x500   :  { %6639 = vmatprep.subr.bf16.mxu1 %v9395_v30  ;;  %6664 = vmatprep.subr.bf16.mxu0 %v9437_v33  ;;  %v9497_v33 = vld [vmem:[#allocation11 + $0x2ec] ss:$16 sps:$4 sm:$0xff]  }
 0x503   :  { %6640 = vmatpush2.bf16.msra.mxu1 %v9393_v34  ;;  %6665 = vmatpush1.bf16.msra.mxu0 %v9435_v10 }
 0x504   :  { %6641 = vmatprep.subr.bf16.mxu1 %v9398_v35  ;;  %6666 = vmatprep.subr.bf16.mxu0 %v9443_v19  ;;  %v9402_v35 = vld [vmem:[#allocation11 + $0xe8] ss:$16 sps:$4 sm:$0xff]  }
 0x507   :  { %6642 = vmatpush2.bf16.msra.mxu1 %v9396_v23  ;;  %6667 = vmatpush1.bf16.msra.mxu0 %v9441_v14  ;;  %v9410_v23 = vld [vmem:[#allocation11 + $0xcc] ss:$16 sps:$4 sm:$0xff]  }
 0x508   :  { %6693 = vmatprep.subr.bf16.mxu1 %v9404_v45  ;;  %6668 = vmatprep.subr.bf16.mxu0 %v9449_v49  ;;  %v9416_v14 = vld [vmem:[#allocation11 + $0xac] ss:$16 sps:$4 sm:$0xff]   ;;  %v9420_v49 = vld [vmem:[#allocation11 + $0x88] ss:$16 sps:$4 sm:$0xff]  }
 0x509   :  { %v9422_v45 = vld [vmem:[#allocation11 + $0x8c] ss:$16 sps:$4 sm:$0xff]  }
 0x50a   :  { %v4807_v15 = vpop.f32.mrf.mxu1 }
 0x50b   :  { %v4808_v51 = vadd.f32 %v4807_v15, %v1692_v22  ;;  %v4848_v53 = vpop.f32.mrf.mxu0  ;;  %6669 = vmatpush2.bf16.msra.mxu0 %v9447_v50  ;;  %v9428_v22 = vld [vmem:[#allocation11 + $0x6c] ss:$16 sps:$4 sm:$0xff]   ;;  %v9426_v50 = vld [vmem:[#allocation11 + $0x68] ss:$16 sps:$4 sm:$0xff]  }
 0x50c   :  { %v4809_v58 = vpop.f32.mrf.mxu1  ;;  %6670 = vmatprep.subr.bf16.mxu0 %v9455_v52  ;;  %v9434_v52 = vld [vmem:[#allocation11 + $0x4c] ss:$16 sps:$4 sm:$0xff]  }
 0x50d   :  { %v4849_v38 = vadd.f32 %v4848_v53, %v4808_v51  ;;  %v4810_v39 = vadd.f32 %v4809_v58, %v1696_v36  ;;  %v4850_v41 = vpop.f32.mrf.mxu0  ;;  %v9432_v36 = vld [vmem:[#allocation11 + $0x48] ss:$16 sps:$4 sm:$0xff]   ;;  %v9440_v15 = vld [vmem:[#allocation11 + $0x2c] ss:$16 sps:$4 sm:$0xff]  }
 0x50e   :  { %v4811_v42 = vpop.f32.mrf.mxu1  ;;  %v9446_v51 = vld [vmem:[#allocation11 + $0xc] ss:$16 sps:$4 sm:$0xff]   ;;  %v9444_v53 = vld [vmem:[#allocation11 + $0x8] ss:$16 sps:$4 sm:$0xff]  }
 0x50f   :  { %v4949_v61 = vmul.f32 0.5, %v4849_v38  ;;  %v4851_v62 = vadd.f32 %v4850_v41, %v4810_v39  ;;  %v4852_v56 = vpop.f32.mrf.mxu0  ;;  %6671 = vmatpush2.bf16.msra.mxu0 %v9453_v55  ;;  %v9452_v55 = vld [vmem:[#allocation11 + $0x1ec] ss:$16 sps:$4 sm:$0xff]   ;;  %v9450_v58 = vld [vmem:[#allocation11 + $0x1e8] ss:$16 sps:$4 sm:$0xff]   ;;  %v1704_v39 = vrot.slane %v10463_v18, %v10451_v16 }
 0x510   :  { %v4812_v4 = vpop.f32.mrf.mxu1  ;;  %6672 = vmatprep.subr.bf16.mxu0 %v9461_v24  ;;  %v1700_v24 = vrot.slane %v10463_v18, %v10448_v9  ;;  %v9458_v38 = vld [vmem:[#allocation11 + $0x1cc] ss:$16 sps:$4 sm:$0xff]  }
 0x511   :  { %v4961_v44 = vmul.f32 1.442695, %v4949_v61  ;;  %v4950_v37 = vmul.f32 0.5, %v4851_v62  ;;  %v4853_v46 = vpop.f32.mrf.mxu0  ;;  %v9456_v62 = vld [vmem:[#allocation11 + $0x1c8] ss:$16 sps:$4 sm:$0xff]  }
 0x512   :  { %v9470_v18 = vld [vmem:[#allocation11 + $0x18c] ss:$16 sps:$4 sm:$0xff]  }
 0x513   :  { %9851 = vpow2.f32 %v4961_v44  ;;  %v4963_v0 = vmul.f32 1.442695, %v4950_v37  ;;  %6673 = vmatpush2.bf16.msra.mxu0 %v9459_v2  ;;  %v9464_v2 = vld [vmem:[#allocation11 + $0x1ac] ss:$16 sps:$4 sm:$0xff]  }
 0x514   :  { %6674 = vmatprep.subr.bf16.mxu0 %v9467_v40 }
 0x515   :  { %9853 = vpow2.f32 %v4963_v0 }
 0x517   :  { %6675 = vmatpush2.bf16.msra.mxu0 %v9465_v47 }
 0x518   :  { %6676 = vmatprep.subr.bf16.mxu0 %v9473_v48  ;;  %v9462_v48 = vld [vmem:[#allocation11 + $0x1a8] ss:$16 sps:$4 sm:$0xff]  }
 0x51b   :  { %6677 = vmatpush2.bf16.msra.mxu0 %v9471_v7 }
 0x51c   :  { %6678 = vmatprep.subr.bf16.mxu0 %v9479_v8 }
 0x51f   :  { %6679 = vmatpush2.bf16.msra.mxu0 %v9477_v43 }
 0x520   :  { %v9852_v13 = vpop.eup %9851  ;;  %6680 = vmatprep.subr.bf16.mxu0 %v9485_v20 }
 0x521   :  { %v4973_v28 = vmul.f32 %v9852_v13, %v4941_v11  ;;  %v9476_v13 = vld [vmem:[#allocation11 + $0x16c] ss:$16 sps:$4 sm:$0xff]  }
 0x522   :  { %v9854_v29 = vpop.eup %9853 }
 0x523   :  { %v4974_v31 = vmul.f32 %v9854_v29, %v4942_v21  ;;  %6681 = vmatpush2.bf16.msra.mxu0 %v9483_v12  ;;  %v4981_v30 = vadd.f32 %v4973_v28, %v10442_v54  ;;  %v9408_v54 = vld [vmem:[#allocation11 + $0xc8] ss:$16 sps:$4 sm:$0xff]   ;;  %v9488_v29 = vld [vmem:[#allocation11 + $0x12c] ss:$16 sps:$4 sm:$0xff]  }
 0x524   :  { %6682 = vmatprep.subr.bf16.mxu0 %v9491_v25  ;;  %v9468_v12 = vld [vmem:[#allocation11 + $0x188] ss:$16 sps:$4 sm:$0xff]   ;;  %v9482_v25 = vld [vmem:[#allocation11 + $0x14c] ss:$16 sps:$4 sm:$0xff]  }
 0x525   :  { %v4982_v34 = vadd.f32 %v4974_v31, %v10445_v60  ;;  %v10502_v19 = vpack.c.bf16 %v4981_v30, %v4981_v30  ;;  %v9414_v60 = vld [vmem:[#allocation11 + $0xa8] ss:$16 sps:$4 sm:$0xff]   ;;  %v4943_v31 = vld [vmem:[#allocation5 + $0x30] sm:$0xff] }
 0x526   :  { %v9474_v21 = vld [vmem:[#allocation11 + $0x168] ss:$16 sps:$4 sm:$0xff]  }
 0x527   :  { %v10500_v10 = vpack.c.bf16 %v4982_v34, %v4982_v34  ;;  %6683 = vmatpush2.bf16.msra.mxu0 %v9489_v32  ;;  %v9480_v28 = vld [vmem:[#allocation11 + $0x148] ss:$16 sps:$4 sm:$0xff]  }
 0x528   :  { %6734 = vmatprep.subr.bf16.mxu0 %v9497_v33  ;;  %v9486_v32 = vld [vmem:[#allocation11 + $0x128] ss:$16 sps:$4 sm:$0xff]   ;;  %v9494_v33 = vld [vmem:[#allocation11 + $0x10c] ss:$16 sps:$4 sm:$0xff]  }
 0x529   :  { %6643 = vmatprep.mubr.bf16.mxu1 %v10500_v10  ;;  %v4944_v34 = vld [vmem:[#allocation5 + $0x38] sm:$0xff] }
 0x52a   :  { %6644 = vmatmul.mubr.bf16.vlgmr.msra.gmra.mxu1 %v10502_v19 }
 0x52b   :  { %6694 = vmatpush1.bf16.msra.mxu1 %v9402_v35  ;;  %6725 = vmatprep.mubr.bf16.mxu1 %v10475_v27  ;;  %v9438_v27 = vld [vmem:[#allocation11 + $0x28] ss:$16 sps:$4 sm:$0xff]  }
 0x52c   :  { %6695 = vmatprep.subr.bf16.mxu1 %v9410_v23 }
 0x52f   :  { %6696 = vmatpush1.bf16.msra.mxu1 %v9408_v54  ;;  %v9492_v54 = vld [vmem:[#allocation11 + $0x108] ss:$16 sps:$4 sm:$0xff]  }
 0x530   :  { %6697 = vmatprep.subr.bf16.mxu1 %v9416_v14 }
 0x533   :  { %6698 = vmatpush1.bf16.msra.mxu1 %v9414_v60  ;;  %v9500_v60 = vld [vmem:[#allocation11 + $0x4ec] ss:$16 sps:$4 sm:$0xff]  }
 0x534   :  { %6699 = vmatprep.subr.bf16.mxu1 %v9422_v45 }
 0x537   :  { %6700 = vmatpush1.bf16.msra.mxu1 %v9420_v49 }
 0x538   :  { %6701 = vmatprep.subr.bf16.mxu1 %v9428_v22 }
 0x53b   :  { %6702 = vmatpush1.bf16.msra.mxu1 %v9426_v50  ;;  %v9495_v50 = vld [vmem:[#allocation11 + $0x2e8] ss:$16 sps:$4 sm:$0xff]  }
 0x53c   :  { %6703 = vmatprep.subr.bf16.mxu1 %v9434_v52  ;;  %v9498_v52 = vld [vmem:[#allocation11 + $0x4e8] ss:$16 sps:$4 sm:$0xff]  }
 0x53f   :  { %6704 = vmatpush1.bf16.msra.mxu1 %v9432_v36 }
 0x540   :  { %6705 = vmatprep.subr.bf16.mxu1 %v9440_v15  ;;  %v9503_v15 = vld [vmem:[#allocation11 + $0x2cc] ss:$16 sps:$4 sm:$0xff]  }
 0x543   :  { %6706 = vmatpush1.bf16.msra.mxu1 %v9438_v27  ;;  %v9506_v27 = vld [vmem:[#allocation11 + $0x4cc] ss:$16 sps:$4 sm:$0xff]  }
 0x544   :  { %6707 = vmatprep.subr.bf16.mxu1 %v9446_v51  ;;  %v9509_v51 = vld [vmem:[#allocation11 + $0x2ac] ss:$16 sps:$4 sm:$0xff]  }
 0x547   :  { %6708 = vmatpush1.bf16.msra.mxu1 %v9444_v53  ;;  %v9512_v53 = vld [vmem:[#allocation11 + $0x4ac] ss:$16 sps:$4 sm:$0xff]  }
 0x548   :  { %6709 = vmatprep.subr.bf16.mxu1 %v9452_v55  ;;  %v9507_v55 = vld [vmem:[#allocation11 + $0x2a8] ss:$16 sps:$4 sm:$0xff]  }
 0x54a   :  { %v4889_v41 = vpop.f32.mrf.mxu1 }
 0x54b   :  { %v4890_v42 = vadd.f32 %v4889_v41, %v1700_v24  ;;  %v4930_v61 = vpop.f32.mrf.mxu0  ;;  %6710 = vmatpush2.bf16.msra.mxu1 %v9450_v58  ;;  %v9510_v58 = vld [vmem:[#allocation11 + $0x4a8] ss:$16 sps:$4 sm:$0xff]   ;;  %v9518_v24 = vld [vmem:[#allocation11 + $0x48c] ss:$16 sps:$4 sm:$0xff]  }
 0x54c   :  { %v4891_v56 = vpop.f32.mrf.mxu1  ;;  %6711 = vmatprep.subr.bf16.mxu1 %v9458_v38  ;;  %v9513_v38 = vld [vmem:[#allocation11 + $0x288] ss:$16 sps:$4 sm:$0xff]  }
 0x54d   :  { %v4931_v4 = vadd.f32 %v4930_v61, %v4890_v42  ;;  %v4892_v40 = vadd.f32 %v4891_v56, %v1704_v39  ;;  %v4932_v44 = vpop.f32.mrf.mxu0  ;;  %v9516_v39 = vld [vmem:[#allocation11 + $0x488] ss:$16 sps:$4 sm:$0xff]   ;;  %v9527_v61 = vld [vmem:[#allocation11 + $0x24c] ss:$16 sps:$4 sm:$0xff]  }
 0x54e   :  { %v4893_v37 = vpop.f32.mrf.mxu1  ;;  %v9519_v41 = vld [vmem:[#allocation11 + $0x268] ss:$16 sps:$4 sm:$0xff]  }
 0x54f   :  { %v4951_v46 = vmul.f32 0.5, %v4931_v4  ;;  %v4933_v0 = vadd.f32 %v4932_v44, %v4892_v40  ;;  %v4934_v47 = vpop.f32.mrf.mxu0  ;;  %6712 = vmatpush2.bf16.msra.mxu1 %v9456_v62  ;;  %v9522_v42 = vld [vmem:[#allocation11 + $0x468] ss:$16 sps:$4 sm:$0xff]   ;;  %v9530_v62 = vld [vmem:[#allocation11 + $0x44c] ss:$16 sps:$4 sm:$0xff]  }
 0x550   :  { %v4894_v7 = vpop.f32.mrf.mxu1  ;;  %6713 = vmatprep.subr.bf16.mxu1 %v9464_v2  ;;  %v9525_v56 = vld [vmem:[#allocation11 + $0x248] ss:$16 sps:$4 sm:$0xff]   ;;  %v9533_v4 = vld [vmem:[#allocation11 + $0x22c] ss:$16 sps:$4 sm:$0xff]  }
 0x551   :  { %v4965_v8 = vmul.f32 1.442695, %v4951_v46  ;;  %v4952_v43 = vmul.f32 0.5, %v4933_v0  ;;  %v4935_v20 = vpop.f32.mrf.mxu0  ;;  %v9528_v2 = vld [vmem:[#allocation11 + $0x448] ss:$16 sps:$4 sm:$0xff]  }
 0x552   :  { %v9536_v40 = vld [vmem:[#allocation11 + $0x42c] ss:$16 sps:$4 sm:$0xff]   ;;  %v9531_v44 = vld [vmem:[#allocation11 + $0x228] ss:$16 sps:$4 sm:$0xff]  }
 0x553   :  { %9855 = vpow2.f32 %v4965_v8  ;;  %v4967_v11 = vmul.f32 1.442695, %v4952_v43  ;;  %6714 = vmatpush2.bf16.msra.mxu1 %v9462_v48  ;;  %v9534_v37 = vld [vmem:[#allocation11 + $0x428] ss:$16 sps:$4 sm:$0xff]   ;;  %v9539_v46 = vld [vmem:[#allocation11 + $0x20c] ss:$16 sps:$4 sm:$0xff]  }
 0x554   :  { %6715 = vmatprep.subr.bf16.mxu1 %v9470_v18  ;;  %v9542_v0 = vld [vmem:[#allocation11 + $0x40c] ss:$16 sps:$4 sm:$0xff]   ;;  %v9537_v47 = vld [vmem:[#allocation11 + $0x208] ss:$16 sps:$4 sm:$0xff]  }
 0x555   :  { %9857 = vpow2.f32 %v4967_v11  ;;  %v9540_v48 = vld [vmem:[#allocation11 + $0x408] ss:$16 sps:$4 sm:$0xff]   ;;  %v9545_v7 = vld [vmem:[#allocation11 + $0x3ec] ss:$16 sps:$4 sm:$0xff]  }
 0x556   :  { %v9548_v18 = vld [vmem:[#allocation11 + $0x5ec] ss:$16 sps:$4 sm:$0xff]   ;;  %v9543_v8 = vld [vmem:[#allocation11 + $0x3e8] ss:$16 sps:$4 sm:$0xff]  }
 0x557   :  { %6716 = vmatpush2.bf16.msra.mxu1 %v9468_v12  ;;  %v9546_v43 = vld [vmem:[#allocation11 + $0x5e8] ss:$16 sps:$4 sm:$0xff]   ;;  %v9551_v20 = vld [vmem:[#allocation11 + $0x3cc] ss:$16 sps:$4 sm:$0xff]  }
 0x558   :  { %6717 = vmatprep.subr.bf16.mxu1 %v9476_v13  ;;  %v9554_v11 = vld [vmem:[#allocation11 + $0x5cc] ss:$16 sps:$4 sm:$0xff]   ;;  %v9549_v13 = vld [vmem:[#allocation11 + $0x3c8] ss:$16 sps:$4 sm:$0xff]  }
 0x55b   :  { %6718 = vmatpush2.bf16.msra.mxu1 %v9474_v21  ;;  %v9552_v21 = vld [vmem:[#allocation11 + $0x5c8] ss:$16 sps:$4 sm:$0xff]  }
 0x55c   :  { %6719 = vmatprep.subr.bf16.mxu1 %v9482_v25 }
 0x55f   :  { %6720 = vmatpush2.bf16.msra.mxu1 %v9480_v28  ;;  %v9557_v28 = vld [vmem:[#allocation11 + $0x3ac] ss:$16 sps:$4 sm:$0xff]  }
 0x560   :  { %v9856_v30 = vpop.eup %9855  ;;  %6721 = vmatprep.subr.bf16.mxu1 %v9488_v29  ;;  %v9560_v29 = vld [vmem:[#allocation11 + $0x5ac] ss:$16 sps:$4 sm:$0xff]  }
 0x561   :  { %v4975_v35 = vmul.f32 %v9856_v30, %v4943_v31  ;;  %v9558_v30 = vld [vmem:[#allocation11 + $0x5a8] ss:$16 sps:$4 sm:$0xff]  }
 0x562   :  { %v9858_v23 = vpop.eup %9857 }
 0x563   :  { %6722 = vmatpush2.bf16.msra.mxu1 %v9486_v32  ;;  %v4976_v14 = vmul.f32 %v9858_v23, %v4944_v34  ;;  %v4983_v45 = vadd.f32 %v4975_v35, %v10458_v57  ;;  %v9501_v57 = vld [vmem:[#allocation11 + $0x2c8] ss:$16 sps:$4 sm:$0xff]   ;;  %v9563_v34 = vld [vmem:[#allocation11 + $0x38c] ss:$16 sps:$4 sm:$0xff]  }
 0x564   :  { %6723 = vmatprep.subr.bf16.mxu1 %v9494_v33  ;;  %v9555_v32 = vld [vmem:[#allocation11 + $0x3a8] ss:$16 sps:$4 sm:$0xff]   ;;  %v9566_v35 = vld [vmem:[#allocation11 + $0x58c] ss:$16 sps:$4 sm:$0xff]  }
 0x565   :  { %v4984_v49 = vadd.f32 %v4976_v14, %v10461_v63  ;;  %v10515_v36 = vpack.c.bf16 %v4983_v45, %v4983_v45  ;;  %v9504_v63 = vld [vmem:[#allocation11 + $0x4c8] ss:$16 sps:$4 sm:$0xff]   ;;  %v9569_v14 = vld [vmem:[#allocation11 + $0x36c] ss:$16 sps:$4 sm:$0xff]  }
 0x566   :  { %v9561_v23 = vld [vmem:[#allocation11 + $0x388] ss:$16 sps:$4 sm:$0xff]  }
 0x567   :  { %6724 = vmatpush2.bf16.msra.mxu1 %v9492_v54  ;;  %v10513_v22 = vpack.c.bf16 %v4984_v49, %v4984_v49  ;;  %v9564_v54 = vld [vmem:[#allocation11 + $0x588] ss:$16 sps:$4 sm:$0xff]  }
 0x568   :  { %6775 = vmatprep.subr.bf16.mxu1 %v9500_v60  ;;  %v9572_v60 = vld [vmem:[#allocation11 + $0x56c] ss:$16 sps:$4 sm:$0xff]   ;;  %v9567_v45 = vld [vmem:[#allocation11 + $0x368] ss:$16 sps:$4 sm:$0xff]  }
 0x569   :  { %6684 = vmatprep.mubr.bf16.mxu0 %v10513_v22  ;;  %v9570_v49 = vld [vmem:[#allocation11 + $0x568] ss:$16 sps:$4 sm:$0xff]  }
 0x56a   :  { %6726 = vmatmul.mubr.bf16.vlgmr.msra.gmra.mxu1 %v10481_v6  ;;  %6685 = vmatmul.mubr.bf16.vlgmr.msra.gmra.mxu0 %v10515_v36  ;;  %v9515_v6 = vld [vmem:[#allocation11 + $0x28c] ss:$16 sps:$4 sm:$0xff]  }
 0x56b   :  { %6735 = vmatpush1.bf16.msra.mxu0 %v9495_v50  ;;  %6776 = vmatpush1.bf16.msra.mxu1 %v9498_v52  ;;  %v9575_v50 = vld [vmem:[#allocation11 + $0x34c] ss:$16 sps:$4 sm:$0xff]  }
 0x56c   :  { %6807 = vmatprep.mubr.bf16.mxu1 %v10500_v10  ;;  %6766 = vmatprep.mubr.bf16.mxu0 %v10488_v1  ;;  %v9521_v10 = vld [vmem:[#allocation11 + $0x26c] ss:$16 sps:$4 sm:$0xff]  }
 0x56d   :  { %6736 = vmatprep.subr.bf16.mxu0 %v9503_v15  ;;  %6777 = vmatprep.subr.bf16.mxu1 %v9506_v27  ;;  %v9524_v1 = vld [vmem:[#allocation11 + $0x46c] ss:$16 sps:$4 sm:$0xff]   ;;  %v9573_v15 = vld [vmem:[#allocation11 + $0x348] ss:$16 sps:$4 sm:$0xff]  }
 0x56e   :  { %v9578_v52 = vld [vmem:[#allocation11 + $0x54c] ss:$16 sps:$4 sm:$0xff]   ;;  %v9576_v27 = vld [vmem:[#allocation11 + $0x548] ss:$16 sps:$4 sm:$0xff]  }
 0x56f   :  { %6737 = vmatpush1.bf16.msra.mxu0 %v9501_v57  ;;  %6778 = vmatpush1.bf16.msra.mxu1 %v9504_v63  ;;  %v9581_v57 = vld [vmem:[#allocation11 + $0x32c] ss:$16 sps:$4 sm:$0xff]  }
 0x570   :  { %6738 = vmatprep.subr.bf16.mxu0 %v9509_v51  ;;  %6779 = vmatprep.subr.bf16.mxu1 %v9512_v53  ;;  %v9584_v63 = vld [vmem:[#allocation11 + $0x52c] ss:$16 sps:$4 sm:$0xff]   ;;  %v9579_v51 = vld [vmem:[#allocation11 + $0x328] ss:$16 sps:$4 sm:$0xff]  }
 0x571   :  { %v9582_v53 = vld [vmem:[#allocation11 + $0x528] ss:$16 sps:$4 sm:$0xff]  }
 0x573   :  { %6739 = vmatpush1.bf16.msra.mxu0 %v9507_v55  ;;  %6780 = vmatpush1.bf16.msra.mxu1 %v9510_v58  ;;  %v9587_v55 = vld [vmem:[#allocation11 + $0x30c] ss:$16 sps:$4 sm:$0xff]  }
 0x574   :  { %6740 = vmatprep.subr.bf16.mxu0 %v9515_v6  ;;  %6781 = vmatprep.subr.bf16.mxu1 %v9518_v24  ;;  %v9590_v58 = vld [vmem:[#allocation11 + $0x50c] ss:$16 sps:$4 sm:$0xff]   ;;  %v9585_v6 = vld [vmem:[#allocation11 + $0x308] ss:$16 sps:$4 sm:$0xff]  }
 0x575   :  { %v9588_v24 = vld [vmem:[#allocation11 + $0x508] ss:$16 sps:$4 sm:$0xff]  }
 0x577   :  { %6741 = vmatpush1.bf16.msra.mxu0 %v9513_v38  ;;  %6782 = vmatpush1.bf16.msra.mxu1 %v9516_v39  ;;  %v9593_v38 = vld [vmem:[#allocation11 + $0x6ec] ss:$16 sps:$4 sm:$0xff]  }
 0x578   :  { %6742 = vmatprep.subr.bf16.mxu0 %v9521_v10  ;;  %6783 = vmatprep.subr.bf16.mxu1 %v9524_v1  ;;  %v9641_v39 = vld [vmem:[#allocation13 + $0x74] ss:$8 sps:$4 sm:$0xff]   ;;  %v9591_v10 = vld [vmem:[#allocation11 + $0x6e8] ss:$16 sps:$4 sm:$0xff]  }
 0x579   :  { %v9596_v1 = vld [vmem:[#allocation11 + $0x6cc] ss:$16 sps:$4 sm:$0xff]  }
 0x57b   :  { %6743 = vmatpush1.bf16.msra.mxu0 %v9519_v41  ;;  %6784 = vmatpush1.bf16.msra.mxu1 %v9522_v42  ;;  %v9639_v41 = vld [vmem:[#allocation13 + $0x70] ss:$8 sps:$4 sm:$0xff]  }
 0x57c   :  { %6744 = vmatprep.subr.bf16.mxu0 %v9527_v61  ;;  %6785 = vmatprep.subr.bf16.mxu1 %v9530_v62  ;;  %v9594_v62 = vld [vmem:[#allocation11 + $0x6c8] ss:$16 sps:$4 sm:$0xff]  }
 0x57f   :  { %6745 = vmatpush1.bf16.msra.mxu0 %v9525_v56  ;;  %6786 = vmatpush1.bf16.msra.mxu1 %v9528_v2  ;;  %v9599_v2 = vld [vmem:[#allocation11 + $0x6ac] ss:$16 sps:$4 sm:$0xff]  }
 0x580   :  { %6746 = vmatprep.subr.bf16.mxu0 %v9533_v4  ;;  %6787 = vmatprep.subr.bf16.mxu1 %v9536_v40  ;;  %v9644_v4 = vld [vmem:[#allocation13 + $0x64] ss:$8 sps:$4 sm:$0xff]  }
 0x583   :  { %6747 = vmatpush1.bf16.msra.mxu0 %v9531_v44  ;;  %6788 = vmatpush1.bf16.msra.mxu1 %v9534_v37  ;;  %v9642_v44 = vld [vmem:[#allocation13 + $0x60] ss:$8 sps:$4 sm:$0xff]  }
 0x584   :  { %6748 = vmatprep.subr.bf16.mxu0 %v9539_v46  ;;  %6789 = vmatprep.subr.bf16.mxu1 %v9542_v0  ;;  %v9602_v46 = vld [vmem:[#allocation11 + $0x68c] ss:$16 sps:$4 sm:$0xff]  }
 0x585   :  { %v9647_v0 = vld [vmem:[#allocation13 + $0x54] ss:$8 sps:$4 sm:$0xff]  }
 0x587   :  { %6749 = vmatpush1.bf16.msra.mxu0 %v9537_v47  ;;  %6790 = vmatpush1.bf16.msra.mxu1 %v9540_v48  ;;  %v9600_v47 = vld [vmem:[#allocation11 + $0x688] ss:$16 sps:$4 sm:$0xff]   ;;  %v9605_v48 = vld [vmem:[#allocation11 + $0x66c] ss:$16 sps:$4 sm:$0xff]  }
 0x588   :  { %6750 = vmatprep.subr.bf16.mxu0 %v9545_v7  ;;  %6791 = vmatprep.subr.bf16.mxu1 %v9548_v18  ;;  %v9650_v7 = vld [vmem:[#allocation13 + $0x44] ss:$8 sps:$4 sm:$0xff]   ;;  %v9648_v18 = vld [vmem:[#allocation13 + $0x40] ss:$8 sps:$4 sm:$0xff]  }
 0x58a   :  { %v10522_v12 = vpop.f32.mrf.mxu1 }
 0x58b   :  { %6751 = vmatpush2.bf16.msra.mxu0 %v9543_v8  ;;  %6792 = vmatpush2.bf16.msra.mxu1 %v9546_v43  ;;  %v9603_v8 = vld [vmem:[#allocation11 + $0x668] ss:$16 sps:$4 sm:$0xff]   ;;  %v9608_v43 = vld [vmem:[#allocation11 + $0x64c] ss:$16 sps:$4 sm:$0xff]  }
 0x58c   :  { %v10524_v25 = vpop.f32.mrf.mxu1  ;;  %6752 = vmatprep.subr.bf16.mxu0 %v9551_v20  ;;  %6793 = vmatprep.subr.bf16.mxu1 %v9554_v11  ;;  %v9653_v20 = vld [vmem:[#allocation13 + $0x34] ss:$8 sps:$4 sm:$0xff]   ;;  %v9651_v11 = vld [vmem:[#allocation13 + $0x30] ss:$8 sps:$4 sm:$0xff]  }
 0x58e   :  { %v6567_v31 = vpop.f32.mrf.mxu1 }
 0x58f   :  { %6753 = vmatpush2.bf16.msra.mxu0 %v9549_v13  ;;  %6794 = vmatpush2.bf16.msra.mxu1 %v9552_v21  ;;  %v9611_v13 = vld [vmem:[#allocation11 + $0x62c] ss:$16 sps:$4 sm:$0xff]  }
 0x590   :  { %v6568_v33 = vpop.f32.mrf.mxu1  ;;  %6754 = vmatprep.subr.bf16.mxu0 %v9557_v28  ;;  %6795 = vmatprep.subr.bf16.mxu1 %v9560_v29  ;;  %v9656_v21 = vld [vmem:[#allocation13 + $0x24] ss:$8 sps:$4 sm:$0xff]   ;;  %v9609_v28 = vld [vmem:[#allocation11 + $0x628] ss:$16 sps:$4 sm:$0xff]   ;;  %v9659_v31 = vld [vmem:[#allocation13 + $0x14] ss:$8 sps:$4 sm:$0xff]  }
 0x591   :  { %v9614_v29 = vld [vmem:[#allocation11 + $0x60c] ss:$16 sps:$4 sm:$0xff]  }
 0x592   :  { %v9617_v33 = vld [vmem:[#allocation11 + $0x7ec] ss:$16 sps:$4 sm:$0xff]  }
 0x593   :  { %6755 = vmatpush2.bf16.msra.mxu0 %v9555_v32  ;;  %6796 = vmatpush2.bf16.msra.mxu1 %v9558_v30  ;;  %v9657_v32 = vld [vmem:[#allocation13 + $0x10] ss:$8 sps:$4 sm:$0xff]  }
 0x594   :  { %6756 = vmatprep.subr.bf16.mxu0 %v9563_v34  ;;  %6797 = vmatprep.subr.bf16.mxu1 %v9566_v35  ;;  %v9612_v30 = vld [vmem:[#allocation11 + $0x608] ss:$16 sps:$4 sm:$0xff]   ;;  %v9662_v34 = vld [vmem:[#allocation13 + $0x4] ss:$8 sps:$4 sm:$0xff]  }
 0x595   :  { %v9660_v35 = vld [vmem:[#allocation13] ss:$8 sps:$4 sm:$0xff]  }
 0x597   :  { %6757 = vmatpush2.bf16.msra.mxu0 %v9561_v23  ;;  %6798 = vmatpush2.bf16.msra.mxu1 %v9564_v54  ;;  %v9615_v23 = vld [vmem:[#allocation11 + $0x7e8] ss:$16 sps:$4 sm:$0xff]   ;;  %v9620_v54 = vld [vmem:[#allocation11 + $0x7cc] ss:$16 sps:$4 sm:$0xff]  }
 0x598   :  { %6758 = vmatprep.subr.bf16.mxu0 %v9569_v14  ;;  %6799 = vmatprep.subr.bf16.mxu1 %v9572_v60  ;;  %v9665_v14 = vld [vmem:[#allocation13 + $0xf4] ss:$8 sps:$4 sm:$0xff]   ;;  %v9663_v60 = vld [vmem:[#allocation13 + $0xf0] ss:$8 sps:$4 sm:$0xff]  }
 0x59b   :  { %6759 = vmatpush2.bf16.msra.mxu0 %v9567_v45  ;;  %6800 = vmatpush2.bf16.msra.mxu1 %v9570_v49  ;;  %v9618_v45 = vld [vmem:[#allocation11 + $0x7c8] ss:$16 sps:$4 sm:$0xff]   ;;  %v9623_v49 = vld [vmem:[#allocation11 + $0x7ac] ss:$16 sps:$4 sm:$0xff]  }
 0x59c   :  { %6760 = vmatprep.subr.bf16.mxu0 %v9575_v50  ;;  %6801 = vmatprep.subr.bf16.mxu1 %v9578_v52  ;;  %v9668_v50 = vld [vmem:[#allocation13 + $0xe4] ss:$8 sps:$4 sm:$0xff]   ;;  %v9666_v52 = vld [vmem:[#allocation13 + $0xe0] ss:$8 sps:$4 sm:$0xff]  }
 0x59f   :  { %6761 = vmatpush2.bf16.msra.mxu0 %v9573_v15  ;;  %6802 = vmatpush2.bf16.msra.mxu1 %v9576_v27  ;;  %v9621_v15 = vld [vmem:[#allocation11 + $0x7a8] ss:$16 sps:$4 sm:$0xff]   ;;  %v9626_v27 = vld [vmem:[#allocation11 + $0x78c] ss:$16 sps:$4 sm:$0xff]  }
 0x5a0   :  { %6762 = vmatprep.subr.bf16.mxu0 %v9581_v57  ;;  %6803 = vmatprep.subr.bf16.mxu1 %v9584_v63  ;;  %v9671_v57 = vld [vmem:[#allocation13 + $0xd4] ss:$8 sps:$4 sm:$0xff]   ;;  %v9669_v63 = vld [vmem:[#allocation13 + $0xd0] ss:$8 sps:$4 sm:$0xff]  }
 0x5a3   :  { %6763 = vmatpush2.bf16.msra.mxu0 %v9579_v51  ;;  %6804 = vmatpush2.bf16.msra.mxu1 %v9582_v53  ;;  %v9624_v51 = vld [vmem:[#allocation11 + $0x788] ss:$16 sps:$4 sm:$0xff]   ;;  %v9629_v53 = vld [vmem:[#allocation11 + $0x76c] ss:$16 sps:$4 sm:$0xff]  }
 0x5a4   :  { %6764 = vmatprep.subr.bf16.mxu0 %v9587_v55  ;;  %6805 = vmatprep.subr.bf16.mxu1 %v9590_v58  ;;  %v9674_v55 = vld [vmem:[#allocation13 + $0xc4] ss:$8 sps:$4 sm:$0xff]   ;;  %v9672_v58 = vld [vmem:[#allocation13 + $0xc0] ss:$8 sps:$4 sm:$0xff]  }
 0x5a7   :  { %6765 = vmatpush2.bf16.msra.mxu0 %v9585_v6  ;;  %6806 = vmatpush2.bf16.msra.mxu1 %v9588_v24  ;;  %v9627_v6 = vld [vmem:[#allocation11 + $0x768] ss:$16 sps:$4 sm:$0xff]   ;;  %v9632_v24 = vld [vmem:[#allocation11 + $0x74c] ss:$16 sps:$4 sm:$0xff]  }
 0x5a8   :  { %6816 = vmatprep.subr.bf16.mxu0 %v9593_v38  ;;  %7401 = vmatprep.subr.bf16.mxu1 %v9641_v39  ;;  %v9677_v38 = vld [vmem:[#allocation13 + $0xb4] ss:$8 sps:$4 sm:$0xff]   ;;  %v9675_v39 = vld [vmem:[#allocation13 + $0xb0] ss:$8 sps:$4 sm:$0xff]  }
 0x5aa   :  { %6767 = vmatmul.mubr.bf16.vlgmr.msra.gmra.mxu0 %v10490_v59  ;;  %6808 = vmatmul.mubr.bf16.vlgmr.msra.gmra.mxu1 %v10502_v19  ;;  %v6604_v42 = vpop.f32.mrf.mxu0  ;;  %v9597_v19 = vld [vmem:[#allocation11 + $0x6a8] ss:$16 sps:$4 sm:$0xff]  }
 0x5ab   :  { %v10529_v61 = vadd.f32 %v6604_v42, %v10522_v12  ;;  %6817 = vmatpush1.bf16.msra.mxu0 %v9591_v10  ;;  %6848 = vmatprep.mubr.bf16.mxu0 %v10513_v22  ;;  %v9645_v22 = vld [vmem:[#allocation13 + $0x50] ss:$8 sps:$4 sm:$0xff]   ;;  %v9678_v42 = vld [vmem:[#allocation13 + $0xa0] ss:$8 sps:$4 sm:$0xff]  }
 0x5ac   :  { %v6606_v56 = vpop.f32.mrf.mxu0  ;;  %6818 = vmatprep.subr.bf16.mxu0 %v9596_v1  ;;  %7402 = vmatpush1.bf16.msra.mxu1 %v9639_v41  ;;  %v9606_v12 = vld [vmem:[#allocation11 + $0x648] ss:$16 sps:$4 sm:$0xff]   ;;  %v9635_v1 = vld [vmem:[#allocation11 + $0x72c] ss:$16 sps:$4 sm:$0xff]  }
 0x5ad   :  { %v10533_v40 = vadd.f32 %v6606_v56, %v10524_v25  ;;  %7403 = vmatprep.subr.bf16.mxu1 %v9644_v4  ;;  %v9654_v25 = vld [vmem:[#allocation13 + $0x20] ss:$8 sps:$4 sm:$0xff]   ;;  %v9680_v41 = vld [vmem:[#allocation13 + $0xa4] ss:$8 sps:$4 sm:$0xff]   ;;  %v9683_v56 = vld [vmem:[#allocation13 + $0x94] ss:$8 sps:$4 sm:$0xff]  }
 0x5ae   :  { %v6608_v59 = vpop.f32.mrf.mxu0  ;;  %v9630_v10 = vld [vmem:[#allocation11 + $0x748] ss:$16 sps:$4 sm:$0xff]  }
 0x5af   :  { %6819 = vmatpush1.bf16.msra.mxu0 %v9594_v62  ;;  %v9633_v62 = vld [vmem:[#allocation11 + $0x728] ss:$16 sps:$4 sm:$0xff]  }
 0x5b0   :  { %v6609_v37 = vpop.f32.mrf.mxu0  ;;  %6820 = vmatprep.subr.bf16.mxu0 %v9599_v2  ;;  %7404 = vmatpush1.bf16.msra.mxu1 %v9642_v44  ;;  %v9638_v2 = vld [vmem:[#allocation11 + $0x70c] ss:$16 sps:$4 sm:$0xff]   ;;  %v9681_v4 = vld [vmem:[#allocation13 + $0x90] ss:$8 sps:$4 sm:$0xff]  }
 0x5b1   :  { %7405 = vmatprep.subr.bf16.mxu1 %v9647_v0  ;;  %v9686_v44 = vld [vmem:[#allocation13 + $0x84] ss:$8 sps:$4 sm:$0xff]   ;;  %v9636_v59 = vld [vmem:[#allocation11 + $0x708] ss:$16 sps:$4 sm:$0xff]  }
 0x5b3   :  { %6821 = vmatpush1.bf16.msra.mxu0 %v9597_v19  ;;  %v9684_v19 = vld [vmem:[#allocation13 + $0x80] ss:$8 sps:$4 sm:$0xff]  }
 0x5b4   :  { %6822 = vmatprep.subr.bf16.mxu0 %v9602_v46  ;;  %7406 = vmatpush1.bf16.msra.mxu1 %v9645_v22 }
 0x5b5   :  { %7407 = vmatprep.subr.bf16.mxu1 %v9650_v7  ;;  %v9689_v7 = vld [vmem:[#allocation13 + $0x174] ss:$8 sps:$4 sm:$0xff]  }
 0x5b7   :  { %6823 = vmatpush1.bf16.msra.mxu0 %v9600_v47 }
 0x5b8   :  { %6824 = vmatprep.subr.bf16.mxu0 %v9605_v48  ;;  %7408 = vmatpush1.bf16.msra.mxu1 %v9648_v18  ;;  %v9687_v48 = vld [vmem:[#allocation13 + $0x170] ss:$8 sps:$4 sm:$0xff]  }
 0x5b9   :  { %7409 = vmatprep.subr.bf16.mxu1 %v9653_v20 }
 0x5bb   :  { %6825 = vmatpush1.bf16.msra.mxu0 %v9603_v8 }
 0x5bc   :  { %6826 = vmatprep.subr.bf16.mxu0 %v9608_v43  ;;  %7410 = vmatpush1.bf16.msra.mxu1 %v9651_v11  ;;  %v9692_v11 = vld [vmem:[#allocation13 + $0x164] ss:$8 sps:$4 sm:$0xff]  }
 0x5bd   :  { %7411 = vmatprep.subr.bf16.mxu1 %v9656_v21 }
 0x5bf   :  { %6827 = vmatpush1.bf16.msra.mxu0 %v9606_v12 }
 0x5c0   :  { %6828 = vmatprep.subr.bf16.mxu0 %v9611_v13  ;;  %7412 = vmatpush1.bf16.msra.mxu1 %v9654_v25  ;;  %v9690_v13 = vld [vmem:[#allocation13 + $0x160] ss:$8 sps:$4 sm:$0xff]  }
 0x5c1   :  { %7413 = vmatprep.subr.bf16.mxu1 %v9659_v31 }
 0x5c3   :  { %6829 = vmatpush1.bf16.msra.mxu0 %v9609_v28 }
 0x5c4   :  { %6830 = vmatprep.subr.bf16.mxu0 %v9614_v29  ;;  %7414 = vmatpush1.bf16.msra.mxu1 %v9657_v32  ;;  %v9695_v32 = vld [vmem:[#allocation13 + $0x154] ss:$8 sps:$4 sm:$0xff]  }
 0x5c5   :  { %7415 = vmatprep.subr.bf16.mxu1 %v9662_v34  ;;  %v9693_v34 = vld [vmem:[#allocation13 + $0x150] ss:$8 sps:$4 sm:$0xff]  }
 0x5c7   :  { %6831 = vmatpush1.bf16.msra.mxu0 %v9612_v30 }
 0x5c8   :  { %6832 = vmatprep.subr.bf16.mxu0 %v9617_v33  ;;  %7416 = vmatpush1.bf16.msra.mxu1 %v9660_v35 }
 0x5c9   :  { %7417 = vmatprep.subr.bf16.mxu1 %v9665_v14  ;;  %v9698_v14 = vld [vmem:[#allocation13 + $0x144] ss:$8 sps:$4 sm:$0xff]  }
 0x5cb   :  { %6833 = vmatpush2.bf16.msra.mxu0 %v9615_v23 }
 0x5cc   :  { %6834 = vmatprep.subr.bf16.mxu0 %v9620_v54  ;;  %7418 = vmatpush2.bf16.msra.mxu1 %v9663_v60  ;;  %v9696_v60 = vld [vmem:[#allocation13 + $0x140] ss:$8 sps:$4 sm:$0xff]  }
 0x5cd   :  { %7419 = vmatprep.subr.bf16.mxu1 %v9668_v50 }
 0x5cf   :  { %6835 = vmatpush2.bf16.msra.mxu0 %v9618_v45 }
 0x5d0   :  { %6836 = vmatprep.subr.bf16.mxu0 %v9623_v49  ;;  %7420 = vmatpush2.bf16.msra.mxu1 %v9666_v52 }
 0x5d1   :  { %7421 = vmatprep.subr.bf16.mxu1 %v9671_v57 }
 0x5d3   :  { %6837 = vmatpush2.bf16.msra.mxu0 %v9621_v15  ;;  %v9701_v15 = vld [vmem:[#allocation13 + $0x134] ss:$8 sps:$4 sm:$0xff]  }
 0x5d4   :  { %6838 = vmatprep.subr.bf16.mxu0 %v9626_v27  ;;  %7422 = vmatpush2.bf16.msra.mxu1 %v9669_v63  ;;  %v9699_v27 = vld [vmem:[#allocation13 + $0x130] ss:$8 sps:$4 sm:$0xff]  }
 0x5d5   :  { %7423 = vmatprep.subr.bf16.mxu1 %v9674_v55  ;;  %v9704_v55 = vld [vmem:[#allocation13 + $0x124] ss:$8 sps:$4 sm:$0xff]  }
 0x5d7   :  { %6839 = vmatpush2.bf16.msra.mxu0 %v9624_v51 }
 0x5d8   :  { %6840 = vmatprep.subr.bf16.mxu0 %v9629_v53  ;;  %7424 = vmatpush2.bf16.msra.mxu1 %v9672_v58  ;;  %v9702_v58 = vld [vmem:[#allocation13 + $0x120] ss:$8 sps:$4 sm:$0xff]  }
 0x5d9   :  { %7425 = vmatprep.subr.bf16.mxu1 %v9677_v38 }
 0x5db   :  { %6841 = vmatpush2.bf16.msra.mxu0 %v9627_v6 }
 0x5dc   :  { %6842 = vmatprep.subr.bf16.mxu0 %v9632_v24  ;;  %7426 = vmatpush2.bf16.msra.mxu1 %v9675_v39 }
 0x5dd   :  { %7427 = vmatprep.subr.bf16.mxu1 %v9680_v41 }
 0x5df   :  { %6843 = vmatpush2.bf16.msra.mxu0 %v9630_v10  ;;  %v9707_v10 = vld [vmem:[#allocation13 + $0x114] ss:$8 sps:$4 sm:$0xff]  }
 0x5e0   :  { %6844 = vmatprep.subr.bf16.mxu0 %v9635_v1  ;;  %7428 = vmatpush2.bf16.msra.mxu1 %v9678_v42  ;;  %v9705_v1 = vld [vmem:[#allocation13 + $0x110] ss:$8 sps:$4 sm:$0xff]  }
 0x5e1   :  { %7429 = vmatprep.subr.bf16.mxu1 %v9683_v56 }
 0x5e3   :  { %6845 = vmatpush2.bf16.msra.mxu0 %v9633_v62 }
 0x5e4   :  { %6846 = vmatprep.subr.bf16.mxu0 %v9638_v2  ;;  %7430 = vmatpush2.bf16.msra.mxu1 %v9681_v4  ;;  %v9710_v2 = vld [vmem:[#allocation13 + $0x104] ss:$8 sps:$4 sm:$0xff]   ;;  %v9708_v4 = vld [vmem:[#allocation13 + $0x100] ss:$8 sps:$4 sm:$0xff]  }
 0x5e5   :  { %7431 = vmatprep.subr.bf16.mxu1 %v9686_v44 }
 0x5e7   :  { %6847 = vmatpush2.bf16.msra.mxu0 %v9636_v59 }
 0x5e8   :  { %7432 = vmatpush2.bf16.msra.mxu1 %v9684_v19  ;;  %7442 = vmatprep.subr.bf16.mxu0 %v9689_v7 }
 0x5ea   :  { %6849 = vmatmul.mubr.bf16.vlgmr.msra.gmra.mxu0 %v10515_v36  ;;  %v6645_v37 = vpop.f32.mrf.mxu1 }
 0x5eb   :  { %v6646_v46 = vadd.f32 %v6645_v37, %v10529_v61  ;;  %7443 = vmatpush1.bf16.msra.mxu0 %v9687_v48 }
 0x5ec   :  { %v6647_v0 = vpop.f32.mrf.mxu1  ;;  %7444 = vmatprep.subr.bf16.mxu0 %v9692_v11 }
 0x5ed   :  { %v6648_v43 = vadd.f32 %v6647_v0, %v10533_v40  ;;  %v9711_v0 = vld [vmem:[#allocation13 + $0x1f0] ss:$8 sps:$4 sm:$0xff]  }
 0x5ee   :  { %v6649_v22 = vpop.f32.mrf.mxu1 }
 0x5ef   :  { %7445 = vmatpush1.bf16.msra.mxu0 %v9690_v13  ;;  %v9719_v13 = vld [vmem:[#allocation13 + $0x1d4] ss:$8 sps:$4 sm:$0xff]  }
 0x5f0   :  { %v6650_v47 = vpop.f32.mrf.mxu1  ;;  %7446 = vmatprep.subr.bf16.mxu0 %v9695_v32  ;;  %v9723_v32 = vld [vmem:[#allocation13 + $0x1b0] ss:$8 sps:$4 sm:$0xff]  }
 0x5f3   :  { %7447 = vmatpush1.bf16.msra.mxu0 %v9693_v34 }
 0x5f4   :  { %7448 = vmatprep.subr.bf16.mxu0 %v9698_v14 }
 0x5f7   :  { %7449 = vmatpush1.bf16.msra.mxu0 %v9696_v60 }
 0x5f8   :  { %7450 = vmatprep.subr.bf16.mxu0 %v9701_v15 }
 0x5fb   :  { %7451 = vmatpush1.bf16.msra.mxu0 %v9699_v27  ;;  %v9729_v27 = vld [vmem:[#allocation13 + $0x190] ss:$8 sps:$4 sm:$0xff]  }
 0x5fc   :  { %7452 = vmatprep.subr.bf16.mxu0 %v9704_v55 }
 0x5ff   :  { %7453 = vmatpush1.bf16.msra.mxu0 %v9702_v58 }
 0x600   :  { %7454 = vmatprep.subr.bf16.mxu0 %v9707_v10 }
 0x603   :  { %7455 = vmatpush1.bf16.msra.mxu0 %v9705_v1 }
 0x604   :  { %7456 = vmatprep.subr.bf16.mxu0 %v9710_v2 }
 0x607   :  { %7457 = vmatpush1.bf16.msra.mxu0 %v9708_v4 }
 0x62a   :  { %v10537_v18 = vpop.f32.mrf.mxu1  ;;  %v6686_v8 = vpop.f32.mrf.mxu0 }
 0x62b   :  { %v6687_v20 = vadd.f32 %v6686_v8, %v6646_v46  ;;  %v9713_v46 = vld [vmem:[#allocation13 + $0x1f4] ss:$8 sps:$4 sm:$0xff]   ;;  %v9716_v8 = vld [vmem:[#allocation13 + $0x1e4] ss:$8 sps:$4 sm:$0xff]  }
 0x62c   :  { %v10540_v12 = vpop.f32.mrf.mxu1  ;;  %v6688_v36 = vpop.f32.mrf.mxu0  ;;  %7458 = vmatprep.subr.bf16.mxu0 %v9713_v46 }
 0x62d   :  { %v6857_v21 = vrot.slane %v6687_v20, 4  ;;  %v6689_v61 = vadd.f32 %v6688_v36, %v6648_v43  ;;  %7459 = vmatpush2.bf16.msra.mxu0 %v9711_v0  ;;  %v9714_v43 = vld [vmem:[#allocation13 + $0x1e0] ss:$8 sps:$4 sm:$0xff]  }
 0x62e   :  { %v6731_v25 = vpop.f32.mrf.mxu1  ;;  %v6690_v28 = vpop.f32.mrf.mxu0  ;;  %7460 = vmatprep.subr.bf16.mxu0 %v9716_v8 }
 0x62f   :  { %v6858_v29 = vadd.f32 %v6857_v21, %v6687_v20  ;;  %v6863_v31 = vrot.slane %v6689_v61, 4  ;;  %v9717_v21 = vld [vmem:[#allocation13 + $0x1d0] ss:$8 sps:$4 sm:$0xff]   ;;  %v9720_v25 = vld [vmem:[#allocation13 + $0x1c0] ss:$8 sps:$4 sm:$0xff]  }
 0x630   :  { %v6732_v30 = vpop.f32.mrf.mxu1  ;;  %v6691_v33 = vpop.f32.mrf.mxu0  ;;  %v9876_v28 = vld [vmem:[#allocation19] sm:$0xff] }
 0x631   :  { %v6859_v35 = vrot.slane %v6858_v29, 2  ;;  %v6864_v40 = vadd.f32 %v6863_v31, %v6689_v61  ;;  %7461 = vmatpush2.bf16.msra.mxu0 %v9714_v43  ;;  %v9725_v31 = vld [vmem:[#allocation13 + $0x1b4] ss:$8 sps:$4 sm:$0xff]   ;;  %v6940_v30 = vrot.slane %v9876_v28, %v10448_v9  ;;  %v6976_v33 = vrot.slane %v9876_v28, %v10421_v26 }
 0x632   :  { %7462 = vmatprep.subr.bf16.mxu0 %v9719_v13 }
 0x633   :  { %v6860_v23 = vadd.f32 %v6859_v35, %v6858_v29  ;;  %v6865_v54 = vrot.slane %v6864_v40, 2  ;;  %v6936_v29 = vrot.slane %v9876_v28, %v10418_v17  ;;  %v6980_v35 = vrot.slane %v9876_v28, %v10451_v16 }
 0x634   :  { %v6960_v60 = vrot.slane %v6940_v30, %v10418_v17 }
 0x635   :  { %v6861_v45 = vrot.slane %v6860_v23, 1  ;;  %v6866_v49 = vadd.f32 %v6865_v54, %v6864_v40  ;;  %7463 = vmatpush2.bf16.msra.mxu0 %v9717_v21  ;;  %v6956_v34 = vrot.slane %v6936_v29, %v10418_v17  ;;  %v9728_v40 = vld [vmem:[#allocation13 + $0x1a4] ss:$8 sps:$4 sm:$0xff]   ;;  %v9726_v54 = vld [vmem:[#allocation13 + $0x1a0] ss:$8 sps:$4 sm:$0xff]   ;;  %v7000_v15 = vrot.slane %v6980_v35, %v10421_v26 }
 0x637   :  { %v6862_v50 = vadd.f32 %v6861_v45, %v6860_v23  ;;  %v6867_v52 = vrot.slane %v6866_v49, 1 }
 0x639   :  { %v6881_v57 = vmul.f32 0.125, %v6862_v50  ;;  %v6868_v63 = vadd.f32 %v6867_v52, %v6866_v49  ;;  %v6996_v49 = vrot.slane %v6976_v33, %v10421_v26 }
 0x63b   :  { %v10542_v51 = vsub.f32 %v6687_v20, %v6881_v57  ;;  %v6882_v53 = vmul.f32 0.125, %v6868_v63  ;;  %v9731_v57 = vld [vmem:[#allocation13 + $0x194] ss:$8 sps:$4 sm:$0xff]   ;;  %v9734_v63 = vld [vmem:[#allocation13 + $0x184] ss:$8 sps:$4 sm:$0xff]  }
 0x63d   :  { %v6889_v6 = vmul.f32 %v10542_v51, %v10542_v51  ;;  %v10546_v24 = vsub.f32 %v6689_v61, %v6882_v53  ;;  %v9722_v61 = vld [vmem:[#allocation13 + $0x1c4] ss:$8 sps:$4 sm:$0xff]  }
 0x63e   :  { %7464 = vmatprep.subr.bf16.mxu0 %v9722_v61 }
 0x63f   :  { %v6893_v38 = vrot.slane %v6889_v6, 4  ;;  %v6890_v39 = vmul.f32 %v10546_v24, %v10546_v24  ;;  %7465 = vmatpush2.bf16.msra.mxu0 %v9720_v25 }
 0x640   :  { %7466 = vmatprep.subr.bf16.mxu0 %v9725_v31 }
 0x641   :  { %v6894_v41 = vadd.f32 %v6893_v38, %v6889_v6  ;;  %v6899_v42 = vrot.slane %v6890_v39, 4 }
 0x643   :  { %v6895_v62 = vrot.slane %v6894_v41, 2  ;;  %v6900_v56 = vadd.f32 %v6899_v42, %v6890_v39  ;;  %7467 = vmatpush2.bf16.msra.mxu0 %v9723_v32 }
 0x644   :  { %7468 = vmatprep.subr.bf16.mxu0 %v9728_v40 }
 0x645   :  { %v6896_v44 = vadd.f32 %v6895_v62, %v6894_v41  ;;  %v6901_v59 = vrot.slane %v6900_v56, 2 }
 0x647   :  { %v6897_v19 = vrot.slane %v6896_v44, 1  ;;  %v6902_v37 = vadd.f32 %v6901_v59, %v6900_v56  ;;  %7469 = vmatpush2.bf16.msra.mxu0 %v9726_v54 }
 0x648   :  { %7470 = vmatprep.subr.bf16.mxu0 %v9731_v57 }
 0x649   :  { %v6898_v22 = vadd.f32 %v6897_v19, %v6896_v44  ;;  %v6903_v47 = vrot.slane %v6902_v37, 1 }
 0x64b   :  { %v6917_v48 = vmul.f32 0.125, %v6898_v22  ;;  %v6904_v7 = vadd.f32 %v6903_v47, %v6902_v37  ;;  %7471 = vmatpush2.bf16.msra.mxu0 %v9729_v27 }
 0x64c   :  { %7472 = vmatprep.subr.bf16.mxu0 %v9734_v63 }
 0x64d   :  { %v6921_v20 = vadd.f32 1e-05, %v6917_v48  ;;  %v6918_v11 = vmul.f32 0.125, %v6904_v7  ;;  %v9735_v48 = vld [vmem:[#allocation14 + $0x70] ss:$8 sps:$4 sm:$0xff]  }
 0x64e   :  { %v9737_v7 = vld [vmem:[#allocation14 + $0x74] ss:$8 sps:$4 sm:$0xff]  }
 0x64f   :  { %9859 = vrsqrt.f32 %v6921_v20  ;;  %v6922_v36 = vadd.f32 1e-05, %v6918_v11  ;;  %7735 = vmatprep.subr.bf16.mxu1 %v9737_v7  ;;  %v9743_v7 = vld [vmem:[#allocation14 + $0x54] ss:$8 sps:$4 sm:$0xff]  }
 0x651   :  { %9861 = vrsqrt.f32 %v6922_v36 }
 0x65c   :  { %v9860_v23 = vpop.eup %9859 }
 0x65d   :  { %v6929_v14 = vmul.f32 %v9860_v23, %v10542_v51  ;;  %v9732_v51 = vld [vmem:[#allocation13 + $0x180] ss:$8 sps:$4 sm:$0xff]  }
 0x65e   :  { %v9862_v45 = vpop.eup %9861  ;;  %7473 = vmatpush2.bf16.msra.mxu0 %v9732_v51  ;;  %v9877_v51 = vld [vmem:[#allocation19 + $0x8] sm:$0xff] }
 0x65f   :  { %v6969_v50 = vmul.f32 %v6956_v34, %v6929_v14  ;;  %v6930_v52 = vmul.f32 %v9862_v45, %v10546_v24 }
 0x661   :  { %v6970_v53 = vmul.f32 %v6960_v60, %v6930_v52  ;;  %v7009_v55 = vadd.f32 %v6996_v49, %v6969_v50 }
 0x663   :  { %v7010_v58 = vadd.f32 %v7000_v15, %v6970_v53  ;;  %v7013_v38 = vpack.c.bf16 %v7009_v55, %v7009_v55 }
 0x665   :  { %v7014_v6 = vpack.c.bf16 %v7010_v58, %v7010_v58  ;;  %v6944_v58 = vrot.slane %v9877_v51, %v10418_v17 }
 0x667   :  { %7433 = vmatprep.mubr.bf16.mxu1 %v7014_v6  ;;  %v6948_v6 = vrot.slane %v9877_v51, %v10448_v9 }
 0x668   :  { %7434 = vmatmul.mubr.bf16.vlgmr.msra.gmra.mxu1 %v7013_v38  ;;  %v6984_v38 = vrot.slane %v9877_v51, %v10421_v26 }
 0x669   :  { %7736 = vmatpush1.bf16.msra.mxu1 %v9735_v48 }
 0x66a   :  { %v6768_v39 = vpop.f32.mrf.mxu0  ;;  %v6809_v10 = vpop.f32.mrf.mxu1 }
 0x66b   :  { %v6769_v24 = vadd.f32 %v6768_v39, %v10537_v18  ;;  %v6964_v39 = vrot.slane %v6944_v58, %v10418_v17 }
 0x66c   :  { %v6770_v1 = vpop.f32.mrf.mxu0  ;;  %v6811_v41 = vpop.f32.mrf.mxu1 }
 0x66d   :  { %v6810_v42 = vadd.f32 %v6809_v10, %v6769_v24  ;;  %v6771_v44 = vadd.f32 %v6770_v1, %v10540_v12  ;;  %v6988_v10 = vrot.slane %v9877_v51, %v10451_v16  ;;  %v9740_v16 = vld [vmem:[#allocation14 + $0x64] ss:$8 sps:$4 sm:$0xff]  }
 0x66e   :  { %v6772_v62 = vpop.f32.mrf.mxu0  ;;  %v6813_v56 = vpop.f32.mrf.mxu1  ;;  %7737 = vmatprep.subr.bf16.mxu1 %v9740_v16 }
 0x66f   :  { %v6812_v19 = vadd.f32 %v6811_v41, %v6771_v44  ;;  %v6968_v41 = vrot.slane %v6948_v6, %v10418_v17  ;;  %v7004_v62 = vrot.slane %v6984_v38, %v10421_v26 }
 0x670   :  { %v6773_v2 = vpop.f32.mrf.mxu0  ;;  %v6814_v4 = vpop.f32.mrf.mxu1 }
 0x671   :  { %v7008_v4 = vrot.slane %v6988_v10, %v10421_v26 }
 0x6aa   :  { %v6850_v59 = vpop.f32.mrf.mxu0 }
 0x6ab   :  { %v6851_v37 = vadd.f32 %v6850_v59, %v6810_v42 }
 0x6ac   :  { %v6852_v46 = vpop.f32.mrf.mxu0 }
 0x6ad   :  { %v6869_v0 = vrot.slane %v6851_v37, 4  ;;  %v6853_v22 = vadd.f32 %v6852_v46, %v6812_v19 }
 0x6ae   :  { %v6854_v47 = vpop.f32.mrf.mxu0 }
 0x6af   :  { %v6870_v8 = vadd.f32 %v6869_v0, %v6851_v37  ;;  %v6875_v18 = vrot.slane %v6853_v22, 4  ;;  %v9738_v47 = vld [vmem:[#allocation14 + $0x60] ss:$8 sps:$4 sm:$0xff]  }
 0x6b0   :  { %v6855_v43 = vpop.f32.mrf.mxu0  ;;  %7738 = vmatpush1.bf16.msra.mxu1 %v9738_v47 }
 0x6b1   :  { %v6871_v20 = vrot.slane %v6870_v8, 2  ;;  %v6876_v11 = vadd.f32 %v6875_v18, %v6853_v22  ;;  %v9741_v18 = vld [vmem:[#allocation14 + $0x50] ss:$8 sps:$4 sm:$0xff]   ;;  %7739 = vmatprep.subr.bf16.mxu1 %v9743_v7  ;;  %v9746_v43 = vld [vmem:[#allocation14 + $0x44] ss:$8 sps:$4 sm:$0xff]  }
 0x6b3   :  { %v6872_v36 = vadd.f32 %v6871_v20, %v6870_v8  ;;  %v6877_v13 = vrot.slane %v6876_v11, 2  ;;  %v9744_v20 = vld [vmem:[#allocation14 + $0x40] ss:$8 sps:$4 sm:$0xff]  }
 0x6b4   :  { %7740 = vmatpush1.bf16.msra.mxu1 %v9741_v18 }
 0x6b5   :  { %v6873_v21 = vrot.slane %v6872_v36, 1  ;;  %v6878_v12 = vadd.f32 %v6877_v13, %v6876_v11  ;;  %7741 = vmatprep.subr.bf16.mxu1 %v9746_v43  ;;  %v9749_v11 = vld [vmem:[#allocation14 + $0x34] ss:$8 sps:$4 sm:$0xff]   ;;  %v9752_v13 = vld [vmem:[#allocation14 + $0x24] ss:$8 sps:$4 sm:$0xff]  }
 0x6b7   :  { %v6874_v61 = vadd.f32 %v6873_v21, %v6872_v36  ;;  %v6879_v25 = vrot.slane %v6878_v12, 1  ;;  %v9747_v36 = vld [vmem:[#allocation14 + $0x30] ss:$8 sps:$4 sm:$0xff]   ;;  %v9750_v21 = vld [vmem:[#allocation14 + $0x20] ss:$8 sps:$4 sm:$0xff]  }
 0x6b8   :  { %7742 = vmatpush1.bf16.msra.mxu1 %v9744_v20 }
 0x6b9   :  { %v6883_v28 = vmul.f32 0.125, %v6874_v61  ;;  %v6880_v29 = vadd.f32 %v6879_v25, %v6878_v12  ;;  %7743 = vmatprep.subr.bf16.mxu1 %v9749_v11  ;;  %v9755_v12 = vld [vmem:[#allocation14 + $0x14] ss:$8 sps:$4 sm:$0xff]   ;;  %v9753_v61 = vld [vmem:[#allocation14 + $0x10] ss:$8 sps:$4 sm:$0xff]  }
 0x6ba   :  { %v9758_v25 = vld [vmem:[#allocation14 + $0x4] ss:$8 sps:$4 sm:$0xff]  }
 0x6bb   :  { %v6887_v31 = vsub.f32 %v6851_v37, %v6883_v28  ;;  %v6884_v32 = vmul.f32 0.125, %v6880_v29  ;;  %v9756_v28 = vld [vmem:[#allocation14] ss:$8 sps:$4 sm:$0xff]   ;;  %v9761_v29 = vld [vmem:[#allocation14 + $0xf4] ss:$8 sps:$4 sm:$0xff]  }
 0x6bc   :  { %7744 = vmatpush1.bf16.msra.mxu1 %v9747_v36 }
 0x6bd   :  { %v6891_v30 = vmul.f32 %v6887_v31, %v6887_v31  ;;  %v6888_v33 = vsub.f32 %v6853_v22, %v6884_v32  ;;  %7745 = vmatprep.subr.bf16.mxu1 %v9752_v13  ;;  %v9764_v32 = vld [vmem:[#allocation14 + $0xe4] ss:$8 sps:$4 sm:$0xff]  }
 0x6bf   :  { %v6905_v34 = vrot.slane %v6891_v30, 4  ;;  %v6892_v35 = vmul.f32 %v6888_v33, %v6888_v33 }
 0x6c0   :  { %7746 = vmatpush1.bf16.msra.mxu1 %v9750_v21 }
 0x6c1   :  { %v6906_v40 = vadd.f32 %v6905_v34, %v6891_v30  ;;  %v6911_v23 = vrot.slane %v6892_v35, 4  ;;  %7747 = vmatprep.subr.bf16.mxu1 %v9755_v12  ;;  %v9762_v30 = vld [vmem:[#allocation14 + $0xe0] ss:$8 sps:$4 sm:$0xff]   ;;  %v9765_v34 = vld [vmem:[#allocation14 + $0xd0] ss:$8 sps:$4 sm:$0xff]  }
 0x6c3   :  { %v6907_v54 = vrot.slane %v6906_v40, 2  ;;  %v6912_v14 = vadd.f32 %v6911_v23, %v6892_v35  ;;  %v9770_v35 = vld [vmem:[#allocation14 + $0xc4] ss:$8 sps:$4 sm:$0xff]   ;;  %v9773_v23 = vld [vmem:[#allocation14 + $0xb4] ss:$8 sps:$4 sm:$0xff]  }
 0x6c4   :  { %7748 = vmatpush1.bf16.msra.mxu1 %v9753_v61 }
 0x6c5   :  { %v6908_v60 = vadd.f32 %v6907_v54, %v6906_v40  ;;  %v6913_v45 = vrot.slane %v6912_v14, 2  ;;  %7749 = vmatprep.subr.bf16.mxu1 %v9758_v25  ;;  %v9768_v40 = vld [vmem:[#allocation14 + $0xc0] ss:$8 sps:$4 sm:$0xff]   ;;  %v9771_v54 = vld [vmem:[#allocation14 + $0xb0] ss:$8 sps:$4 sm:$0xff]  }
 0x6c7   :  { %v6909_v49 = vrot.slane %v6908_v60, 1  ;;  %v6914_v50 = vadd.f32 %v6913_v45, %v6912_v14  ;;  %v9776_v14 = vld [vmem:[#allocation14 + $0xa4] ss:$8 sps:$4 sm:$0xff]   ;;  %v9777_v45 = vld [vmem:[#allocation14 + $0x90] ss:$8 sps:$4 sm:$0xff]  }
 0x6c8   :  { %7750 = vmatpush1.bf16.msra.mxu1 %v9756_v28  ;;  %v10576_v28 = vld [vmem:[#allocation17] sm:$0xff] }
 0x6c9   :  { %v6910_v52 = vadd.f32 %v6909_v49, %v6908_v60  ;;  %v6915_v15 = vrot.slane %v6914_v50, 1  ;;  %7751 = vmatprep.subr.bf16.mxu1 %v9761_v29  ;;  %v9774_v60 = vld [vmem:[#allocation14 + $0xa0] ss:$8 sps:$4 sm:$0xff]   ;;  %v9779_v49 = vld [vmem:[#allocation14 + $0x94] ss:$8 sps:$4 sm:$0xff]   ;;  %v7524_v29 = vrot.slane %v10576_v28, %v10418_v17 }
 0x6cb   :  { %v6919_v27 = vmul.f32 0.125, %v6910_v52  ;;  %v6916_v57 = vadd.f32 %v6915_v15, %v6914_v50  ;;  %v9782_v50 = vld [vmem:[#allocation14 + $0x84] ss:$8 sps:$4 sm:$0xff]   ;;  %v9780_v52 = vld [vmem:[#allocation14 + $0x80] ss:$8 sps:$4 sm:$0xff]  }
 0x6cc   :  { %v9783_v15 = vld [vmem:[#allocation16 + $0x70] ss:$8 sps:$4 sm:$0xff]  }
 0x6cd   :  { %v6923_v63 = vadd.f32 1e-05, %v6919_v27  ;;  %v6920_v53 = vmul.f32 0.125, %v6916_v57  ;;  %v9785_v27 = vld [vmem:[#allocation16 + $0x74] ss:$8 sps:$4 sm:$0xff]  }
 0x6ce   :  { %8036 = vmatprep.subr.bf16.mxu0 %v9785_v27  ;;  %v9789_v27 = vld [vmem:[#allocation16 + $0x50] ss:$8 sps:$4 sm:$0xff]  }
 0x6cf   :  { %9863 = vrsqrt.f32 %v6923_v63  ;;  %v6924_v55 = vadd.f32 1e-05, %v6920_v53 }
 0x6d1   :  { %9865 = vrsqrt.f32 %v6924_v55 }
 0x6dc   :  { %v9864_v24 = vpop.eup %9863 }
 0x6dd   :  { %v6931_v1 = vmul.f32 %v9864_v24, %v6887_v31  ;;  %v9759_v31 = vld [vmem:[#allocation14 + $0xf0] ss:$8 sps:$4 sm:$0xff]  }
 0x6de   :  { %v9866_v42 = vpop.eup %9865  ;;  %7752 = vmatpush2.bf16.msra.mxu1 %v9759_v31 }
 0x6df   :  { %v6971_v56 = vmul.f32 %v6964_v39, %v6931_v1  ;;  %v6932_v2 = vmul.f32 %v9866_v42, %v6888_v33  ;;  %7753 = vmatprep.subr.bf16.mxu1 %v9764_v32  ;;  %v9767_v33 = vld [vmem:[#allocation14 + $0xd4] ss:$8 sps:$4 sm:$0xff]  }
 0x6e1   :  { %v6972_v44 = vmul.f32 %v6968_v41, %v6932_v2  ;;  %v7011_v59 = vadd.f32 %v7004_v62, %v6971_v56 }
 0x6e2   :  { %7754 = vmatpush2.bf16.msra.mxu1 %v9762_v30  ;;  %v10580_v30 = vld [vmem:[#allocation17 + $0x8] sm:$0xff] }
 0x6e3   :  { %v7012_v19 = vadd.f32 %v7008_v4, %v6972_v44  ;;  %v7015_v46 = vpack.c.bf16 %v7011_v59, %v7011_v59  ;;  %7755 = vmatprep.subr.bf16.mxu1 %v9767_v33  ;;  %v7528_v33 = vrot.slane %v10580_v30, %v10418_v17  ;;  %v9791_v17 = vld [vmem:[#allocation16 + $0x54] ss:$8 sps:$4 sm:$0xff]  }
 0x6e5   :  { %v7016_v37 = vpack.c.bf16 %v7012_v19, %v7012_v19 }
 0x6e6   :  { %7756 = vmatpush2.bf16.msra.mxu1 %v9765_v34 }
 0x6e7   :  { %7474 = vmatprep.mubr.bf16.mxu0 %v7016_v37  ;;  %7757 = vmatprep.subr.bf16.mxu1 %v9770_v35  ;;  %v7534_v35 = vrot.slane %v10576_v28, %v10421_v26 }
 0x6e8   :  { %7475 = vmatmul.mubr.bf16.vlgmr.msra.gmra.mxu0 %v7015_v46 }
 0x6e9   :  { %8037 = vmatpush1.bf16.msra.mxu0 %v9783_v15  ;;  %v9786_v15 = vld [vmem:[#allocation16 + $0x60] ss:$8 sps:$4 sm:$0xff]  }
 0x6ea   :  { %7758 = vmatpush2.bf16.msra.mxu1 %v9768_v40 }
 0x6eb   :  { %7759 = vmatprep.subr.bf16.mxu1 %v9773_v23 }
 0x6ee   :  { %7760 = vmatpush2.bf16.msra.mxu1 %v9771_v54  ;;  %v7538_v54 = vrot.slane %v10580_v30, %v10421_v26  ;;  %v9797_v26 = vld [vmem:[#allocation16 + $0x34] ss:$8 sps:$4 sm:$0xff]  }
 0x6ef   :  { %7761 = vmatprep.subr.bf16.mxu1 %v9776_v14 }
 0x6f2   :  { %7762 = vmatpush2.bf16.msra.mxu1 %v9774_v60 }
 0x6f3   :  { %7763 = vmatprep.subr.bf16.mxu1 %v9779_v49 }
 0x6f6   :  { %7764 = vmatpush2.bf16.msra.mxu1 %v9777_v45 }
 0x6f7   :  { %7765 = vmatprep.subr.bf16.mxu1 %v9782_v50 }
 0x6fa   :  { %7766 = vmatpush2.bf16.msra.mxu1 %v9780_v52  ;;  %v9788_v52 = vld [vmem:[#allocation16 + $0x64] ss:$8 sps:$4 sm:$0xff]  }
 0x6fb   :  { %8038 = vmatprep.subr.bf16.mxu0 %v9788_v52 }
 0x6fc   :  { %8039 = vmatpush1.bf16.msra.mxu0 %v9786_v15 }
 0x6fd   :  { %8040 = vmatprep.subr.bf16.mxu0 %v9791_v17 }
 0x700   :  { %8041 = vmatpush1.bf16.msra.mxu0 %v9789_v27 }
 0x728   :  { %v10570_v0 = vpop.f32.mrf.mxu1 }
 0x72a   :  { %v10572_v22 = vpop.f32.mrf.mxu1 }
 0x72c   :  { %v7439_v48 = vpop.f32.mrf.mxu1 }
 0x72e   :  { %v7440_v8 = vpop.f32.mrf.mxu1 }
 0x7a8   :  { %v7476_v57 = vpop.f32.mrf.mxu0 }
 0x7a9   :  { %v7477_v63 = vadd.f32 %v7476_v57, %v10570_v0  ;;  %v9794_v57 = vld [vmem:[#allocation16 + $0x44] ss:$8 sps:$4 sm:$0xff]  }
 0x7aa   :  { %v7478_v53 = vpop.f32.mrf.mxu0  ;;  %8042 = vmatprep.subr.bf16.mxu0 %v9794_v57 }
 0x7ab   :  { %v7483_v55 = vrot.slane %v7477_v63, 4  ;;  %v7479_v51 = vadd.f32 %v7478_v53, %v10572_v22  ;;  %v9795_v53 = vld [vmem:[#allocation16 + $0x30] ss:$8 sps:$4 sm:$0xff]  }
 0x7ac   :  { %v7480_v58 = vpop.f32.mrf.mxu0 }
 0x7ad   :  { %v7484_v6 = vadd.f32 %v7483_v55, %v7477_v63  ;;  %v7489_v38 = vrot.slane %v7479_v51, 4  ;;  %v9800_v55 = vld [vmem:[#allocation16 + $0x24] ss:$8 sps:$4 sm:$0xff]   ;;  %v9803_v58 = vld [vmem:[#allocation16 + $0x14] ss:$8 sps:$4 sm:$0xff]  }
 0x7ae   :  { %v7481_v39 = vpop.f32.mrf.mxu0 }
 0x7af   :  { %v7485_v10 = vrot.slane %v7484_v6, 2  ;;  %v7490_v24 = vadd.f32 %v7489_v38, %v7479_v51  ;;  %v9806_v38 = vld [vmem:[#allocation16 + $0x4] ss:$8 sps:$4 sm:$0xff]   ;;  %v9804_v39 = vld [vmem:[#allocation16] ss:$8 sps:$4 sm:$0xff]  }
 0x7b1   :  { %v7486_v1 = vadd.f32 %v7485_v10, %v7484_v6  ;;  %v7491_v41 = vrot.slane %v7490_v24, 2  ;;  %v9801_v6 = vld [vmem:[#allocation16 + $0x10] ss:$8 sps:$4 sm:$0xff]   ;;  %v9809_v10 = vld [vmem:[#allocation16 + $0xf4] ss:$8 sps:$4 sm:$0xff]  }
 0x7b3   :  { %v7487_v42 = vrot.slane %v7486_v1, 1  ;;  %v7492_v62 = vadd.f32 %v7491_v41, %v7490_v24  ;;  %v9807_v24 = vld [vmem:[#allocation16 + $0xf0] ss:$8 sps:$4 sm:$0xff]   ;;  %v9810_v41 = vld [vmem:[#allocation16 + $0xe0] ss:$8 sps:$4 sm:$0xff]  }
 0x7b5   :  { %v7488_v56 = vadd.f32 %v7487_v42, %v7486_v1  ;;  %v7493_v2 = vrot.slane %v7492_v62, 1  ;;  %v9812_v1 = vld [vmem:[#allocation16 + $0xe4] ss:$8 sps:$4 sm:$0xff]   ;;  %v9815_v42 = vld [vmem:[#allocation16 + $0xd4] ss:$8 sps:$4 sm:$0xff]  }
 0x7b7   :  { %v7495_v4 = vmul.f32 0.125, %v7488_v56  ;;  %v7494_v44 = vadd.f32 %v7493_v2, %v7492_v62  ;;  %v9813_v62 = vld [vmem:[#allocation16 + $0xd0] ss:$8 sps:$4 sm:$0xff]   ;;  %v9818_v56 = vld [vmem:[#allocation16 + $0xc4] ss:$8 sps:$4 sm:$0xff]  }
 0x7b8   :  { %v9816_v2 = vld [vmem:[#allocation16 + $0xc0] ss:$8 sps:$4 sm:$0xff]  }
 0x7b9   :  { %v7497_v59 = vsub.f32 %v7477_v63, %v7495_v4  ;;  %v7496_v19 = vmul.f32 0.125, %v7494_v44  ;;  %v9792_v63 = vld [vmem:[#allocation16 + $0x40] ss:$8 sps:$4 sm:$0xff]   ;;  %v9821_v4 = vld [vmem:[#allocation16 + $0xb4] ss:$8 sps:$4 sm:$0xff]  }
 0x7ba   :  { %8043 = vmatpush1.bf16.msra.mxu0 %v9792_v63  ;;  %v9819_v44 = vld [vmem:[#allocation16 + $0xb0] ss:$8 sps:$4 sm:$0xff]  }
 0x7bb   :  { %v7499_v37 = vmul.f32 %v7497_v59, %v7497_v59  ;;  %v7498_v46 = vsub.f32 %v7479_v51, %v7496_v19  ;;  %8044 = vmatprep.subr.bf16.mxu0 %v9797_v26  ;;  %v9798_v51 = vld [vmem:[#allocation16 + $0x20] ss:$8 sps:$4 sm:$0xff]  }
 0x7bc   :  { %v9822_v19 = vld [vmem:[#allocation16 + $0xa0] ss:$8 sps:$4 sm:$0xff]  }
 0x7bd   :  { %v7501_v0 = vrot.slane %v7499_v37, 4  ;;  %v7500_v16 = vmul.f32 %v7498_v46, %v7498_v46 }
 0x7be   :  { %8045 = vmatpush1.bf16.msra.mxu0 %v9795_v53 }
 0x7bf   :  { %v7502_v22 = vadd.f32 %v7501_v0, %v7499_v37  ;;  %v7507_v47 = vrot.slane %v7500_v16, 4  ;;  %8046 = vmatprep.subr.bf16.mxu0 %v9800_v55  ;;  %v9825_v37 = vld [vmem:[#allocation16 + $0x90] ss:$8 sps:$4 sm:$0xff]   ;;  %v9830_v0 = vld [vmem:[#allocation16 + $0x84] ss:$8 sps:$4 sm:$0xff]  }
 0x7c1   :  { %v7503_v48 = vrot.slane %v7502_v22, 2  ;;  %v7508_v7 = vadd.f32 %v7507_v47, %v7500_v16  ;;  %v9828_v16 = vld [vmem:[#allocation16 + $0x80] ss:$8 sps:$4 sm:$0xff]  }
 0x7c2   :  { %8047 = vmatpush1.bf16.msra.mxu0 %v9798_v51  ;;  %v7817_v51 = vrot.slane %v10576_v28, %v10351_v3 }
 0x7c3   :  { %v7504_v8 = vadd.f32 %v7503_v48, %v7502_v22  ;;  %v7509_v18 = vrot.slane %v7508_v7, 2  ;;  %8048 = vmatprep.subr.bf16.mxu0 %v9803_v58 }
 0x7c5   :  { %v7505_v43 = vrot.slane %v7504_v8, 1  ;;  %v7510_v20 = vadd.f32 %v7509_v18, %v7508_v7 }
 0x7c6   :  { %8049 = vmatpush1.bf16.msra.mxu0 %v9801_v6 }
 0x7c7   :  { %v7506_v11 = vadd.f32 %v7505_v43, %v7504_v8  ;;  %v7511_v36 = vrot.slane %v7510_v20, 1  ;;  %8050 = vmatprep.subr.bf16.mxu0 %v9806_v38  ;;  %v7821_v38 = vrot.slane %v10580_v30, %v10351_v3  ;;  %v7875_v3 = vrot.slane %v10580_v30, %v10448_v9 }
 0x7c9   :  { %v7513_v13 = vmul.f32 0.125, %v7506_v11  ;;  %v7512_v21 = vadd.f32 %v7511_v36, %v7510_v20 }
 0x7ca   :  { %8051 = vmatpush1.bf16.msra.mxu0 %v9804_v39 }
 0x7cb   :  { %v7515_v12 = vadd.f32 1e-05, %v7513_v13  ;;  %v7514_v61 = vmul.f32 0.125, %v7512_v21  ;;  %8052 = vmatprep.subr.bf16.mxu0 %v9809_v10  ;;  %v7827_v10 = vrot.slane %v10576_v28, %v10355_v5 }
 0x7cd   :  { %9867 = vrsqrt.f32 %v7515_v12  ;;  %v7516_v25 = vadd.f32 1e-05, %v7514_v61 }
 0x7ce   :  { %8053 = vmatpush2.bf16.msra.mxu0 %v9807_v24 }
 0x7cf   :  { %9869 = vrsqrt.f32 %v7516_v25  ;;  %8054 = vmatprep.subr.bf16.mxu0 %v9812_v1 }
 0x7d2   :  { %8055 = vmatpush2.bf16.msra.mxu0 %v9810_v41  ;;  %v7831_v41 = vrot.slane %v10580_v30, %v10355_v5 }
 0x7d3   :  { %8056 = vmatprep.subr.bf16.mxu0 %v9815_v42 }
 0x7d6   :  { %8057 = vmatpush2.bf16.msra.mxu0 %v9813_v62 }
 0x7d7   :  { %8058 = vmatprep.subr.bf16.mxu0 %v9818_v56 }
 0x7da   :  { %v9868_v31 = vpop.eup %9867  ;;  %8059 = vmatpush2.bf16.msra.mxu0 %v9816_v2 }
 0x7db   :  { %v7519_v32 = vmul.f32 %v9868_v31, %v7497_v59  ;;  %8060 = vmatprep.subr.bf16.mxu0 %v9821_v4  ;;  %v9824_v59 = vld [vmem:[#allocation16 + $0xa4] ss:$8 sps:$4 sm:$0xff]  }
 0x7dc   :  { %v9870_v34 = vpop.eup %9869 }
 0x7dd   :  { %v7529_v40 = vmul.f32 %v7524_v29, %v7519_v32  ;;  %v7520_v23 = vmul.f32 %v9870_v34, %v7498_v46  ;;  %v9827_v46 = vld [vmem:[#allocation16 + $0x94] ss:$8 sps:$4 sm:$0xff]  }
 0x7de   :  { %8061 = vmatpush2.bf16.msra.mxu0 %v9819_v44  ;;  %v7871_v44 = vrot.slane %v10576_v28, %v10448_v9 }
 0x7df   :  { %v7530_v14 = vmul.f32 %v7528_v33, %v7520_v23  ;;  %v7539_v60 = vadd.f32 %v7534_v35, %v7529_v40  ;;  %8062 = vmatprep.subr.bf16.mxu0 %v9824_v59 }
 0x7e1   :  { %v7540_v45 = vadd.f32 %v7538_v54, %v7530_v14  ;;  %v7541_v50 = vpack.c.bf16 %v7539_v60, %v7539_v60 }
 0x7e2   :  { %8063 = vmatpush2.bf16.msra.mxu0 %v9822_v19 }
 0x7e3   :  { %v7542_v49 = vpack.c.bf16 %v7540_v45, %v7540_v45  ;;  %8064 = vmatprep.subr.bf16.mxu0 %v9827_v46 }
 0x7e5   :  { %7767 = vmatprep.mubr.bf16.mxu1 %v7542_v49 }
 0x7e6   :  { %7768 = vmatmul.mubr.bf16.vlgmr.msra.gmra.mxu1 %v7541_v50  ;;  %8065 = vmatpush2.bf16.msra.mxu0 %v9825_v37 }
 0x7e7   :  { %8066 = vmatprep.subr.bf16.mxu0 %v9830_v0 }
 0x7ea   :  { %8067 = vmatpush2.bf16.msra.mxu0 %v9828_v16 }
 0x8a6   :  { %v7769_v22 = vpop.f32.mrf.mxu1 }
 0x8a7   :  { %v7776_v47 = vrot.slane %v7769_v22, 4 }
 0x8a8   :  { %v7771_v48 = vpop.f32.mrf.mxu1 }
 0x8a9   :  { %v7777_v7 = vadd.f32 %v7776_v47, %v7769_v22  ;;  %v7782_v8 = vrot.slane %v7771_v48, 4 }
 0x8aa   :  { %v7773_v18 = vpop.f32.mrf.mxu1 }
 0x8ab   :  { %v7778_v43 = vrot.slane %v7777_v7, 2  ;;  %v7783_v20 = vadd.f32 %v7782_v8, %v7771_v48 }
 0x8ac   :  { %v7774_v11 = vpop.f32.mrf.mxu1 }
 0x8ad   :  { %v7779_v36 = vadd.f32 %v7778_v43, %v7777_v7  ;;  %v7784_v13 = vrot.slane %v7783_v20, 2 }
 0x8af   :  { %v7780_v21 = vrot.slane %v7779_v36, 1  ;;  %v7785_v12 = vadd.f32 %v7784_v13, %v7783_v20 }
 0x8b1   :  { %v7781_v61 = vadd.f32 %v7780_v21, %v7779_v36  ;;  %v7786_v25 = vrot.slane %v7785_v12, 1 }
 0x8b3   :  { %v7788_v29 = vmul.f32 0.125, %v7781_v61  ;;  %v7787_v31 = vadd.f32 %v7786_v25, %v7785_v12 }
 0x8b5   :  { %v7790_v32 = vsub.f32 %v7769_v22, %v7788_v29  ;;  %v7789_v33 = vmul.f32 0.125, %v7787_v31 }
 0x8b7   :  { %v7792_v34 = vmul.f32 %v7790_v32, %v7790_v32  ;;  %v7791_v35 = vsub.f32 %v7771_v48, %v7789_v33 }
 0x8b9   :  { %v7794_v40 = vrot.slane %v7792_v34, 4  ;;  %v7793_v23 = vmul.f32 %v7791_v35, %v7791_v35 }
 0x8bb   :  { %v7795_v54 = vadd.f32 %v7794_v40, %v7792_v34  ;;  %v7800_v14 = vrot.slane %v7793_v23, 4 }
 0x8bd   :  { %v7796_v60 = vrot.slane %v7795_v54, 2  ;;  %v7801_v45 = vadd.f32 %v7800_v14, %v7793_v23 }
 0x8bf   :  { %v7797_v49 = vadd.f32 %v7796_v60, %v7795_v54  ;;  %v7802_v50 = vrot.slane %v7801_v45, 2 }
 0x8c1   :  { %v7798_v52 = vrot.slane %v7797_v49, 1  ;;  %v7803_v15 = vadd.f32 %v7802_v50, %v7801_v45 }
 0x8c3   :  { %v7799_v17 = vadd.f32 %v7798_v52, %v7797_v49  ;;  %v7804_v27 = vrot.slane %v7803_v15, 1 }
 0x8c5   :  { %v7806_v57 = vmul.f32 0.125, %v7799_v17  ;;  %v7805_v63 = vadd.f32 %v7804_v27, %v7803_v15 }
 0x8c7   :  { %v7808_v26 = vadd.f32 1e-05, %v7806_v57  ;;  %v7807_v53 = vmul.f32 0.125, %v7805_v63 }
 0x8c9   :  { %9871 = vrsqrt.f32 %v7808_v26  ;;  %v7809_v55 = vadd.f32 1e-05, %v7807_v53 }
 0x8cb   :  { %9873 = vrsqrt.f32 %v7809_v55 }
 0x8d6   :  { %v9872_v58 = vpop.eup %9871 }
 0x8d7   :  { %v7812_v6 = vmul.f32 %v9872_v58, %v7790_v32 }
 0x8d8   :  { %v9874_v39 = vpop.eup %9873 }
 0x8d9   :  { %v7822_v24 = vmul.f32 %v7817_v51, %v7812_v6  ;;  %v7813_v1 = vmul.f32 %v9874_v39, %v7791_v35 }
 0x8db   :  { %v7823_v42 = vmul.f32 %v7821_v38, %v7813_v1  ;;  %v7832_v62 = vadd.f32 %v7827_v10, %v7822_v24 }
 0x8dd   :  { %v7833_v56 = vadd.f32 %v7831_v41, %v7823_v42  ;;  %v7834_v4 = vpack.c.bf16 %v7832_v62, %v7832_v62 }
 0x8df   :  { %v7835_v2 = vpack.c.bf16 %v7833_v56, %v7833_v56 }
 0x8e1   :  { %8068 = vmatprep.mubr.bf16.mxu0 %v7835_v2 }
 0x8e2   :  { %8069 = vmatmul.mubr.bf16.vlgmr.msra.gmra.mxu0 %v7834_v4 }
 0x9a2   :  { %v8070_v59 = vpop.f32.mrf.mxu0 }
 0x9a3   :  { %v8071_v19 = vadd.f32 %v8070_v59, %v7871_v44 }
 0x9a4   :  { %v8072_v37 = vpop.f32.mrf.mxu0 }
 0x9a5   :  { %8077 = vst [vmem:[#allocation22] sm:$0xff] %v8071_v19  ;;  %v8073_v5 = vadd.f32 %v8072_v37, %v7875_v3 }
 0x9a6   :  { %v8074_v46 = vpop.f32.mrf.mxu0 }
 0x9a7   :  { %8078 = vst [vmem:[#allocation22 + $0x8] sm:$0xff] %v8073_v5 }
 0x9a8   :  { %v8075_v0 = vpop.f32.mrf.mxu0 }
 0x9a9   :  { %10131 = shalt.err (!%p10128_p8)
}
 0x9aa   :  { %8088 = dma.vmem_to_hbm [thread:$0]  %s8086_s11, 256, %s10615_s12, [#allocation4]  }
 0x9ab   :  { %10154 = dma.done.wait [#allocation4], 256  }
 0x9ac   :  { %10155 = vsyncadd [#allocation4], 4294967040 }
 0x9ad   :  { %8092 = vsyncpa [#allocation3], 1 }
 0x9ae   :  { %8093 = vsyncpa [#allocation6], 1 }
 0x9af   :  { %8094 = vsyncpa [#allocation9], 1 }
 0x9b0   :  { %8095 = vsyncpa [#allocation12], 1 }
 0x9b1   :  { %8096 = vsyncpa [#allocation15], 1 }
 0x9b2   :  { %8097 = vsyncpa [#allocation18], 1 }
 0x9b3   :  { %8098 = vsyncpa [#allocation21], 1 }
 0x9b4   :  { %8099 = vsyncpa [#allocation4], 1 }

</bundles_post_ra>
